<compile_context>
chip_gen: v5e
topology: v5e:2x2
jax: 0.10.0
libtpu: 0.0.40
codegen_flags: <defaults>
</compile_context>

<pallas_src>
import math
import functools

import jax
import jax.numpy as jnp
from jax import lax
from jax.experimental import pallas as pl
from jax.experimental.pallas import tpu as pltpu


def transam_kernel(src_ref, pe_ref, mask_ref,
                   wq_ref, bq_ref, wk_ref, bk_ref, wv_ref, bv_ref,
                   hsum_ref, hexp_ref,
                   out_w_ref, out_b_ref,
                   n1_w_ref, n1_b_ref,
                   l1_w_ref, l1_b_ref,
                   l2_w_ref, l2_b_ref,
                   n2_w_ref, n2_b_ref,
                   dec_w_ref, dec_b_ref,
                   o_ref,
                   *, nhead):
    # src block: (BT, S, D) -> BT batch elements fused per grid step.
    xb = src_ref[...]                                    # (BT, S, D) f32
    BT, S, D = xb.shape
    H = nhead
    Dh = D // H
    R = BT * S                                           # fused row count

    # --- positional encoding (dropout = identity) ---
    x = (xb + pe_ref[...]).reshape(R, D)                 # (R, D) f32

    # --- Q/K/V projections on the whole slab (bf16 MXU, f32 accumulate) ---
    x16 = x.astype(jnp.bfloat16)
    q = jnp.dot(x16, wq_ref[...], preferred_element_type=jnp.float32) + bq_ref[...]
    k = jnp.dot(x16, wk_ref[...], preferred_element_type=jnp.float32) + bk_ref[...]
    v = jnp.dot(x16, wv_ref[...], preferred_element_type=jnp.float32) + bv_ref[...]

    scale = 1.0 / math.sqrt(Dh)
    q = (q * scale).reshape(BT, S, D)
    k = k.reshape(BT, S, D)
    v = v.reshape(BT, S, D)

    # --- scores: per-head contraction with D kept in the lane axis ---
    # prod[b,i,j,:] = q[b,i,:] * k[b,j,:]   (VPU, f32)
    prod = q[:, :, None, :] * k[:, None, :, :]                      # (BT, S, S, D)
    # head-sum selector (D, H): sums each head's Dh lanes -> per-head scores.
    s = jnp.dot(prod.reshape(BT * S * S, D).astype(jnp.bfloat16), hsum_ref[...],
                preferred_element_type=jnp.float32).reshape(BT, S, S, H)
    s = s + mask_ref[...][None, :, :, None]                         # causal mask

    # softmax over the key axis (axis=2), f32
    m = jnp.max(s, axis=2, keepdims=True)
    e = jnp.exp(s - m)
    p = e * pl.reciprocal(jnp.sum(e, axis=2, keepdims=True), approx=True)

    # --- context: expand per-head probs back to D lanes, weight v, reduce keys ---
    p_exp = jnp.dot(p.reshape(BT * S * S, H).astype(jnp.bfloat16), hexp_ref[...],
                    preferred_element_type=jnp.float32).reshape(BT, S, S, D)
    ctx = jnp.sum(p_exp * v[:, None, :, :], axis=2).reshape(R, D)   # (R, D)

    attn = jnp.dot(ctx.astype(jnp.bfloat16), out_w_ref[...],
                   preferred_element_type=jnp.float32) + out_b_ref[...]

    # --- residual + LayerNorm 1 (post-norm, eps=1e-5) ---
    x = x + attn
    mu = jnp.mean(x, axis=-1, keepdims=True)
    xc = x - mu
    var = jnp.mean(xc * xc, axis=-1, keepdims=True)
    x = xc * lax.rsqrt(var + 1e-5) * n1_w_ref[...] + n1_b_ref[...]

    # --- feed-forward: Linear(D,F) -> ReLU -> Linear(F,D) over all R rows ---
    h1 = jnp.dot(x.astype(jnp.bfloat16), l1_w_ref[...],
                 preferred_element_type=jnp.float32) + l1_b_ref[...]
    h1 = jnp.maximum(h1, 0.0)
    ffn = jnp.dot(h1.astype(jnp.bfloat16), l2_w_ref[...],
                  preferred_element_type=jnp.float32) + l2_b_ref[...]

    # --- residual + LayerNorm 2 ---
    x = x + ffn
    mu = jnp.mean(x, axis=-1, keepdims=True)
    xc = x - mu
    var = jnp.mean(xc * xc, axis=-1, keepdims=True)
    x = xc * lax.rsqrt(var + 1e-5) * n2_w_ref[...] + n2_b_ref[...]

    # --- decoder Linear(D,1) as a VPU lane reduction, lane-dense flattened output ---
    y = jnp.sum(x * dec_w_ref[...], axis=-1).reshape(1, R) + dec_b_ref[...]   # (1, R)
    o_ref[...] = y.reshape(1, 1, R)


def init_params(key, d_model, dim_feedforward=2048, max_len=5000):
    ks = jax.random.split(key, 9)

    def u(k, shape, scale=0.05):
        return jax.random.uniform(k, shape, jnp.float32, -scale, scale)

    params = dict(
        in_proj_w=u(ks[0], (3 * d_model, d_model)),
        in_proj_b=u(ks[1], (1, 3 * d_model)),
        out_proj_w=u(ks[2], (d_model, d_model)),
        out_proj_b=u(ks[3], (1, d_model)),
        norm1_w=jnp.ones((1, d_model), jnp.float32),
        norm1_b=jnp.zeros((1, d_model), jnp.float32),
        lin1_w=u(ks[4], (dim_feedforward, d_model)),
        lin1_b=u(ks[5], (1, dim_feedforward)),
        lin2_w=u(ks[6], (d_model, dim_feedforward)),
        lin2_b=u(ks[7], (1, d_model)),
        norm2_w=jnp.ones((1, d_model), jnp.float32),
        norm2_b=jnp.zeros((1, d_model), jnp.float32),
        dec_w=u(ks[8], (1, d_model), 0.1),            # init_weights: uniform(-0.1, 0.1)
        dec_b=jnp.zeros((1, 1), jnp.float32),         # init_weights: bias.zero_()
    )

    # PositionalEncoding buffer pe[:, 0, :] -> (max_len, d_model)
    position = jnp.arange(max_len, dtype=jnp.float32)[:, None]
    div_term = jnp.exp(jnp.arange(0, d_model, 2, dtype=jnp.float32)
                       * (-math.log(10000.0) / d_model))
    pe = jnp.zeros((max_len, d_model), jnp.float32)
    pe = pe.at[:, 0::2].set(jnp.sin(position * div_term))
    pe = pe.at[:, 1::2].set(jnp.cos(position * div_term))
    params["pe"] = pe
    return params


def prepare_params(params, nhead=10):
    """One-time transform of torch-layout params into kernel-ready arrays.

    Called once (outside the per-forward wrapper) so the transposes / bf16 casts /
    in_proj split are not re-paid on every forward pass.
    """
    D = params["norm1_w"].shape[-1]
    H = nhead
    Dh = D // H
    in_w = params["in_proj_w"]                     # (3D, D): rows [Wq; Wk; Wv]
    in_b = params["in_proj_b"]                     # (1, 3D)

    # Head-sum (D,H) / head-expand (H,D) selectors: keep D = H*Dh in the lane axis
    # instead of splitting Dh=4 into lanes.
    d_head = jnp.arange(D) // Dh
    hsum = (d_head[:, None] == jnp.arange(H)[None, :]).astype(jnp.bfloat16)   # (D, H)
    hexp = hsum.T                                                             # (H, D)

    return dict(
        wq=in_w[0:D].T.astype(jnp.bfloat16),        bq=in_b[:, 0:D],
        wk=in_w[D:2 * D].T.astype(jnp.bfloat16),    bk=in_b[:, D:2 * D],
        wv=in_w[2 * D:3 * D].T.astype(jnp.bfloat16), bv=in_b[:, 2 * D:3 * D],
        hsum=hsum, hexp=hexp,
        out_w=params["out_proj_w"].T.astype(jnp.bfloat16), out_b=params["out_proj_b"],
        n1_w=params["norm1_w"], n1_b=params["norm1_b"],
        l1_w=params["lin1_w"].T.astype(jnp.bfloat16), l1_b=params["lin1_b"],
        l2_w=params["lin2_w"].T.astype(jnp.bfloat16), l2_b=params["lin2_b"],
        n2_w=params["norm2_w"], n2_b=params["norm2_b"],
        dec_w=params["dec_w"], dec_b=params["dec_b"],
        pe=params["pe"],
    )


def transam_forward(src, kp, nhead=10, b_tile=None):
    """src: (S, B, D) float32 (PyTorch seq-first). kp: prepare_params() output.
    Returns (S, B, 1)."""
    S, B, D = src.shape
    F = kp["l1_b"].shape[-1]
    H = nhead

    if b_tile is None:
        # Target >= 256 fused rows (R = b_tile*S) per grid step so the FFN/QKV
        # matmuls fill MXU rows; cap the S^2 attention intermediates (~BT*S*S*D f32)
        # so they stay well inside the 32 MiB VMEM budget.
        bt = max(1, min(B, pl.cdiv(256, S)))
        cap = max(1, (4 << 20) // max(1, S * S * D * 4))
        bt = min(bt, cap)
        # v7x megacore: only split into >=2 grid steps when both TCs get real work.
        if B * S >= 512:
            bt = min(bt, pl.cdiv(B, 2))
        b_tile = max(1, bt)

    grid_b = pl.cdiv(B, b_tile)
    b_pad = grid_b * b_tile
    R = b_tile * S

    src_bsd = jnp.transpose(src, (1, 0, 2))              # (B, S, D)
    if b_pad != B:
        src_bsd = jnp.pad(src_bsd, ((0, b_pad - B), (0, 0), (0, 0)))

    pe = kp["pe"][:S]                                    # (S, D)

    # Causal additive mask, built once per call (grid-invariant kernel input).
    row = jnp.arange(S)[:, None]
    col = jnp.arange(S)[None, :]
    mask = jnp.where(col <= row, 0.0, -jnp.inf).astype(jnp.float32)   # (S, S)

    def full(shape):
        z = (0,) * len(shape)
        return pl.BlockSpec(shape, lambda b, z=z: z)

    # NOTE: for much larger D/F on v7x, these grid-invariant weight specs could use
    # pipeline_mode=pl.Buffered(1) to drop the default double-buffering; at
    # D=40 / F=2048 total weight VMEM is ~1 MiB so it is left at the default.
    in_specs = [
        pl.BlockSpec((b_tile, S, D), lambda b: (b, 0, 0)),   # src tile
        full((S, D)),                                        # pe
        full((S, S)),                                        # causal mask
        full((D, D)), full((1, D)),                          # Wq (pre-T, bf16), bq
        full((D, D)), full((1, D)),                          # Wk, bk
        full((D, D)), full((1, D)),                          # Wv, bv
        full((D, H)), full((H, D)),                          # head-sum / head-expand selectors
        full((D, D)), full((1, D)),                          # out_proj (pre-T, bf16), bias
        full((1, D)), full((1, D)),                          # norm1
        full((D, F)), full((1, F)),                          # linear1 (pre-T, bf16), bias
        full((F, D)), full((1, D)),                          # linear2 (pre-T, bf16), bias
        full((1, D)), full((1, D)),                          # norm2
        full((1, D)), full((1, 1)),                          # decoder w, b
    ]

    out = pl.pallas_call(
        functools.partial(transam_kernel, nhead=nhead),
        out_shape=jax.ShapeDtypeStruct((grid_b, 1, R), jnp.float32),
        grid=(grid_b,),
        in_specs=in_specs,
        out_specs=pl.BlockSpec((1, 1, R), lambda b: (b, 0, 0)),
        compiler_params=pltpu.CompilerParams(
            dimension_semantics=("parallel",),
            vmem_limit_bytes=32 << 20,     # portable: v7x has 64 MiB physical VMEM
        ),
    )(src_bsd, pe, mask,
      kp["wq"], kp["bq"], kp["wk"], kp["bk"], kp["wv"], kp["bv"],
      kp["hsum"], kp["hexp"],
      kp["out_w"], kp["out_b"],
      kp["n1_w"], kp["n1_b"],
      kp["l1_w"], kp["l1_b"],
      kp["l2_w"], kp["l2_b"],
      kp["n2_w"], kp["n2_b"],
      kp["dec_w"], kp["dec_b"])

    out = out.reshape(b_pad, S)[:B]                      # (B, S)
    return jnp.transpose(out, (1, 0))[:, :, None]        # (S, B, 1)


if __name__ == "__main__":
    # Small shapes consistent with the module: d_model divisible by nhead=10.
    SEQ, BATCH, D_MODEL, NHEAD, FFN = 8, 4, 40, 10, 2048

    key = jax.random.PRNGKey(0)
    k_params, k_src = jax.random.split(key)
    params = init_params(k_params, D_MODEL, dim_feedforward=FFN)
    kparams = prepare_params(params, nhead=NHEAD)        # one-time weight prep
    src = jax.random.normal(k_src, (SEQ, BATCH, D_MODEL), jnp.float32)

    fwd = jax.jit(functools.partial(transam_forward, nhead=NHEAD))
    out = fwd(src, kparams)
    out = jax.block_until_ready(out)
    assert out.shape == (SEQ, BATCH, 1), out.shape
    assert bool(jnp.all(jnp.isfinite(out)))
    print("KERNEL_OK")
</pallas_src>

<mosaic_0001>
module attributes {stable_mosaic.version = 11 : i64} {
  func.func @transam_kernel(%arg0: i32, %arg1: memref<4x8x40xf32, #tpu.memory_space<vmem>>, %arg2: memref<8x40xf32, #tpu.memory_space<vmem>>, %arg3: memref<8x8xf32, #tpu.memory_space<vmem>>, %arg4: memref<40x40xbf16, #tpu.memory_space<vmem>>, %arg5: memref<1x40xf32, #tpu.memory_space<vmem>>, %arg6: memref<40x40xbf16, #tpu.memory_space<vmem>>, %arg7: memref<1x40xf32, #tpu.memory_space<vmem>>, %arg8: memref<40x40xbf16, #tpu.memory_space<vmem>>, %arg9: memref<1x40xf32, #tpu.memory_space<vmem>>, %arg10: memref<40x10xbf16, #tpu.memory_space<vmem>>, %arg11: memref<10x40xbf16, #tpu.memory_space<vmem>>, %arg12: memref<40x40xbf16, #tpu.memory_space<vmem>>, %arg13: memref<1x40xf32, #tpu.memory_space<vmem>>, %arg14: memref<1x40xf32, #tpu.memory_space<vmem>>, %arg15: memref<1x40xf32, #tpu.memory_space<vmem>>, %arg16: memref<40x2048xbf16, #tpu.memory_space<vmem>>, %arg17: memref<1x2048xf32, #tpu.memory_space<vmem>>, %arg18: memref<2048x40xbf16, #tpu.memory_space<vmem>>, %arg19: memref<1x40xf32, #tpu.memory_space<vmem>>, %arg20: memref<1x40xf32, #tpu.memory_space<vmem>>, %arg21: memref<1x40xf32, #tpu.memory_space<vmem>>, %arg22: memref<1x40xf32, #tpu.memory_space<vmem>>, %arg23: memref<1x1xf32, #tpu.memory_space<vmem>>, %arg24: memref<1x1x32xf32, #tpu.memory_space<vmem>>) attributes {dimension_semantics = [#tpu.dimension_semantics<parallel>], iteration_bounds = array<i64: 1>, scalar_prefetch = 0 : i64, scratch_operands = 0 : i64, tpu.core_type = #tpu.core_type<tc>, window_params = [{transform_indices = @transform_0, window_bounds = array<i64: 4, 8, 40>}, {pipeline_mode = #tpu.pipeline_mode<synchronous>, transform_indices = @transform_1, window_bounds = array<i64: 8, 40>}, {pipeline_mode = #tpu.pipeline_mode<synchronous>, transform_indices = @transform_2, window_bounds = array<i64: 8, 8>}, {pipeline_mode = #tpu.pipeline_mode<synchronous>, transform_indices = @transform_3, window_bounds = array<i64: 40, 40>}, {pipeline_mode = #tpu.pipeline_mode<synchronous>, transform_indices = @transform_4, window_bounds = array<i64: 1, 40>}, {pipeline_mode = #tpu.pipeline_mode<synchronous>, transform_indices = @transform_5, window_bounds = array<i64: 40, 40>}, {pipeline_mode = #tpu.pipeline_mode<synchronous>, transform_indices = @transform_6, window_bounds = array<i64: 1, 40>}, {pipeline_mode = #tpu.pipeline_mode<synchronous>, transform_indices = @transform_7, window_bounds = array<i64: 40, 40>}, {pipeline_mode = #tpu.pipeline_mode<synchronous>, transform_indices = @transform_8, window_bounds = array<i64: 1, 40>}, {pipeline_mode = #tpu.pipeline_mode<synchronous>, transform_indices = @transform_9, window_bounds = array<i64: 40, 10>}, {pipeline_mode = #tpu.pipeline_mode<synchronous>, transform_indices = @transform_10, window_bounds = array<i64: 10, 40>}, {pipeline_mode = #tpu.pipeline_mode<synchronous>, transform_indices = @transform_11, window_bounds = array<i64: 40, 40>}, {pipeline_mode = #tpu.pipeline_mode<synchronous>, transform_indices = @transform_12, window_bounds = array<i64: 1, 40>}, {pipeline_mode = #tpu.pipeline_mode<synchronous>, transform_indices = @transform_13, window_bounds = array<i64: 1, 40>}, {pipeline_mode = #tpu.pipeline_mode<synchronous>, transform_indices = @transform_14, window_bounds = array<i64: 1, 40>}, {pipeline_mode = #tpu.pipeline_mode<synchronous>, transform_indices = @transform_15, window_bounds = array<i64: 40, 2048>}, {pipeline_mode = #tpu.pipeline_mode<synchronous>, transform_indices = @transform_16, window_bounds = array<i64: 1, 2048>}, {pipeline_mode = #tpu.pipeline_mode<synchronous>, transform_indices = @transform_17, window_bounds = array<i64: 2048, 40>}, {pipeline_mode = #tpu.pipeline_mode<synchronous>, transform_indices = @transform_18, window_bounds = array<i64: 1, 40>}, {pipeline_mode = #tpu.pipeline_mode<synchronous>, transform_indices = @transform_19, window_bounds = array<i64: 1, 40>}, {pipeline_mode = #tpu.pipeline_mode<synchronous>, transform_indices = @transform_20, window_bounds = array<i64: 1, 40>}, {pipeline_mode = #tpu.pipeline_mode<synchronous>, transform_indices = @transform_21, window_bounds = array<i64: 1, 40>}, {pipeline_mode = #tpu.pipeline_mode<synchronous>, transform_indices = @transform_22, window_bounds = array<i64: 1, 1>}, {transform_indices = @transform_23, window_bounds = array<i64: 1, 1, 32>}]} {
    %c0 = arith.constant 0 : index
    %c0_0 = arith.constant 0 : index
    %c0_1 = arith.constant 0 : index
    %0 = vector.load %arg1[%c0, %c0_0, %c0_1] : memref<4x8x40xf32, #tpu.memory_space<vmem>>, vector<4x8x40xf32>
    %c0_2 = arith.constant 0 : index
    %c0_3 = arith.constant 0 : index
    %1 = vector.load %arg2[%c0_2, %c0_3] : memref<8x40xf32, #tpu.memory_space<vmem>>, vector<8x40xf32>
    %2 = vector.shape_cast %1 : vector<8x40xf32> to vector<1x8x40xf32>
    %3 = vector.broadcast %2 : vector<1x8x40xf32> to vector<4x8x40xf32>
    %4 = arith.addf %0, %3 : vector<4x8x40xf32>
    %5 = vector.shape_cast %4 : vector<4x8x40xf32> to vector<32x40xf32>
    %6 = arith.truncf %5 : vector<32x40xf32> to vector<32x40xbf16>
    %c0_4 = arith.constant 0 : index
    %c0_5 = arith.constant 0 : index
    %7 = vector.load %arg4[%c0_4, %c0_5] : memref<40x40xbf16, #tpu.memory_space<vmem>>, vector<40x40xbf16>
    %cst = arith.constant dense<0.000000e+00> : vector<32x40xf32>
    %8 = tpu.matmul %6, %7, %cst {dimension_numbers = #tpu.dot_dimension_numbers<[1], [0], [0], [1], [0, 0, 1, 1], [], []>} : vector<32x40xbf16>, vector<40x40xbf16>, vector<32x40xf32> -> vector<32x40xf32>
    %c0_6 = arith.constant 0 : index
    %c0_7 = arith.constant 0 : index
    %9 = vector.load %arg5[%c0_6, %c0_7] : memref<1x40xf32, #tpu.memory_space<vmem>>, vector<1x40xf32>
    %10 = vector.broadcast %9 : vector<1x40xf32> to vector<32x40xf32>
    %11 = arith.addf %8, %10 : vector<32x40xf32>
    %c0_8 = arith.constant 0 : index
    %c0_9 = arith.constant 0 : index
    %12 = vector.load %arg6[%c0_8, %c0_9] : memref<40x40xbf16, #tpu.memory_space<vmem>>, vector<40x40xbf16>
    %cst_10 = arith.constant dense<0.000000e+00> : vector<32x40xf32>
    %13 = tpu.matmul %6, %12, %cst_10 {dimension_numbers = #tpu.dot_dimension_numbers<[1], [0], [0], [1], [0, 0, 1, 1], [], []>} : vector<32x40xbf16>, vector<40x40xbf16>, vector<32x40xf32> -> vector<32x40xf32>
    %c0_11 = arith.constant 0 : index
    %c0_12 = arith.constant 0 : index
    %14 = vector.load %arg7[%c0_11, %c0_12] : memref<1x40xf32, #tpu.memory_space<vmem>>, vector<1x40xf32>
    %15 = vector.broadcast %14 : vector<1x40xf32> to vector<32x40xf32>
    %16 = arith.addf %13, %15 : vector<32x40xf32>
    %c0_13 = arith.constant 0 : index
    %c0_14 = arith.constant 0 : index
    %17 = vector.load %arg8[%c0_13, %c0_14] : memref<40x40xbf16, #tpu.memory_space<vmem>>, vector<40x40xbf16>
    %cst_15 = arith.constant dense<0.000000e+00> : vector<32x40xf32>
    %18 = tpu.matmul %6, %17, %cst_15 {dimension_numbers = #tpu.dot_dimension_numbers<[1], [0], [0], [1], [0, 0, 1, 1], [], []>} : vector<32x40xbf16>, vector<40x40xbf16>, vector<32x40xf32> -> vector<32x40xf32>
    %c0_16 = arith.constant 0 : index
    %c0_17 = arith.constant 0 : index
    %19 = vector.load %arg9[%c0_16, %c0_17] : memref<1x40xf32, #tpu.memory_space<vmem>>, vector<1x40xf32>
    %20 = vector.broadcast %19 : vector<1x40xf32> to vector<32x40xf32>
    %21 = arith.addf %18, %20 : vector<32x40xf32>
    %cst_18 = arith.constant 5.000000e-01 : f32
    %22 = vector.broadcast %cst_18 : f32 to vector<32x40xf32>
    %23 = arith.mulf %11, %22 : vector<32x40xf32>
    %24 = vector.shape_cast %23 : vector<32x40xf32> to vector<4x8x40xf32>
    %25 = vector.shape_cast %16 : vector<32x40xf32> to vector<4x8x40xf32>
    %26 = vector.shape_cast %21 : vector<32x40xf32> to vector<4x8x40xf32>
    %27 = vector.shape_cast %24 : vector<4x8x40xf32> to vector<4x8x1x40xf32>
    %28 = vector.shape_cast %25 : vector<4x8x40xf32> to vector<4x1x8x40xf32>
    %29 = vector.broadcast %27 : vector<4x8x1x40xf32> to vector<4x8x8x40xf32>
    %30 = vector.broadcast %28 : vector<4x1x8x40xf32> to vector<4x8x8x40xf32>
    %31 = arith.mulf %29, %30 : vector<4x8x8x40xf32>
    %32 = vector.shape_cast %31 : vector<4x8x8x40xf32> to vector<256x40xf32>
    %33 = arith.truncf %32 : vector<256x40xf32> to vector<256x40xbf16>
    %c0_19 = arith.constant 0 : index
    %c0_20 = arith.constant 0 : index
    %34 = vector.load %arg10[%c0_19, %c0_20] : memref<40x10xbf16, #tpu.memory_space<vmem>>, vector<40x10xbf16>
    %cst_21 = arith.constant dense<0.000000e+00> : vector<256x10xf32>
    %35 = tpu.matmul %33, %34, %cst_21 {dimension_numbers = #tpu.dot_dimension_numbers<[1], [0], [0], [1], [0, 0, 1, 1], [], []>} : vector<256x40xbf16>, vector<40x10xbf16>, vector<256x10xf32> -> vector<256x10xf32>
    %36 = vector.shape_cast %35 : vector<256x10xf32> to vector<4x8x8x10xf32>
    %c0_22 = arith.constant 0 : index
    %c0_23 = arith.constant 0 : index
    %37 = vector.load %arg3[%c0_22, %c0_23] : memref<8x8xf32, #tpu.memory_space<vmem>>, vector<8x8xf32>
    %38 = vector.shape_cast %37 : vector<8x8xf32> to vector<1x8x8x1xf32>
    %39 = vector.broadcast %38 : vector<1x8x8x1xf32> to vector<4x8x8x10xf32>
    %40 = arith.addf %36, %39 : vector<4x8x8x10xf32>
    %cst_24 = arith.constant dense<0xFF800000> : vector<4x8x10xf32>
    %41 = vector.multi_reduction <maximumf>, %40, %cst_24 [2] : vector<4x8x8x10xf32> to vector<4x8x10xf32>
    %42 = vector.shape_cast %41 : vector<4x8x10xf32> to vector<4x8x1x10xf32>
    %43 = vector.broadcast %42 : vector<4x8x1x10xf32> to vector<4x8x8x10xf32>
    %44 = arith.subf %40, %43 : vector<4x8x8x10xf32>
    %45 = math.exp %44 : vector<4x8x8x10xf32>
    %cst_25 = arith.constant dense<0.000000e+00> : vector<4x8x10xf32>
    %46 = vector.multi_reduction <add>, %45, %cst_25 [2] : vector<4x8x8x10xf32> to vector<4x8x10xf32>
    %47 = vector.shape_cast %46 : vector<4x8x10xf32> to vector<4x8x1x10xf32>
    %48 = tpu.reciprocal %47 {approx = true} : vector<4x8x1x10xf32> -> vector<4x8x1x10xf32>
    %49 = vector.broadcast %48 : vector<4x8x1x10xf32> to vector<4x8x8x10xf32>
    %50 = arith.mulf %45, %49 : vector<4x8x8x10xf32>
    %51 = vector.shape_cast %50 : vector<4x8x8x10xf32> to vector<256x10xf32>
    %52 = arith.truncf %51 : vector<256x10xf32> to vector<256x10xbf16>
    %c0_26 = arith.constant 0 : index
    %c0_27 = arith.constant 0 : index
    %53 = vector.load %arg11[%c0_26, %c0_27] : memref<10x40xbf16, #tpu.memory_space<vmem>>, vector<10x40xbf16>
    %cst_28 = arith.constant dense<0.000000e+00> : vector<256x40xf32>
    %54 = tpu.matmul %52, %53, %cst_28 {dimension_numbers = #tpu.dot_dimension_numbers<[1], [0], [0], [1], [0, 0, 1, 1], [], []>} : vector<256x10xbf16>, vector<10x40xbf16>, vector<256x40xf32> -> vector<256x40xf32>
    %55 = vector.shape_cast %54 : vector<256x40xf32> to vector<4x8x8x40xf32>
    %56 = vector.shape_cast %26 : vector<4x8x40xf32> to vector<4x1x8x40xf32>
    %57 = vector.broadcast %56 : vector<4x1x8x40xf32> to vector<4x8x8x40xf32>
    %58 = arith.mulf %55, %57 : vector<4x8x8x40xf32>
    %cst_29 = arith.constant dense<0.000000e+00> : vector<4x8x40xf32>
    %59 = vector.multi_reduction <add>, %58, %cst_29 [2] : vector<4x8x8x40xf32> to vector<4x8x40xf32>
    %60 = vector.shape_cast %59 : vector<4x8x40xf32> to vector<32x40xf32>
    %61 = arith.truncf %60 : vector<32x40xf32> to vector<32x40xbf16>
    %c0_30 = arith.constant 0 : index
    %c0_31 = arith.constant 0 : index
    %62 = vector.load %arg12[%c0_30, %c0_31] : memref<40x40xbf16, #tpu.memory_space<vmem>>, vector<40x40xbf16>
    %cst_32 = arith.constant dense<0.000000e+00> : vector<32x40xf32>
    %63 = tpu.matmul %61, %62, %cst_32 {dimension_numbers = #tpu.dot_dimension_numbers<[1], [0], [0], [1], [0, 0, 1, 1], [], []>} : vector<32x40xbf16>, vector<40x40xbf16>, vector<32x40xf32> -> vector<32x40xf32>
    %c0_33 = arith.constant 0 : index
    %c0_34 = arith.constant 0 : index
    %64 = vector.load %arg13[%c0_33, %c0_34] : memref<1x40xf32, #tpu.memory_space<vmem>>, vector<1x40xf32>
    %65 = vector.broadcast %64 : vector<1x40xf32> to vector<32x40xf32>
    %66 = arith.addf %63, %65 : vector<32x40xf32>
    %67 = arith.addf %5, %66 : vector<32x40xf32>
    %cst_35 = arith.constant dense<0.000000e+00> : vector<32xf32>
    %68 = vector.multi_reduction <add>, %67, %cst_35 [1] : vector<32x40xf32> to vector<32xf32>
    %69 = vector.shape_cast %68 : vector<32xf32> to vector<32x1xf32>
    %cst_36 = arith.constant 4.000000e+01 : f32
    %70 = vector.broadcast %cst_36 : f32 to vector<32x1xf32>
    %71 = arith.divf %69, %70 : vector<32x1xf32>
    %72 = vector.broadcast %71 : vector<32x1xf32> to vector<32x40xf32>
    %73 = arith.subf %67, %72 : vector<32x40xf32>
    %74 = arith.mulf %73, %73 : vector<32x40xf32>
    %cst_37 = arith.constant dense<0.000000e+00> : vector<32xf32>
    %75 = vector.multi_reduction <add>, %74, %cst_37 [1] : vector<32x40xf32> to vector<32xf32>
    %76 = vector.shape_cast %75 : vector<32xf32> to vector<32x1xf32>
    %cst_38 = arith.constant 4.000000e+01 : f32
    %77 = vector.broadcast %cst_38 : f32 to vector<32x1xf32>
    %78 = arith.divf %76, %77 : vector<32x1xf32>
    %cst_39 = arith.constant 9.99999974E-6 : f32
    %79 = vector.broadcast %cst_39 : f32 to vector<32x1xf32>
    %80 = arith.addf %78, %79 : vector<32x1xf32>
    %81 = math.rsqrt %80 : vector<32x1xf32>
    %82 = vector.broadcast %81 : vector<32x1xf32> to vector<32x40xf32>
    %83 = arith.mulf %73, %82 : vector<32x40xf32>
    %c0_40 = arith.constant 0 : index
    %c0_41 = arith.constant 0 : index
    %84 = vector.load %arg14[%c0_40, %c0_41] : memref<1x40xf32, #tpu.memory_space<vmem>>, vector<1x40xf32>
    %85 = vector.broadcast %84 : vector<1x40xf32> to vector<32x40xf32>
    %86 = arith.mulf %83, %85 : vector<32x40xf32>
    %c0_42 = arith.constant 0 : index
    %c0_43 = arith.constant 0 : index
    %87 = vector.load %arg15[%c0_42, %c0_43] : memref<1x40xf32, #tpu.memory_space<vmem>>, vector<1x40xf32>
    %88 = vector.broadcast %87 : vector<1x40xf32> to vector<32x40xf32>
    %89 = arith.addf %86, %88 : vector<32x40xf32>
    %90 = arith.truncf %89 : vector<32x40xf32> to vector<32x40xbf16>
    %c0_44 = arith.constant 0 : index
    %c0_45 = arith.constant 0 : index
    %91 = vector.load %arg16[%c0_44, %c0_45] : memref<40x2048xbf16, #tpu.memory_space<vmem>>, vector<40x2048xbf16>
    %cst_46 = arith.constant dense<0.000000e+00> : vector<32x2048xf32>
    %92 = tpu.matmul %90, %91, %cst_46 {dimension_numbers = #tpu.dot_dimension_numbers<[1], [0], [0], [1], [0, 0, 1, 1], [], []>} : vector<32x40xbf16>, vector<40x2048xbf16>, vector<32x2048xf32> -> vector<32x2048xf32>
    %c0_47 = arith.constant 0 : index
    %c0_48 = arith.constant 0 : index
    %93 = vector.load %arg17[%c0_47, %c0_48] : memref<1x2048xf32, #tpu.memory_space<vmem>>, vector<1x2048xf32>
    %94 = vector.broadcast %93 : vector<1x2048xf32> to vector<32x2048xf32>
    %95 = arith.addf %92, %94 : vector<32x2048xf32>
    %cst_49 = arith.constant 0.000000e+00 : f32
    %96 = vector.broadcast %cst_49 : f32 to vector<32x2048xf32>
    %97 = arith.maximumf %95, %96 : vector<32x2048xf32>
    %98 = arith.truncf %97 : vector<32x2048xf32> to vector<32x2048xbf16>
    %c0_50 = arith.constant 0 : index
    %c0_51 = arith.constant 0 : index
    %99 = vector.load %arg18[%c0_50, %c0_51] : memref<2048x40xbf16, #tpu.memory_space<vmem>>, vector<2048x40xbf16>
    %cst_52 = arith.constant dense<0.000000e+00> : vector<32x40xf32>
    %100 = tpu.matmul %98, %99, %cst_52 {dimension_numbers = #tpu.dot_dimension_numbers<[1], [0], [0], [1], [0, 0, 1, 1], [], []>} : vector<32x2048xbf16>, vector<2048x40xbf16>, vector<32x40xf32> -> vector<32x40xf32>
    %c0_53 = arith.constant 0 : index
    %c0_54 = arith.constant 0 : index
    %101 = vector.load %arg19[%c0_53, %c0_54] : memref<1x40xf32, #tpu.memory_space<vmem>>, vector<1x40xf32>
    %102 = vector.broadcast %101 : vector<1x40xf32> to vector<32x40xf32>
    %103 = arith.addf %100, %102 : vector<32x40xf32>
    %104 = arith.addf %89, %103 : vector<32x40xf32>
    %cst_55 = arith.constant dense<0.000000e+00> : vector<32xf32>
    %105 = vector.multi_reduction <add>, %104, %cst_55 [1] : vector<32x40xf32> to vector<32xf32>
    %106 = vector.shape_cast %105 : vector<32xf32> to vector<32x1xf32>
    %cst_56 = arith.constant 4.000000e+01 : f32
    %107 = vector.broadcast %cst_56 : f32 to vector<32x1xf32>
    %108 = arith.divf %106, %107 : vector<32x1xf32>
    %109 = vector.broadcast %108 : vector<32x1xf32> to vector<32x40xf32>
    %110 = arith.subf %104, %109 : vector<32x40xf32>
    %111 = arith.mulf %110, %110 : vector<32x40xf32>
    %cst_57 = arith.constant dense<0.000000e+00> : vector<32xf32>
    %112 = vector.multi_reduction <add>, %111, %cst_57 [1] : vector<32x40xf32> to vector<32xf32>
    %113 = vector.shape_cast %112 : vector<32xf32> to vector<32x1xf32>
    %cst_58 = arith.constant 4.000000e+01 : f32
    %114 = vector.broadcast %cst_58 : f32 to vector<32x1xf32>
    %115 = arith.divf %113, %114 : vector<32x1xf32>
    %cst_59 = arith.constant 9.99999974E-6 : f32
    %116 = vector.broadcast %cst_59 : f32 to vector<32x1xf32>
    %117 = arith.addf %115, %116 : vector<32x1xf32>
    %118 = math.rsqrt %117 : vector<32x1xf32>
    %119 = vector.broadcast %118 : vector<32x1xf32> to vector<32x40xf32>
    %120 = arith.mulf %110, %119 : vector<32x40xf32>
    %c0_60 = arith.constant 0 : index
    %c0_61 = arith.constant 0 : index
    %121 = vector.load %arg20[%c0_60, %c0_61] : memref<1x40xf32, #tpu.memory_space<vmem>>, vector<1x40xf32>
    %122 = vector.broadcast %121 : vector<1x40xf32> to vector<32x40xf32>
    %123 = arith.mulf %120, %122 : vector<32x40xf32>
    %c0_62 = arith.constant 0 : index
    %c0_63 = arith.constant 0 : index
    %124 = vector.load %arg21[%c0_62, %c0_63] : memref<1x40xf32, #tpu.memory_space<vmem>>, vector<1x40xf32>
    %125 = vector.broadcast %124 : vector<1x40xf32> to vector<32x40xf32>
    %126 = arith.addf %123, %125 : vector<32x40xf32>
    %c0_64 = arith.constant 0 : index
    %c0_65 = arith.constant 0 : index
    %127 = vector.load %arg22[%c0_64, %c0_65] : memref<1x40xf32, #tpu.memory_space<vmem>>, vector<1x40xf32>
    %128 = vector.broadcast %127 : vector<1x40xf32> to vector<32x40xf32>
    %129 = arith.mulf %126, %128 : vector<32x40xf32>
    %cst_66 = arith.constant dense<0.000000e+00> : vector<32xf32>
    %130 = vector.multi_reduction <add>, %129, %cst_66 [1] : vector<32x40xf32> to vector<32xf32>
    %131 = vector.shape_cast %130 : vector<32xf32> to vector<1x32xf32>
    %c0_67 = arith.constant 0 : index
    %c0_68 = arith.constant 0 : index
    %132 = vector.load %arg23[%c0_67, %c0_68] : memref<1x1xf32, #tpu.memory_space<vmem>>, vector<1x1xf32>
    %133 = vector.broadcast %132 : vector<1x1xf32> to vector<1x32xf32>
    %134 = arith.addf %131, %133 : vector<1x32xf32>
    %135 = vector.shape_cast %134 : vector<1x32xf32> to vector<1x1x32xf32>
    %c0_69 = arith.constant 0 : index
    %c0_70 = arith.constant 0 : index
    %c0_71 = arith.constant 0 : index
    %136 = vector.load %arg24[%c0_69, %c0_70, %c0_71] : memref<1x1x32xf32, #tpu.memory_space<vmem>>, vector<1x1x32xf32>
    tpu.vector_store %arg24[%c0_69, %c0_70, %c0_71], %135 {strides = array<i32>} : memref<1x1x32xf32, #tpu.memory_space<vmem>>, vector<1x1x32xf32>,
    return
  }
  func.func @transform_0(%arg0: i32) -> (i32, i32, i32) {
    %c0_i32 = arith.constant 0 : i32
    %c0_i32_0 = arith.constant 0 : i32
    %c0_i32_1 = arith.constant 0 : i32
    return %arg0, %c0_i32, %c0_i32_0 : i32, i32, i32
  }
  func.func @transform_1(%arg0: i32) -> (i32, i32) {
    %c0_i32 = arith.constant 0 : i32
    %c0_i32_0 = arith.constant 0 : i32
    %c0_i32_1 = arith.constant 0 : i32
    return %c0_i32, %c0_i32_0 : i32, i32
  }
  func.func @transform_2(%arg0: i32) -> (i32, i32) {
    %c0_i32 = arith.constant 0 : i32
    %c0_i32_0 = arith.constant 0 : i32
    %c0_i32_1 = arith.constant 0 : i32
    return %c0_i32, %c0_i32_0 : i32, i32
  }
  func.func @transform_3(%arg0: i32) -> (i32, i32) {
    %c0_i32 = arith.constant 0 : i32
    %c0_i32_0 = arith.constant 0 : i32
    %c0_i32_1 = arith.constant 0 : i32
    return %c0_i32, %c0_i32_0 : i32, i32
  }
  func.func @transform_4(%arg0: i32) -> (i32, i32) {
    %c0_i32 = arith.constant 0 : i32
    %c0_i32_0 = arith.constant 0 : i32
    %c0_i32_1 = arith.constant 0 : i32
    return %c0_i32, %c0_i32_0 : i32, i32
  }
  func.func @transform_5(%arg0: i32) -> (i32, i32) {
    %c0_i32 = arith.constant 0 : i32
    %c0_i32_0 = arith.constant 0 : i32
    %c0_i32_1 = arith.constant 0 : i32
    return %c0_i32, %c0_i32_0 : i32, i32
  }
  func.func @transform_6(%arg0: i32) -> (i32, i32) {
    %c0_i32 = arith.constant 0 : i32
    %c0_i32_0 = arith.constant 0 : i32
    %c0_i32_1 = arith.constant 0 : i32
    return %c0_i32, %c0_i32_0 : i32, i32
  }
  func.func @transform_7(%arg0: i32) -> (i32, i32) {
    %c0_i32 = arith.constant 0 : i32
    %c0_i32_0 = arith.constant 0 : i32
    %c0_i32_1 = arith.constant 0 : i32
    return %c0_i32, %c0_i32_0 : i32, i32
  }
  func.func @transform_8(%arg0: i32) -> (i32, i32) {
    %c0_i32 = arith.constant 0 : i32
    %c0_i32_0 = arith.constant 0 : i32
    %c0_i32_1 = arith.constant 0 : i32
    return %c0_i32, %c0_i32_0 : i32, i32
  }
  func.func @transform_9(%arg0: i32) -> (i32, i32) {
    %c0_i32 = arith.constant 0 : i32
    %c0_i32_0 = arith.constant 0 : i32
    %c0_i32_1 = arith.constant 0 : i32
    return %c0_i32, %c0_i32_0 : i32, i32
  }
  func.func @transform_10(%arg0: i32) -> (i32, i32) {
    %c0_i32 = arith.constant 0 : i32
    %c0_i32_0 = arith.constant 0 : i32
    %c0_i32_1 = arith.constant 0 : i32
    return %c0_i32, %c0_i32_0 : i32, i32
  }
  func.func @transform_11(%arg0: i32) -> (i32, i32) {
    %c0_i32 = arith.constant 0 : i32
    %c0_i32_0 = arith.constant 0 : i32
    %c0_i32_1 = arith.constant 0 : i32
    return %c0_i32, %c0_i32_0 : i32, i32
  }
  func.func @transform_12(%arg0: i32) -> (i32, i32) {
    %c0_i32 = arith.constant 0 : i32
    %c0_i32_0 = arith.constant 0 : i32
    %c0_i32_1 = arith.constant 0 : i32
    return %c0_i32, %c0_i32_0 : i32, i32
  }
  func.func @transform_13(%arg0: i32) -> (i32, i32) {
    %c0_i32 = arith.constant 0 : i32
    %c0_i32_0 = arith.constant 0 : i32
    %c0_i32_1 = arith.constant 0 : i32
    return %c0_i32, %c0_i32_0 : i32, i32
  }
  func.func @transform_14(%arg0: i32) -> (i32, i32) {
    %c0_i32 = arith.constant 0 : i32
    %c0_i32_0 = arith.constant 0 : i32
    %c0_i32_1 = arith.constant 0 : i32
    return %c0_i32, %c0_i32_0 : i32, i32
  }
  func.func @transform_15(%arg0: i32) -> (i32, i32) {
    %c0_i32 = arith.constant 0 : i32
    %c0_i32_0 = arith.constant 0 : i32
    %c0_i32_1 = arith.constant 0 : i32
    return %c0_i32, %c0_i32_0 : i32, i32
  }
  func.func @transform_16(%arg0: i32) -> (i32, i32) {
    %c0_i32 = arith.constant 0 : i32
    %c0_i32_0 = arith.constant 0 : i32
    %c0_i32_1 = arith.constant 0 : i32
    return %c0_i32, %c0_i32_0 : i32, i32
  }
  func.func @transform_17(%arg0: i32) -> (i32, i32) {
    %c0_i32 = arith.constant 0 : i32
    %c0_i32_0 = arith.constant 0 : i32
    %c0_i32_1 = arith.constant 0 : i32
    return %c0_i32, %c0_i32_0 : i32, i32
  }
  func.func @transform_18(%arg0: i32) -> (i32, i32) {
    %c0_i32 = arith.constant 0 : i32
    %c0_i32_0 = arith.constant 0 : i32
    %c0_i32_1 = arith.constant 0 : i32
    return %c0_i32, %c0_i32_0 : i32, i32
  }
  func.func @transform_19(%arg0: i32) -> (i32, i32) {
    %c0_i32 = arith.constant 0 : i32
    %c0_i32_0 = arith.constant 0 : i32
    %c0_i32_1 = arith.constant 0 : i32
    return %c0_i32, %c0_i32_0 : i32, i32
  }
  func.func @transform_20(%arg0: i32) -> (i32, i32) {
    %c0_i32 = arith.constant 0 : i32
    %c0_i32_0 = arith.constant 0 : i32
    %c0_i32_1 = arith.constant 0 : i32
    return %c0_i32, %c0_i32_0 : i32, i32
  }
  func.func @transform_21(%arg0: i32) -> (i32, i32) {
    %c0_i32 = arith.constant 0 : i32
    %c0_i32_0 = arith.constant 0 : i32
    %c0_i32_1 = arith.constant 0 : i32
    return %c0_i32, %c0_i32_0 : i32, i32
  }
  func.func @transform_22(%arg0: i32) -> (i32, i32) {
    %c0_i32 = arith.constant 0 : i32
    %c0_i32_0 = arith.constant 0 : i32
    %c0_i32_1 = arith.constant 0 : i32
    return %c0_i32, %c0_i32_0 : i32, i32
  }
  func.func @transform_23(%arg0: i32) -> (i32, i32, i32) {
    %c0_i32 = arith.constant 0 : i32
    %c0_i32_0 = arith.constant 0 : i32
    %c0_i32_1 = arith.constant 0 : i32
    return %arg0, %c0_i32, %c0_i32_0 : i32, i32, i32
  }
}

</mosaic_0001>

<bundles_post_ra>
// kernel: transam_forward.1
= control target key start
LH: loop header
LB: loop body
LE: loop exit
PB: predicated region body
PF: predicated region fallthrough
CT: control target
= control target key end

     0   :  { %vm119_vm0 = vcmask 1043456   ;;  %vm112_vm1 = vcmask 326656   ;;  %v544_v27 = vlaneseq  ;;  %vm631_vm2 = vcmask 80896   ;;  %s6901_s3 = inlined_call_operand.vmem [shape: bf16[40,40], index: 3, kind: input, shape index: {}]   ;;  %s6902_s5 = inlined_call_operand.vmem [shape: bf16[40,40], index: 5, kind: input, shape index: {}]   ;;  %s6903_s4 = inlined_call_operand.vmem [shape: f32[1,40], index: 4, kind: input, shape index: {}]   ;;  %s6904_s0 = inlined_call_operand.vmem [shape: f32[4,8,40], index: 0, kind: input, shape index: {}]   ;;  %s6905_s1 = inlined_call_operand.vmem [shape: f32[8,40], index: 1, kind: input, shape index: {}]   ;;  %s6906_s6 = inlined_call_operand.vmem [shape: f32[1,40], index: 6, kind: input, shape index: {}]   ;;  %s6907_s9 = inlined_call_operand.vmem [shape: bf16[40,10], index: 9, kind: input, shape index: {}]   ;;  %s6908_s2 = inlined_call_operand.vmem [shape: f32[8,8], index: 2, kind: input, shape index: {}]   ;;  %s6909_s7 = inlined_call_operand.vmem [shape: bf16[40,40], index: 7, kind: input, shape index: {}]   ;;  %s6910_s10 = inlined_call_operand.vmem [shape: bf16[10,40], index: 10, kind: input, shape index: {}]   ;;  %s6911_s8 = inlined_call_operand.vmem [shape: f32[1,40], index: 8, kind: input, shape index: {}]   ;;  %s6912_s11 = inlined_call_operand.vmem [shape: bf16[40,40], index: 11, kind: input, shape index: {}]   ;;  %s6913_s12 = inlined_call_operand.vmem [shape: f32[1,40], index: 12, kind: input, shape index: {}]   ;;  %s6914_s13 = inlined_call_operand.vmem [shape: f32[1,40], index: 13, kind: input, shape index: {}]   ;;  %s6915_s14 = inlined_call_operand.vmem [shape: f32[1,40], index: 14, kind: input, shape index: {}]   ;;  %s6916_s15 = inlined_call_operand.vmem [shape: bf16[40,2048], index: 15, kind: input, shape index: {}]   ;;  %s6917_s17 = inlined_call_operand.vmem [shape: bf16[2048,40], index: 17, kind: input, shape index: {}]   ;;  %s6918_s16 = inlined_call_operand.vmem [shape: f32[1,2048], index: 16, kind: input, shape index: {}]   ;;  %s6919_s18 = inlined_call_operand.vmem [shape: f32[1,40], index: 18, kind: input, shape index: {}]   ;;  %s6920_s19 = inlined_call_operand.vmem [shape: f32[1,40], index: 19, kind: input, shape index: {}]   ;;  %s6921_s20 = inlined_call_operand.vmem [shape: f32[1,40], index: 20, kind: input, shape index: {}]   ;;  %s6922_s21 = inlined_call_operand.vmem [shape: f32[1,40], index: 21, kind: input, shape index: {}]   ;;  %s6923_s22 = inlined_call_operand.<no memory space> [shape: f32[1,1], index: 22, kind: input, shape index: {}]   ;;  %s6924_s23 = inlined_call_operand.vmem [shape: f32[1,1,32], index: 23, kind: output, shape index: {}]  }
   0x1   :  { %6929 = sst [smem:[#allocation3_spill]] %s6901_s3  ;;  %vm1311_vm3 = vcmask 1044480   ;;  %vm1765_vm4 = vcmask 1041409   ;;  %vm1767_vm5 = vcmask 1042434   ;;  %vm1769_vm6 = vcmask 1043459  }
   0x2   :  { %6930 = sst [smem:[#allocation4_spill]] %s6902_s5  ;;  %v545_v29 = vshrl.u32 %v544_v27, 7  ;;  %vm1771_vm7 = vcmask 1044484   ;;  %vm1773_vm8 = vcmask 1045509   ;;  %vm1775_vm9 = vcmask 1046534  }
   0x3   :  { %6931 = sst [smem:[#allocation5_spill]] %s6903_s4  ;;  %vm1777_vm10 = vcmask 1047559  }
   0x4   :  { %6932 = sst [smem:[#allocation6_spill]] %s6904_s0  ;;  %5118 = vset.pattern.permute.xlu0 %v545_v29  ;;  %5119 = vset.pattern.permute.xlu1 %v545_v29 }
   0x5   :  { %6933 = sst [smem:[#allocation7_spill]] %s6905_s1  ;;  %5120 = vset.pattern.permute.xlu2 %v545_v29 }
   0x6   :  { %6934 = sst [smem:[#allocation8_spill]] %s6906_s6 }
   0x7   :  { %6935 = sst [smem:[#allocation9_spill]] %s6907_s9 }
   0x8   :  { %6936 = sst [smem:[#allocation10_spill]] %s6908_s2 }
   0x9   :  { %6937 = sst [smem:[#allocation11_spill]] %s6919_s18 }
   0xa   :  { %s6938_s24 = sld [smem:[#allocation3_spill]] }
   0xb   :  { %s6939_s18 = sld [smem:[#allocation4_spill]] }
   0xc   :  { %s6940_s28 = sld [smem:[#allocation6_spill]] }
   0xd   :  { %s6941_s30 = sld [smem:[#allocation7_spill]] }
   0xe   :  { %s6942_s29 = sld [smem:[#allocation9_spill]] }
   0xf   :  { %s6943_s6 = sld [smem:[#allocation10_spill]] }
  0x10   :  { %v92_v0 = vld [vmem:[%s6938_s24 + $0x10] sm:$0xf]  ;;  %v4946_v8 = vld [vmem:[%s6938_s24 + $0x8] sm:$0xff]  ;;  %v4945_v15 = vld [vmem:[%s6938_s24] sm:$0xff]  ;;  %s6944_s4 = sld [smem:[#allocation5_spill]] }
  0x11   :  { %v146_v1 = vld [vmem:[%s6939_s18 + $0x10] sm:$0xf]  ;;  %v106_v2 = vunpack.c.l.b16 %v92_v0  ;;  %v4948_v9 = vld [vmem:[%s6939_s18 + $0x8] sm:$0xff]  ;;  %v4947_v16 = vld [vmem:[%s6939_s18] sm:$0xff]  ;;  %s6945_s27 = sld [smem:[#allocation8_spill]] }
  0x12   :  { %v160_v3 = vunpack.c.l.b16 %v146_v1  ;;  %v77_v10 = vld [vmem:[%s6940_s28] sm:$0xff]  ;;  %v78_v11 = vld [vmem:[%s6940_s28 + $0x8] sm:$0xff]  ;;  %v79_v18 = vld [vmem:[%s6940_s28 + $0x10] sm:$0xff] }
  0x13   :  { %v109_v4 = vpack.c.b16 %v106_v2, %v106_v2  ;;  %v81_v12 = vld [vmem:[%s6941_s30] sm:$0xff]  ;;  %v80_v19 = vld [vmem:[%s6940_s28 + $0x18] sm:$0xff] }
  0x14   :  { %v163_v5 = vpack.c.b16 %v160_v3, %v160_v3  ;;  %v5425_v13 = vadd.f32 %v81_v12, %v77_v10  ;;  %v5427_v14 = vadd.f32 %v81_v12, %v78_v11  ;;  %v5449_v20 = vadd.f32 %v81_v12, %v79_v18  ;;  %v386_v23 = vld [vmem:[%s6942_s29 + $0x10] sm:$0xf]  ;;  %v4952_v28 = vld [vmem:[%s6942_s29 + $0x8] sm:$0xff]  ;;  %v4951_v30 = vld [vmem:[%s6942_s29] sm:$0xff] }
  0x15   :  { %v121_v6 = vsel %vm119_vm0, %v109_v4, 0  ;;  %v5451_v21 = vadd.f32 %v81_v12, %v80_v19  ;;  %v396_v24 = vunpack.c.l.b16 %v386_v23  ;;  %v542_v31 = vld [vmem:[%s6943_s6] sm:$0xff] }
  0x16   :  { %v167_v7 = vsel %vm119_vm0, %v163_v5, 0  ;;  %128 = vmatpush.bf16.msra.mxu0 %v121_v6  ;;  %v5437_v17 = vpack.c.bf16 %v5427_v14, %v5425_v13  ;;  %v543_v32 = vperm.slane %v542_v31, 0  ;;  %v550_v33 = vperm.slane %v542_v31, 1  ;;  %v5478_v34 = vld [vmem:[%s6944_s4] ss:$0 sm:$0xff] }
  0x17   :  { %174 = vmatpush.bf16.msra.mxu1 %v167_v7  ;;  %v5455_v22 = vpack.c.bf16 %v5451_v21, %v5449_v20  ;;  %v399_v25 = vpack.c.b16 %v396_v24, %v396_v24  ;;  %v557_v35 = vperm.slane %v542_v31, 2  ;;  %v585_v36 = vperm.slane %v542_v31, 6  ;;  %v5484_v39 = vld [vmem:[%s6945_s27] ss:$0 sm:$0xff] }
  0x18   :  { %548 = vperm.xlu0 %5118, %v543_v32   ;;  %v564_v41 = vperm.slane %v542_v31, 3  ;;  %v592_v50 = vperm.slane %v542_v31, 7  ;;  %v571_v1 = vperm.slane %v542_v31, 4  ;;  %v578_v6 = vperm.slane %v542_v31, 5 }
  0x19   :  { %v451_v26 = vsel %vm119_vm0, %v399_v25, 0  ;;  %562 = vperm.xlu1 %5119, %v557_v35  }
  0x1a   :  { %129 = vmatpush.bf16.msra.mxu0 %v4946_v8  ;;  %458 = vmatpush.bf16.msra.mxu3 %v451_v26 }
  0x1b   :  { %175 = vmatpush.bf16.msra.mxu1 %v4948_v9  ;;  %576 = vperm.xlu2 %5120, %v571_v1  }
  0x1e   :  { %130 = vmatpush.bf16.msra.mxu0 %v4945_v15  ;;  %459 = vmatpush.bf16.msra.mxu3 %v4952_v28 }
  0x1f   :  { %176 = vmatpush.bf16.msra.mxu1 %v4947_v16 }
  0x20   :  { %555 = vperm.xlu0 %5118, %v550_v33  }
  0x21   :  { %4197 = vmatmul.msk.bf16.vlgmr.msra.gmra.mxu0 %vm112_vm1, %v5437_v17  ;;  %569 = vperm.xlu1 %5119, %v564_v41  }
  0x22   :  { %4207 = vmatmul.msk.bf16.vlgmr.msra.gmra.mxu1 %vm112_vm1, %v5437_v17  ;;  %460 = vmatpush.bf16.msra.mxu3 %v4951_v30 }
  0x23   :  { %583 = vperm.xlu2 %5120, %v578_v6  }
  0x28   :  { %590 = vperm.xlu0 %5118, %v585_v36  }
  0x29   :  { %597 = vperm.xlu1 %5119, %v592_v50  }
  0x31   :  { %4198 = vmatmul.msk.bf16.gmra.mxu0 %vm112_vm1, %v5455_v22 }
  0x32   :  { %4208 = vmatmul.msk.bf16.gmra.mxu1 %vm112_vm1, %v5455_v22 }
  0x9e   :  { %v132_v37 = vpop.f32.mrf.mxu0 }
  0x9f   :  { %v133_v38 = vadd.f32 %v5478_v34, %v132_v37  ;;  %v178_v42 = vpop.f32.mrf.mxu1 }
  0xa0   :  { %v179_v43 = vadd.f32 %v5484_v39, %v178_v42 }
  0xa1   :  { %v234_v40 = vmul.f32 0.5, %v133_v38 }
  0xa3   :  { %v242_v44 = vrot.slane %v234_v40, 1  ;;  %v270_v45 = vperm.slane %v234_v40, 0  ;;  %v243_v51 = vrot.slane %v234_v40, 2  ;;  %v244_v52 = vrot.slane %v234_v40, 3 }
  0xa4   :  { %v245_v58 = vrot.slane %v234_v40, 4  ;;  %v246_v59 = vrot.slane %v234_v40, 5  ;;  %v247_v2 = vrot.slane %v234_v40, 6  ;;  %v248_v3 = vrot.slane %v234_v40, 7 }
  0xa5   :  { %v271_v46 = vperm.slane %v242_v44, 0  ;;  %v334_v47 = vmul.f32 %v270_v45, %v179_v43  ;;  %v272_v53 = vperm.slane %v243_v51, 0  ;;  %v273_v54 = vperm.slane %v244_v52, 0 }
  0xa6   :  { %v274_v60 = vperm.slane %v245_v58, 0  ;;  %v275_v61 = vperm.slane %v246_v59, 0  ;;  %v276_v4 = vperm.slane %v247_v2, 0  ;;  %v277_v5 = vperm.slane %v248_v3, 0  ;;  %v134_v7 = vpop.f32.mrf.mxu0 }
  0xa7   :  { %v335_v48 = vmul.f32 %v271_v46, %v179_v43  ;;  %v336_v55 = vmul.f32 %v272_v53, %v179_v43  ;;  %v337_v56 = vmul.f32 %v273_v54, %v179_v43  ;;  %v135_v8 = vadd.f32 %v5478_v34, %v134_v7  ;;  %v180_v16 = vpop.f32.mrf.mxu1  ;;  %v192_v7 = vld [vmem:[%s6909_s7 + $0x10] sm:$0xf] }
  0xa8   :  { %v338_v62 = vmul.f32 %v274_v60, %v179_v43  ;;  %v339_v63 = vmul.f32 %v275_v61, %v179_v43  ;;  %v340_v9 = vmul.f32 %v276_v4, %v179_v43  ;;  %v341_v10 = vmul.f32 %v277_v5, %v179_v43 }
  0xa9   :  { %v366_v49 = vpack.c.bf16 %v335_v48, %v334_v47  ;;  %v367_v57 = vpack.c.bf16 %v337_v56, %v336_v55  ;;  %v235_v11 = vmul.f32 0.5, %v135_v8  ;;  %v181_v19 = vadd.f32 %v5484_v39, %v180_v16 }
  0xaa   :  { %v368_v0 = vpack.c.bf16 %v339_v63, %v338_v62  ;;  %v369_v12 = vpack.c.bf16 %v341_v10, %v340_v9  ;;  %v5508_v62 = vpop.permute.xlu0 %548  ;;  %v206_v8 = vunpack.c.l.b16 %v192_v7 }
  0xab   :  { %4227 = vmatmul.msk.bf16.vlgmr.msra.gmra.mxu3 %vm112_vm1, %v366_v49  ;;  %v249_v15 = vrot.slane %v235_v11, 1  ;;  %v278_v23 = vperm.slane %v235_v11, 0  ;;  %v250_v28 = vrot.slane %v235_v11, 2  ;;  %v251_v29 = vrot.slane %v235_v11, 3 }
  0xac   :  { %v252_v36 = vrot.slane %v235_v11, 4  ;;  %v253_v37 = vrot.slane %v235_v11, 5  ;;  %v254_v44 = vrot.slane %v235_v11, 6  ;;  %v255_v45 = vrot.slane %v235_v11, 7 }
  0xad   :  { %v279_v18 = vperm.slane %v249_v15, 0  ;;  %v342_v25 = vmul.f32 %v278_v23, %v181_v19  ;;  %v280_v30 = vperm.slane %v250_v28, 0  ;;  %v281_v31 = vperm.slane %v251_v29, 0 }
  0xae   :  { %v282_v38 = vperm.slane %v252_v36, 0  ;;  %v283_v40 = vperm.slane %v253_v37, 0  ;;  %v284_v46 = vperm.slane %v254_v44, 0  ;;  %v285_v47 = vperm.slane %v255_v45, 0  ;;  %v137_v48 = vpop.f32.mrf.mxu0 }
  0xaf   :  { %v343_v24 = vmul.f32 %v279_v18, %v181_v19  ;;  %v344_v32 = vmul.f32 %v280_v30, %v181_v19  ;;  %v345_v33 = vmul.f32 %v281_v31, %v181_v19  ;;  %v138_v49 = vadd.f32 %v5478_v34, %v137_v48  ;;  %v183_v55 = vpop.f32.mrf.mxu1  ;;  %v4950_v30 = vld [vmem:[%s6909_s7 + $0x8] sm:$0xff]  ;;  %v5528_v31 = vpop.permute.xlu1 %562 }
  0xb0   :  { %v346_v41 = vmul.f32 %v282_v38, %v181_v19  ;;  %v347_v42 = vmul.f32 %v283_v40, %v181_v19  ;;  %v348_v50 = vmul.f32 %v284_v46, %v181_v19  ;;  %v349_v51 = vmul.f32 %v285_v47, %v181_v19 }
  0xb1   :  { %v370_v26 = vpack.c.bf16 %v343_v24, %v342_v25  ;;  %v371_v35 = vpack.c.bf16 %v345_v33, %v344_v32  ;;  %v5497_v52 = vmul.f32 0.5, %v138_v49  ;;  %v5502_v56 = vadd.f32 %v5484_v39, %v183_v55 }
  0xb2   :  { %v372_v43 = vpack.c.bf16 %v347_v42, %v346_v41  ;;  %v373_v53 = vpack.c.bf16 %v349_v51, %v348_v50  ;;  %v5519_v15 = vpop.permute.xlu0 %555  ;;  %v4949_v41 = vld [vmem:[%s6909_s7] sm:$0xff] }
  0xb3   :  { %v256_v54 = vrot.slane %v5497_v52, 1  ;;  %v257_v63 = vrot.slane %v5497_v52, 2  ;;  %v260_v36 = vrot.slane %v5497_v52, 5 }
  0xb5   :  { %v287_v58 = vperm.slane %v256_v54, 0  ;;  %v288_v4 = vperm.slane %v257_v63, 0  ;;  %v291_v47 = vperm.slane %v260_v36, 0  ;;  %v4953_v54 = vld [vmem:[%s6910_s10] sm:$0x10] }
  0xb7   :  { %v351_v60 = vmul.f32 %v287_v58, %v5502_v56  ;;  %v352_v10 = vmul.f32 %v288_v4, %v5502_v56  ;;  %v355_v58 = vmul.f32 %v291_v47, %v5502_v56 }
  0xbb   :  { %4228 = vmatmul.msk.bf16.gmra.mxu3 %vm112_vm1, %v367_v57  ;;  %v286_v57 = vperm.slane %v5497_v52, 0 }
  0xbd   :  { %v350_v59 = vmul.f32 %v286_v57, %v5502_v56 }
  0xbf   :  { %v374_v61 = vpack.c.bf16 %v351_v60, %v350_v59  ;;  %v5547_v59 = vpop.permute.xlu1 %569 }
  0xcb   :  { %4229 = vmatmul.msk.bf16.gmra.mxu3 %vm112_vm1, %v368_v0  ;;  %v258_v0 = vrot.slane %v5497_v52, 3 }
  0xcd   :  { %v289_v5 = vperm.slane %v258_v0, 0 }
  0xcf   :  { %v353_v11 = vmul.f32 %v289_v5, %v5502_v56 }
  0xdb   :  { %4230 = vmatmul.msk.bf16.gmra.mxu3 %vm112_vm1, %v369_v12  ;;  %v209_v12 = vpack.c.b16 %v206_v8, %v206_v8 }
  0xdd   :  { %v213_v23 = vsel %vm119_vm0, %v209_v12, 0  ;;  %v5556_v12 = vpop.permute.xlu2 %576 }
  0xde   :  { %220 = vmatpush.bf16.msra.mxu2 %v213_v23 }
  0xe2   :  { %221 = vmatpush.bf16.msra.mxu2 %v4950_v30 }
  0xe6   :  { %222 = vmatpush.bf16.msra.mxu2 %v4949_v41 }
  0xe9   :  { %4217 = vmatmul.msk.bf16.vlgmr.msra.gmra.mxu2 %vm112_vm1, %v5437_v17 }
  0xeb   :  { %4231 = vmatmul.msk.bf16.gmra.mxu3 %vm112_vm1, %v370_v26  ;;  %v375_v26 = vpack.c.bf16 %v353_v11, %v352_v10 }
  0xf9   :  { %4218 = vmatmul.msk.bf16.gmra.mxu2 %vm112_vm1, %v5455_v22 }
  0xfb   :  { %4232 = vmatmul.msk.bf16.gmra.mxu3 %vm112_vm1, %v371_v35  ;;  %v259_v35 = vrot.slane %v5497_v52, 4 }
  0xfd   :  { %v290_v46 = vperm.slane %v259_v35, 0  ;;  %v139_v35 = vpop.f32.mrf.mxu0 }
  0xff   :  { %v354_v57 = vmul.f32 %v290_v46, %v5502_v56 }
 0x10b   :  { %4233 = vmatmul.msk.bf16.gmra.mxu3 %vm112_vm1, %v372_v43 }
 0x11b   :  { %4234 = vmatmul.msk.bf16.gmra.mxu3 %vm112_vm1, %v373_v53  ;;  %v4245_v53 = vld [vmem:[%s6910_s10] sm:$0xf]  ;;  %s6946_s10 = sld [smem:[#allocation11_spill]] }
 0x11c   :  { %v4246_v55 = vor.u32 %v4953_v54, %v4245_v53  ;;  %v5574_v53 = vpop.permute.xlu2 %583 }
 0x11e   :  { %v1313_v0 = vsel %vm1311_vm3, %v4246_v55, 0 }
 0x11f   :  { %1322 = vmatpush.bf16.msrb.mxu0 %v1313_v0 }
 0x12b   :  { %4235 = vmatmul.msk.bf16.gmra.mxu3 %vm112_vm1, %v374_v61 }
 0x12e   :  { %v462_v1 = vpop.f32.mrf.mxu3 }
 0x12f   :  { %v599_v2 = vadd.f32 %v5508_v62, %v462_v1 }
 0x131   :  { %v632_v3 = vsel %vm631_vm2, %v599_v2, -inf }
 0x132   :  { %v633_v6 = vrot.slane %v632_v3, 4 }
 0x134   :  { %v634_v9 = vmax.f32 %v632_v3, %v633_v6  ;;  %v376_v6 = vpack.c.bf16 %v355_v58, %v354_v57 }
 0x136   :  { %v635_v16 = vrot.slane %v634_v9, 2  ;;  %v464_v18 = vpop.f32.mrf.mxu3 }
 0x137   :  { %v600_v19 = vadd.f32 %v5519_v15, %v464_v18  ;;  %v261_v18 = vrot.slane %v5497_v52, 6 }
 0x138   :  { %v636_v24 = vmax.f32 %v634_v9, %v635_v16 }
 0x139   :  { %v639_v25 = vsel %vm631_vm2, %v600_v19, -inf }
 0x13a   :  { %v637_v28 = vrot.slane %v636_v24, 1  ;;  %v640_v29 = vrot.slane %v639_v25, 4 }
 0x13b   :  { %4236 = vmatmul.msk.bf16.gmra.mxu3 %vm112_vm1, %v375_v26 }
 0x13c   :  { %v638_v32 = vmax.f32 %v636_v24, %v637_v28  ;;  %v641_v33 = vmax.f32 %v639_v25, %v640_v29 }
 0x13e   :  { %v856_v37 = vsub.f32 %v599_v2, %v638_v32  ;;  %v642_v38 = vrot.slane %v641_v33, 2  ;;  %v467_v40 = vpop.f32.mrf.mxu3 }
 0x13f   :  { %v601_v42 = vadd.f32 %v5528_v31, %v467_v40 }
 0x140   :  { %v888_v43 = vmul.f32 1.442695, %v856_v37  ;;  %v643_v44 = vmax.f32 %v641_v33, %v642_v38 }
 0x141   :  { %v646_v45 = vsel %vm631_vm2, %v601_v42, -inf }
 0x142   :  { %5133 = vpow2.f32 %v888_v43  ;;  %v644_v48 = vrot.slane %v643_v44, 1  ;;  %v647_v49 = vrot.slane %v646_v45, 4  ;;  %v140_v43 = vadd.f32 %v5478_v34, %v139_v35 }
 0x144   :  { %v645_v50 = vmax.f32 %v643_v44, %v644_v48  ;;  %v648_v51 = vmax.f32 %v646_v45, %v647_v49  ;;  %v5579_v22 = vmul.f32 0.5, %v140_v43 }
 0x146   :  { %v857_v60 = vsub.f32 %v600_v19, %v645_v50  ;;  %v649_v61 = vrot.slane %v648_v51, 2  ;;  %v469_v17 = vpop.f32.mrf.mxu3  ;;  %v262_v19 = vrot.slane %v5497_v52, 7  ;;  %v292_v52 = vperm.slane %v261_v18, 0 }
 0x147   :  { %v602_v63 = vadd.f32 %v5547_v59, %v469_v17  ;;  %v294_v35 = vperm.slane %v5579_v22, 0 }
 0x148   :  { %v5550_v1 = vpop.eup %5133  ;;  %v890_v2 = vmul.f32 1.442695, %v857_v60  ;;  %v650_v3 = vmax.f32 %v648_v51, %v649_v61  ;;  %v293_v38 = vperm.slane %v262_v19, 0  ;;  %v356_v48 = vmul.f32 %v292_v52, %v5502_v56 }
 0x149   :  { %v952_v4 = vsel %vm631_vm2, %v5550_v1, 0.0  ;;  %v653_v5 = vsel %vm631_vm2, %v602_v63, -inf }
 0x14a   :  { %v953_v7 = vrot.slane %v952_v4, 4  ;;  %5135 = vpow2.f32 %v890_v2  ;;  %v651_v8 = vrot.slane %v650_v3, 1  ;;  %v654_v9 = vrot.slane %v653_v5, 4 }
 0x14b   :  { %4237 = vmatmul.msk.bf16.gmra.mxu3 %vm112_vm1, %v376_v6  ;;  %v357_v49 = vmul.f32 %v293_v38, %v5502_v56 }
 0x14c   :  { %v954_v10 = vadd.f32 %v953_v7, %v952_v4  ;;  %v652_v11 = vmax.f32 %v650_v3, %v651_v8  ;;  %v655_v16 = vmax.f32 %v653_v5, %v654_v9  ;;  %v185_v9 = vpop.f32.mrf.mxu1 }
 0x14e   :  { %v955_v23 = vrot.slane %v954_v10, 2  ;;  %v858_v24 = vsub.f32 %v601_v42, %v652_v11  ;;  %v656_v25 = vrot.slane %v655_v16, 2  ;;  %v472_v26 = vpop.f32.mrf.mxu3  ;;  %v263_v11 = vrot.slane %v5579_v22, 1 }
 0x14f   :  { %v5561_v28 = vadd.f32 %v5556_v12, %v472_v26 }
 0x150   :  { %v5563_v29 = vpop.eup %5135  ;;  %v956_v30 = vadd.f32 %v955_v23, %v954_v10  ;;  %v892_v32 = vmul.f32 1.442695, %v858_v24  ;;  %v657_v33 = vmax.f32 %v655_v16, %v656_v25  ;;  %v5586_v16 = vpop.permute.xlu0 %590  ;;  %v295_v38 = vperm.slane %v263_v11, 0 }
 0x151   :  { %v959_v36 = vsel %vm631_vm2, %v5563_v29, 0.0  ;;  %v660_v37 = vsel %vm631_vm2, %v5561_v28, -inf }
 0x152   :  { %v960_v40 = vrot.slane %v959_v36, 4  ;;  %5137 = vpow2.f32 %v892_v32  ;;  %v658_v41 = vrot.slane %v657_v33, 1  ;;  %v661_v42 = vrot.slane %v660_v37, 4 }
 0x153   :  { %v957_v44 = vrot.slane %v956_v30, 1 }
 0x154   :  { %v961_v45 = vadd.f32 %v960_v40, %v959_v36  ;;  %v659_v46 = vmax.f32 %v657_v33, %v658_v41  ;;  %v662_v47 = vmax.f32 %v660_v37, %v661_v42 }
 0x155   :  { %v958_v34 = vadd.f32 %v957_v44, %v956_v30  ;;  %v5593_v30 = vadd.f32 %v5484_v39, %v185_v9 }
 0x156   :  { %v962_v50 = vrot.slane %v961_v45, 2  ;;  %v859_v51 = vsub.f32 %v602_v63, %v659_v46  ;;  %v474_v54 = vpop.f32.mrf.mxu3  ;;  %v663_v55 = vrot.slane %v662_v47, 2  ;;  %v377_v63 = vpack.c.bf16 %v357_v49, %v356_v48 }
 0x157   :  { %v604_v57 = vadd.f32 %v5574_v53, %v474_v54  ;;  %v358_v49 = vmul.f32 %v294_v35, %v5593_v30 }
 0x158   :  { %v5577_v58 = vpop.eup %5137  ;;  %v963_v60 = vadd.f32 %v962_v50, %v961_v45  ;;  %v894_v61 = vmul.f32 1.442695, %v859_v51  ;;  %v664_v0 = vmax.f32 %v662_v47, %v663_v55  ;;  %v359_v50 = vmul.f32 %v295_v38, %v5593_v30  ;;  %v5603_v51 = vpop.permute.xlu1 %597 }
 0x159   :  { %v966_v17 = vsel %vm631_vm2, %v5577_v58, 0.0  ;;  %v667_v56 = vsel %vm631_vm2, %v604_v57, -inf }
 0x15a   :  { %v964_v2 = vrot.slane %v963_v60, 1  ;;  %v967_v3 = vrot.slane %v966_v17, 4  ;;  %5139 = vpow2.f32 %v894_v61  ;;  %v668_v4 = vrot.slane %v667_v56, 4 }
 0x15b   :  { %v665_v5 = vrot.slane %v664_v0, 1  ;;  %4238 = vmatmul.msk.bf16.gmra.mxu3 %vm112_vm1, %v377_v63  ;;  %5141 = vrcp.f32 %v958_v34 }
 0x15c   :  { %v965_v6 = vadd.f32 %v964_v2, %v963_v60  ;;  %v968_v7 = vadd.f32 %v967_v3, %v966_v17  ;;  %v669_v8 = vmax.f32 %v667_v56, %v668_v4  ;;  %v378_v3 = vpack.c.bf16 %v359_v50, %v358_v49 }
 0x15d   :  { %v666_v10 = vmax.f32 %v664_v0, %v665_v5 }
 0x15e   :  { %v969_v18 = vrot.slane %v968_v7, 2  ;;  %v670_v19 = vrot.slane %v669_v8, 2  ;;  %v477_v23 = vpop.f32.mrf.mxu3  ;;  %5143 = vrcp.f32 %v965_v6 }
 0x15f   :  { %v860_v24 = vsub.f32 %v5561_v28, %v666_v10  ;;  %v605_v25 = vadd.f32 %v5586_v16, %v477_v23  ;;  %v264_v10 = vrot.slane %v5579_v22, 2 }
 0x160   :  { %v5590_v26 = vpop.eup %5139  ;;  %v970_v32 = vadd.f32 %v969_v18, %v968_v7  ;;  %v671_v33 = vmax.f32 %v669_v8, %v670_v19  ;;  %v265_v19 = vrot.slane %v5579_v22, 3 }
 0x161   :  { %v973_v36 = vsel %vm631_vm2, %v5590_v26, 0.0  ;;  %v896_v37 = vmul.f32 1.442695, %v860_v24  ;;  %v674_v52 = vsel %vm631_vm2, %v605_v25, -inf  ;;  %v5142_v40 = vpop.eup %5141  ;;  %v296_v38 = vperm.slane %v264_v10, 0 }
 0x162   :  { %v974_v28 = vrot.slane %v973_v36, 4  ;;  %v672_v41 = vrot.slane %v671_v33, 1  ;;  %v675_v42 = vrot.slane %v674_v52, 4  ;;  %v971_v46 = vrot.slane %v970_v32, 1 }
 0x163   :  { %5145 = vpow2.f32 %v896_v37  ;;  %v1208_v47 = vmul.f32 %v5142_v40, %v5550_v1 }
 0x164   :  { %v5144_v43 = vpop.eup %5143  ;;  %v975_v44 = vadd.f32 %v974_v28, %v973_v36  ;;  %v673_v39 = vmax.f32 %v671_v33, %v672_v41  ;;  %v676_v45 = vmax.f32 %v674_v52, %v675_v42  ;;  %v972_v2 = vadd.f32 %v971_v46, %v970_v32 }
 0x165   :  { %v1209_v48 = vmul.f32 %v5144_v43, %v5563_v29  ;;  %v297_v42 = vperm.slane %v265_v19, 0 }
 0x166   :  { %v976_v54 = vrot.slane %v975_v44, 2  ;;  %v861_v55 = vsub.f32 %v604_v57, %v673_v39  ;;  %v677_v34 = vrot.slane %v676_v45, 2  ;;  %v479_v60 = vpop.f32.mrf.mxu3 }
 0x167   :  { %v606_v61 = vadd.f32 %v5603_v51, %v479_v60  ;;  %v1240_v17 = vpack.c.bf16 %v1209_v48, %v1208_v47 }
 0x168   :  { %v977_v0 = vadd.f32 %v976_v54, %v975_v44  ;;  %v898_v56 = vmul.f32 1.442695, %v861_v55  ;;  %v678_v63 = vmax.f32 %v676_v45, %v677_v34  ;;  %v360_v54 = vmul.f32 %v296_v38, %v5593_v30 }
 0x169   :  { %v5606_v1 = vpop.eup %5145  ;;  %v681_v29 = vsel %vm631_vm2, %v606_v61, -inf  ;;  %4247 = vmatmul.msk.bf16.vlgmr.msrb.gmra.mxu0 %vm631_vm2, %v1240_v17  ;;  %v361_v55 = vmul.f32 %v297_v42, %v5593_v30 }
 0x16a   :  { %v980_v4 = vsel %vm631_vm2, %v5606_v1, 0.0  ;;  %5147 = vpow2.f32 %v898_v56  ;;  %v679_v57 = vrot.slane %v678_v63, 1  ;;  %v682_v5 = vrot.slane %v681_v29, 4 }
 0x16b   :  { %v981_v6 = vrot.slane %v980_v4, 4  ;;  %4239 = vmatmul.msk.bf16.gmra.mxu3 %vm112_vm1, %v378_v3  ;;  %v978_v7 = vrot.slane %v977_v0, 1  ;;  %5149 = vrcp.f32 %v972_v2 }
 0x16c   :  { %v680_v8 = vmax.f32 %v678_v63, %v679_v57  ;;  %v683_v9 = vmax.f32 %v681_v29, %v682_v5 }
 0x16d   :  { %v982_v11 = vadd.f32 %v981_v6, %v980_v4  ;;  %v979_v18 = vadd.f32 %v978_v7, %v977_v0  ;;  %v379_v7 = vpack.c.bf16 %v361_v55, %v360_v54 }
 0x16e   :  { %v862_v23 = vsub.f32 %v605_v25, %v680_v8  ;;  %v684_v24 = vrot.slane %v683_v9, 2  ;;  %v482_v32 = vpop.f32.mrf.mxu3 }
 0x16f   :  { %v983_v33 = vrot.slane %v982_v11, 2  ;;  %v607_v35 = vadd.f32 %v5508_v62, %v482_v32  ;;  %5151 = vrcp.f32 %v979_v18 }
 0x170   :  { %v5616_v36 = vpop.eup %5147  ;;  %v900_v37 = vmul.f32 1.442695, %v862_v23  ;;  %v685_v52 = vmax.f32 %v683_v9, %v684_v24  ;;  %v266_v23 = vrot.slane %v5579_v22, 4  ;;  %v267_v24 = vrot.slane %v5579_v22, 5 }
 0x171   :  { %v984_v40 = vadd.f32 %v983_v33, %v982_v11  ;;  %v987_v28 = vsel %vm631_vm2, %v5616_v36, 0.0  ;;  %v688_v41 = vsel %vm631_vm2, %v607_v35, -inf  ;;  %v5150_v43 = vpop.eup %5149 }
 0x172   :  { %v988_v25 = vrot.slane %v987_v28, 4  ;;  %5153 = vpow2.f32 %v900_v37  ;;  %v686_v44 = vrot.slane %v685_v52, 1  ;;  %v689_v39 = vrot.slane %v688_v41, 4 }
 0x173   :  { %v985_v45 = vrot.slane %v984_v40, 1  ;;  %v1210_v50 = vmul.f32 %v5150_v43, %v5577_v58 }
 0x174   :  { %v989_v46 = vadd.f32 %v988_v25, %v987_v28  ;;  %v687_v47 = vmax.f32 %v685_v52, %v686_v44  ;;  %v690_v48 = vmax.f32 %v688_v41, %v689_v39  ;;  %v298_v44 = vperm.slane %v266_v23, 0 }
 0x175   :  { %v5152_v49 = vpop.eup %5151  ;;  %v986_v2 = vadd.f32 %v985_v45, %v984_v40  ;;  %v299_v39 = vperm.slane %v267_v24, 0 }
 0x176   :  { %v990_v34 = vrot.slane %v989_v46, 2  ;;  %v863_v60 = vsub.f32 %v606_v61, %v687_v47  ;;  %v691_v17 = vrot.slane %v690_v48, 2  ;;  %v484_v0 = vpop.f32.mrf.mxu3  ;;  %v1211_v56 = vmul.f32 %v5152_v49, %v5590_v26 }
 0x177   :  { %v608_v63 = vadd.f32 %v5519_v15, %v484_v0 }
 0x178   :  { %v5626_v29 = vpop.eup %5153  ;;  %v991_v3 = vadd.f32 %v990_v34, %v989_v46  ;;  %v902_v4 = vmul.f32 1.442695, %v863_v60  ;;  %v692_v57 = vmax.f32 %v690_v48, %v691_v17  ;;  %v1241_v5 = vpack.c.bf16 %v1211_v56, %v1210_v50 }
 0x179   :  { %v994_v58 = vsel %vm631_vm2, %v5626_v29, 0.0  ;;  %v695_v6 = vsel %vm631_vm2, %v608_v63, -inf  ;;  %v362_v60 = vmul.f32 %v298_v44, %v5593_v30  ;;  %v363_v17 = vmul.f32 %v299_v39, %v5593_v30 }
 0x17a   :  { %v995_v61 = vrot.slane %v994_v58, 4  ;;  %5155 = vpow2.f32 %v902_v4  ;;  %v693_v8 = vrot.slane %v692_v57, 1  ;;  %v696_v9 = vrot.slane %v695_v6, 4  ;;  %4248 = vmatmul.msk.bf16.gmra.mxu0 %vm631_vm2, %v1241_v5 }
 0x17b   :  { %4240 = vmatmul.msk.bf16.gmra.mxu3 %vm112_vm1, %v379_v7  ;;  %v992_v26 = vrot.slane %v991_v3, 1  ;;  %5157 = vrcp.f32 %v986_v2 }
 0x17c   :  { %v996_v10 = vadd.f32 %v995_v61, %v994_v58  ;;  %v694_v11 = vmax.f32 %v692_v57, %v693_v8  ;;  %v697_v18 = vmax.f32 %v695_v6, %v696_v9 }
 0x17d   :  { %v993_v19 = vadd.f32 %v992_v26, %v991_v3  ;;  %v380_v26 = vpack.c.bf16 %v363_v17, %v362_v60 }
 0x17e   :  { %v997_v32 = vrot.slane %v996_v10, 2  ;;  %v864_v33 = vsub.f32 %v607_v35, %v694_v11  ;;  %v698_v37 = vrot.slane %v697_v18, 2  ;;  %v487_v52 = vpop.f32.mrf.mxu3 }
 0x17f   :  { %v609_v38 = vadd.f32 %v5528_v31, %v487_v52  ;;  %5159 = vrcp.f32 %v993_v19 }
 0x180   :  { %v5636_v40 = vpop.eup %5155  ;;  %v998_v28 = vadd.f32 %v997_v32, %v996_v10  ;;  %v904_v41 = vmul.f32 1.442695, %v864_v33  ;;  %v699_v42 = vmax.f32 %v697_v18, %v698_v37  ;;  %v268_v32 = vrot.slane %v5579_v22, 6 }
 0x181   :  { %v1001_v43 = vsel %vm631_vm2, %v5636_v40, 0.0  ;;  %v702_v25 = vsel %vm631_vm2, %v609_v38, -inf  ;;  %v5158_v45 = vpop.eup %5157  ;;  %v269_v33 = vrot.slane %v5579_v22, 7 }
 0x182   :  { %v1002_v46 = vrot.slane %v1001_v43, 4  ;;  %5161 = vpow2.f32 %v904_v41  ;;  %v700_v35 = vrot.slane %v699_v42, 1  ;;  %v703_v47 = vrot.slane %v702_v25, 4 }
 0x183   :  { %v999_v48 = vrot.slane %v998_v28, 1  ;;  %v1212_v34 = vmul.f32 %v5158_v45, %v5606_v1 }
 0x184   :  { %v1003_v49 = vadd.f32 %v1002_v46, %v1001_v43  ;;  %v701_v50 = vmax.f32 %v699_v42, %v700_v35  ;;  %v704_v54 = vmax.f32 %v702_v25, %v703_v47  ;;  %v300_v35 = vperm.slane %v268_v32, 0 }
 0x185   :  { %v5160_v55 = vpop.eup %5159  ;;  %v1000_v5 = vadd.f32 %v999_v48, %v998_v28  ;;  %v301_v47 = vperm.slane %v269_v33, 0 }
 0x186   :  { %v1004_v0 = vrot.slane %v1003_v49, 2  ;;  %v865_v56 = vsub.f32 %v608_v63, %v701_v50  ;;  %v705_v2 = vrot.slane %v704_v54, 2  ;;  %v489_v3 = vpop.f32.mrf.mxu3  ;;  %v1213_v4 = vmul.f32 %v5160_v55, %v5616_v36 }
 0x187   :  { %v610_v57 = vadd.f32 %v5547_v59, %v489_v3 }
 0x188   :  { %v5646_v58 = vpop.eup %5161  ;;  %v1005_v6 = vadd.f32 %v1004_v0, %v1003_v49  ;;  %v906_v7 = vmul.f32 1.442695, %v865_v56  ;;  %v706_v61 = vmax.f32 %v704_v54, %v705_v2  ;;  %v1242_v8 = vpack.c.bf16 %v1213_v4, %v1212_v34 }
 0x189   :  { %v1008_v1 = vsel %vm631_vm2, %v5646_v58, 0.0  ;;  %v709_v9 = vsel %vm631_vm2, %v610_v57, -inf  ;;  %v364_v0 = vmul.f32 %v300_v35, %v5593_v30  ;;  %v365_v56 = vmul.f32 %v301_v47, %v5593_v30 }
 0x18a   :  { %v1009_v63 = vrot.slane %v1008_v1, 4  ;;  %5163 = vpow2.f32 %v906_v7  ;;  %v707_v10 = vrot.slane %v706_v61, 1  ;;  %v710_v11 = vrot.slane %v709_v9, 4  ;;  %4249 = vmatmul.msk.bf16.gmra.mxu0 %vm631_vm2, %v1242_v8 }
 0x18b   :  { %4241 = vmatmul.msk.bf16.gmra.mxu3 %vm112_vm1, %v380_v26  ;;  %v1006_v36 = vrot.slane %v1005_v6, 1  ;;  %5165 = vrcp.f32 %v1000_v5 }
 0x18c   :  { %v1010_v18 = vadd.f32 %v1009_v63, %v1008_v1  ;;  %v708_v19 = vmax.f32 %v706_v61, %v707_v10  ;;  %v711_v23 = vmax.f32 %v709_v9, %v710_v11  ;;  %v381_v10 = vpack.c.bf16 %v365_v56, %v364_v0 }
 0x18d   :  { %v1007_v24 = vadd.f32 %v1006_v36, %v1005_v6 }
 0x18e   :  { %v1011_v37 = vrot.slane %v1010_v18, 2  ;;  %v866_v52 = vsub.f32 %v609_v38, %v708_v19  ;;  %v712_v28 = vrot.slane %v711_v23, 2  ;;  %v492_v41 = vpop.f32.mrf.mxu3 }
 0x18f   :  { %v611_v42 = vadd.f32 %v5556_v12, %v492_v41  ;;  %5167 = vrcp.f32 %v1007_v24 }
 0x190   :  { %v5656_v43 = vpop.eup %5163  ;;  %v1012_v25 = vadd.f32 %v1011_v37, %v1010_v18  ;;  %v908_v44 = vmul.f32 1.442695, %v866_v52  ;;  %v713_v39 = vmax.f32 %v711_v23, %v712_v28 }
 0x191   :  { %v1015_v45 = vsel %vm631_vm2, %v5656_v43, 0.0  ;;  %v716_v46 = vsel %vm631_vm2, %v611_v42, -inf  ;;  %v5166_v22 = vpop.eup %5165 }
 0x192   :  { %v1016_v48 = vrot.slane %v1015_v45, 4  ;;  %5169 = vpow2.f32 %v908_v44  ;;  %v714_v38 = vrot.slane %v713_v39, 1  ;;  %v717_v49 = vrot.slane %v716_v46, 4 }
 0x193   :  { %v1013_v50 = vrot.slane %v1012_v25, 1  ;;  %v1214_v17 = vmul.f32 %v5166_v22, %v5626_v29 }
 0x194   :  { %v1017_v54 = vadd.f32 %v1016_v48, %v1015_v45  ;;  %v715_v55 = vmax.f32 %v713_v39, %v714_v38  ;;  %v718_v34 = vmax.f32 %v716_v46, %v717_v49 }
 0x195   :  { %v5168_v60 = vpop.eup %5167  ;;  %v1014_v61 = vadd.f32 %v1013_v50, %v1012_v25 }
 0x196   :  { %v1018_v2 = vrot.slane %v1017_v54, 2  ;;  %v867_v3 = vsub.f32 %v610_v57, %v715_v55  ;;  %v719_v4 = vrot.slane %v718_v34, 2  ;;  %v494_v5 = vpop.f32.mrf.mxu3  ;;  %v1215_v6 = vmul.f32 %v5168_v60, %v5636_v40 }
 0x197   :  { %v612_v7 = vadd.f32 %v5574_v53, %v494_v5 }
 0x198   :  { %v5666_v8 = vpop.eup %5169  ;;  %v1019_v1 = vadd.f32 %v1018_v2, %v1017_v54  ;;  %v910_v9 = vmul.f32 1.442695, %v867_v3  ;;  %v720_v26 = vmax.f32 %v718_v34, %v719_v4  ;;  %v1243_v63 = vpack.c.bf16 %v1215_v6, %v1214_v17 }
 0x199   :  { %v1022_v29 = vsel %vm631_vm2, %v5666_v8, 0.0  ;;  %v723_v30 = vsel %vm631_vm2, %v612_v7, -inf }
 0x19a   :  { %v1023_v57 = vrot.slane %v1022_v29, 4  ;;  %5171 = vpow2.f32 %v910_v9  ;;  %v721_v11 = vrot.slane %v720_v26, 1  ;;  %v724_v36 = vrot.slane %v723_v30, 4  ;;  %4250 = vmatmul.msk.bf16.gmra.mxu0 %vm631_vm2, %v1243_v63 }
 0x19b   :  { %4242 = vmatmul.msk.bf16.gmra.mxu3 %vm112_vm1, %v381_v10  ;;  %v1020_v40 = vrot.slane %v1019_v1, 1  ;;  %5173 = vrcp.f32 %v1014_v61 }
 0x19c   :  { %v1024_v18 = vadd.f32 %v1023_v57, %v1022_v29  ;;  %v722_v19 = vmax.f32 %v720_v26, %v721_v11  ;;  %v725_v23 = vmax.f32 %v723_v30, %v724_v36 }
 0x19d   :  { %v1021_v24 = vadd.f32 %v1020_v40, %v1019_v1 }
 0x19e   :  { %v1025_v32 = vrot.slane %v1024_v18, 2  ;;  %v868_v33 = vsub.f32 %v611_v42, %v722_v19  ;;  %v726_v37 = vrot.slane %v725_v23, 2  ;;  %v497_v52 = vpop.f32.mrf.mxu3 }
 0x19f   :  { %v613_v28 = vadd.f32 %v5586_v16, %v497_v52  ;;  %5175 = vrcp.f32 %v1021_v24 }
 0x1a0   :  { %v5674_v41 = vpop.eup %5171  ;;  %v1026_v25 = vadd.f32 %v1025_v32, %v1024_v18  ;;  %v912_v44 = vmul.f32 1.442695, %v868_v33  ;;  %v727_v39 = vmax.f32 %v725_v23, %v726_v37 }
 0x1a1   :  { %v1029_v45 = vsel %vm631_vm2, %v5674_v41, 0.0  ;;  %v730_v46 = vsel %vm631_vm2, %v613_v28, -inf  ;;  %v5174_v35 = vpop.eup %5173 }
 0x1a2   :  { %v1030_v47 = vrot.slane %v1029_v45, 4  ;;  %5177 = vpow2.f32 %v912_v44  ;;  %v728_v22 = vrot.slane %v727_v39, 1  ;;  %v731_v42 = vrot.slane %v730_v46, 4 }
 0x1a3   :  { %v1027_v48 = vrot.slane %v1026_v25, 1  ;;  %v1216_v55 = vmul.f32 %v5174_v35, %v5646_v58 }
 0x1a4   :  { %v1031_v38 = vadd.f32 %v1030_v47, %v1029_v45  ;;  %v729_v49 = vmax.f32 %v727_v39, %v728_v22  ;;  %v732_v50 = vmax.f32 %v730_v46, %v731_v42 }
 0x1a5   :  { %v5176_v54 = vpop.eup %5175  ;;  %v1028_v3 = vadd.f32 %v1027_v48, %v1026_v25 }
 0x1a6   :  { %v1032_v34 = vrot.slane %v1031_v38, 2  ;;  %v869_v60 = vsub.f32 %v612_v7, %v729_v49  ;;  %v733_v17 = vrot.slane %v732_v50, 2  ;;  %v499_v0 = vpop.f32.mrf.mxu3  ;;  %v1217_v56 = vmul.f32 %v5176_v54, %v5656_v43 }
 0x1a7   :  { %v614_v2 = vadd.f32 %v5603_v51, %v499_v0 }
 0x1a8   :  { %v5682_v4 = vpop.eup %5177  ;;  %v1033_v5 = vadd.f32 %v1032_v34, %v1031_v38  ;;  %v914_v6 = vmul.f32 1.442695, %v869_v60  ;;  %v734_v61 = vmax.f32 %v732_v50, %v733_v17  ;;  %v1244_v1 = vpack.c.bf16 %v1217_v56, %v1216_v55 }
 0x1a9   :  { %v1036_v9 = vsel %vm631_vm2, %v5682_v4, 0.0  ;;  %v737_v58 = vsel %vm631_vm2, %v614_v2, -inf }
 0x1aa   :  { %v1037_v26 = vrot.slane %v1036_v9, 4  ;;  %5179 = vpow2.f32 %v914_v6  ;;  %v735_v7 = vrot.slane %v734_v61, 1  ;;  %v738_v63 = vrot.slane %v737_v58, 4  ;;  %4251 = vmatmul.msk.bf16.gmra.mxu0 %vm631_vm2, %v1244_v1 }
 0x1ab   :  { %v1034_v43 = vrot.slane %v1033_v5, 1  ;;  %5181 = vrcp.f32 %v1028_v3 }
 0x1ac   :  { %v1038_v29 = vadd.f32 %v1037_v26, %v1036_v9  ;;  %v736_v30 = vmax.f32 %v734_v61, %v735_v7  ;;  %v739_v10 = vmax.f32 %v737_v58, %v738_v63 }
 0x1ad   :  { %v1035_v57 = vadd.f32 %v1034_v43, %v1033_v5 }
 0x1ae   :  { %v1039_v11 = vrot.slane %v1038_v29, 2  ;;  %v870_v36 = vsub.f32 %v613_v28, %v736_v30  ;;  %v740_v40 = vrot.slane %v739_v10, 2  ;;  %v502_v18 = vpop.f32.mrf.mxu3 }
 0x1af   :  { %v615_v19 = vadd.f32 %v5508_v62, %v502_v18  ;;  %5183 = vrcp.f32 %v1035_v57 }
 0x1b0   :  { %v5689_v23 = vpop.eup %5179  ;;  %v1040_v24 = vadd.f32 %v1039_v11, %v1038_v29  ;;  %v916_v32 = vmul.f32 1.442695, %v870_v36  ;;  %v741_v33 = vmax.f32 %v739_v10, %v740_v40 }
 0x1b1   :  { %v1043_v37 = vsel %vm631_vm2, %v5689_v23, 0.0  ;;  %v744_v52 = vsel %vm631_vm2, %v615_v19, -inf  ;;  %v5182_v25 = vpop.eup %5181 }
 0x1b2   :  { %v1044_v44 = vrot.slane %v1043_v37, 4  ;;  %5185 = vpow2.f32 %v916_v32  ;;  %v742_v39 = vrot.slane %v741_v33, 1  ;;  %v745_v28 = vrot.slane %v744_v52, 4 }
 0x1b3   :  { %v1041_v45 = vrot.slane %v1040_v24, 1  ;;  %v1218_v42 = vmul.f32 %v5182_v25, %v5666_v8 }
 0x1b4   :  { %v1045_v46 = vadd.f32 %v1044_v44, %v1043_v37  ;;  %v743_v35 = vmax.f32 %v741_v33, %v742_v39  ;;  %v746_v47 = vmax.f32 %v744_v52, %v745_v28 }
 0x1b5   :  { %v5184_v22 = vpop.eup %5183  ;;  %v1042_v34 = vadd.f32 %v1041_v45, %v1040_v24 }
 0x1b6   :  { %v1046_v48 = vrot.slane %v1045_v46, 2  ;;  %v871_v38 = vsub.f32 %v614_v2, %v743_v35  ;;  %v747_v49 = vrot.slane %v746_v47, 2  ;;  %v504_v50 = vpop.f32.mrf.mxu3  ;;  %v1219_v54 = vmul.f32 %v5184_v22, %v5674_v41 }
 0x1b7   :  { %v616_v55 = vadd.f32 %v5519_v15, %v504_v50 }
 0x1b8   :  { %v5697_v60 = vpop.eup %5185  ;;  %v1047_v17 = vadd.f32 %v1046_v48, %v1045_v46  ;;  %v918_v0 = vmul.f32 1.442695, %v871_v38  ;;  %v748_v56 = vmax.f32 %v746_v47, %v747_v49  ;;  %v1245_v3 = vpack.c.bf16 %v1219_v54, %v1218_v42 }
 0x1b9   :  { %v1050_v5 = vsel %vm631_vm2, %v5697_v60, 0.0  ;;  %v751_v8 = vsel %vm631_vm2, %v616_v55, -inf }
 0x1ba   :  { %v1051_v6 = vrot.slane %v1050_v5, 4  ;;  %5187 = vpow2.f32 %v918_v0  ;;  %v749_v2 = vrot.slane %v748_v56, 1  ;;  %v752_v61 = vrot.slane %v751_v8, 4  ;;  %4252 = vmatmul.msk.bf16.gmra.mxu0 %vm631_vm2, %v1245_v3 }
 0x1bb   :  { %v1048_v41 = vrot.slane %v1047_v17, 1  ;;  %5189 = vrcp.f32 %v1042_v34 }
 0x1bc   :  { %v1052_v1 = vadd.f32 %v1051_v6, %v1050_v5  ;;  %v750_v9 = vmax.f32 %v748_v56, %v749_v2  ;;  %v753_v58 = vmax.f32 %v751_v8, %v752_v61 }
 0x1bd   :  { %v1049_v26 = vadd.f32 %v1048_v41, %v1047_v17 }
 0x1be   :  { %v1053_v7 = vrot.slane %v1052_v1, 2  ;;  %v872_v63 = vsub.f32 %v615_v19, %v750_v9  ;;  %v754_v43 = vrot.slane %v753_v58, 2  ;;  %v507_v29 = vpop.f32.mrf.mxu3 }
 0x1bf   :  { %v617_v30 = vadd.f32 %v5528_v31, %v507_v29  ;;  %5191 = vrcp.f32 %v1049_v26 }
 0x1c0   :  { %v5704_v10 = vpop.eup %5187  ;;  %v1054_v57 = vadd.f32 %v1053_v7, %v1052_v1  ;;  %v920_v11 = vmul.f32 1.442695, %v872_v63  ;;  %v755_v36 = vmax.f32 %v753_v58, %v754_v43 }
 0x1c1   :  { %v1057_v40 = vsel %vm631_vm2, %v5704_v10, 0.0  ;;  %v758_v18 = vsel %vm631_vm2, %v617_v30, -inf  ;;  %v5190_v24 = vpop.eup %5189 }
 0x1c2   :  { %v1058_v32 = vrot.slane %v1057_v40, 4  ;;  %5193 = vpow2.f32 %v920_v11  ;;  %v756_v33 = vrot.slane %v755_v36, 1  ;;  %v759_v19 = vrot.slane %v758_v18, 4 }
 0x1c3   :  { %v1055_v37 = vrot.slane %v1054_v57, 1  ;;  %v1220_v28 = vmul.f32 %v5190_v24, %v5682_v4 }
 0x1c4   :  { %v1059_v52 = vadd.f32 %v1058_v32, %v1057_v40  ;;  %v757_v25 = vmax.f32 %v755_v36, %v756_v33  ;;  %v760_v44 = vmax.f32 %v758_v18, %v759_v19 }
 0x1c5   :  { %v5192_v39 = vpop.eup %5191  ;;  %v1056_v48 = vadd.f32 %v1055_v37, %v1054_v57 }
 0x1c6   :  { %v1060_v45 = vrot.slane %v1059_v52, 2  ;;  %v873_v46 = vsub.f32 %v616_v55, %v757_v25  ;;  %v761_v35 = vrot.slane %v760_v44, 2  ;;  %v509_v47 = vpop.f32.mrf.mxu3  ;;  %v1221_v22 = vmul.f32 %v5192_v39, %v5689_v23 }
 0x1c7   :  { %v618_v42 = vadd.f32 %v5547_v59, %v509_v47 }
 0x1c8   :  { %v5712_v38 = vpop.eup %5193  ;;  %v1061_v49 = vadd.f32 %v1060_v45, %v1059_v52  ;;  %v922_v50 = vmul.f32 1.442695, %v873_v46  ;;  %v762_v54 = vmax.f32 %v760_v44, %v761_v35  ;;  %v1246_v34 = vpack.c.bf16 %v1221_v22, %v1220_v28 }
 0x1c9   :  { %v1064_v17 = vsel %vm631_vm2, %v5712_v38, 0.0  ;;  %v765_v4 = vsel %vm631_vm2, %v618_v42, -inf }
 0x1ca   :  { %v1065_v0 = vrot.slane %v1064_v17, 4  ;;  %5195 = vpow2.f32 %v922_v50  ;;  %v763_v55 = vrot.slane %v762_v54, 1  ;;  %v766_v56 = vrot.slane %v765_v4, 4  ;;  %4253 = vmatmul.msk.bf16.gmra.mxu0 %vm631_vm2, %v1246_v34 }
 0x1cb   :  { %v1062_v23 = vrot.slane %v1061_v49, 1  ;;  %5197 = vrcp.f32 %v1056_v48 }
 0x1cc   :  { %v1066_v3 = vadd.f32 %v1065_v0, %v1064_v17  ;;  %v764_v5 = vmax.f32 %v762_v54, %v763_v55  ;;  %v767_v8 = vmax.f32 %v765_v4, %v766_v56 }
 0x1cd   :  { %v1063_v6 = vadd.f32 %v1062_v23, %v1061_v49 }
 0x1ce   :  { %v1067_v2 = vrot.slane %v1066_v3, 2  ;;  %v874_v61 = vsub.f32 %v617_v30, %v764_v5  ;;  %v768_v41 = vrot.slane %v767_v8, 2  ;;  %v512_v1 = vpop.f32.mrf.mxu3 }
 0x1cf   :  { %v619_v9 = vadd.f32 %v5556_v12, %v512_v1  ;;  %5199 = vrcp.f32 %v1063_v6 }
 0x1d0   :  { %v5719_v58 = vpop.eup %5195  ;;  %v1068_v26 = vadd.f32 %v1067_v2, %v1066_v3  ;;  %v924_v7 = vmul.f32 1.442695, %v874_v61  ;;  %v769_v63 = vmax.f32 %v767_v8, %v768_v41  ;;  %v5739_v8 = vld [vmem:[%s6911_s8] ss:$0 sm:$0xff]  ;;  %v224_v41 = vpop.f32.mrf.mxu2 }
 0x1d1   :  { %v1071_v43 = vsel %vm631_vm2, %v5719_v58, 0.0  ;;  %v772_v29 = vsel %vm631_vm2, %v619_v9, -inf  ;;  %v5198_v57 = vpop.eup %5197 }
 0x1d2   :  { %v1072_v11 = vrot.slane %v1071_v43, 4  ;;  %5201 = vpow2.f32 %v924_v7  ;;  %v770_v36 = vrot.slane %v769_v63, 1  ;;  %v773_v30 = vrot.slane %v772_v29, 4 }
 0x1d3   :  { %v1069_v40 = vrot.slane %v1068_v26, 1  ;;  %v1222_v19 = vmul.f32 %v5198_v57, %v5697_v60  ;;  %v5748_v57 = vadd.f32 %v5739_v8, %v224_v41 }
 0x1d4   :  { %v1073_v18 = vadd.f32 %v1072_v11, %v1071_v43  ;;  %v771_v24 = vmax.f32 %v769_v63, %v770_v36  ;;  %v774_v32 = vmax.f32 %v772_v29, %v773_v30 }
 0x1d5   :  { %v5200_v33 = vpop.eup %5199  ;;  %v1070_v45 = vadd.f32 %v1069_v40, %v1068_v26 }
 0x1d6   :  { %v1074_v37 = vrot.slane %v1073_v18, 2  ;;  %v875_v52 = vsub.f32 %v618_v42, %v771_v24  ;;  %v775_v25 = vrot.slane %v774_v32, 2  ;;  %v514_v44 = vpop.f32.mrf.mxu3  ;;  %v1223_v39 = vmul.f32 %v5200_v33, %v5704_v10 }
 0x1d7   :  { %v620_v28 = vadd.f32 %v5574_v53, %v514_v44 }
 0x1d8   :  { %v5727_v46 = vpop.eup %5201  ;;  %v1075_v35 = vadd.f32 %v1074_v37, %v1073_v18  ;;  %v926_v47 = vmul.f32 1.442695, %v875_v52  ;;  %v776_v22 = vmax.f32 %v774_v32, %v775_v25  ;;  %v1247_v48 = vpack.c.bf16 %v1223_v39, %v1222_v19 }
 0x1d9   :  { %v1078_v49 = vsel %vm631_vm2, %v5727_v46, 0.0  ;;  %v779_v60 = vsel %vm631_vm2, %v620_v28, -inf }
 0x1da   :  { %v1079_v50 = vrot.slane %v1078_v49, 4  ;;  %5203 = vpow2.f32 %v926_v47  ;;  %v777_v42 = vrot.slane %v776_v22, 1  ;;  %v780_v54 = vrot.slane %v779_v60, 4  ;;  %4254 = vmatmul.msk.bf16.gmra.mxu0 %vm631_vm2, %v1247_v48 }
 0x1db   :  { %v1076_v10 = vrot.slane %v1075_v35, 1  ;;  %5205 = vrcp.f32 %v1070_v45 }
 0x1dc   :  { %v1080_v34 = vadd.f32 %v1079_v50, %v1078_v49  ;;  %v778_v17 = vmax.f32 %v776_v22, %v777_v42  ;;  %v781_v4 = vmax.f32 %v779_v60, %v780_v54 }
 0x1dd   :  { %v1077_v0 = vadd.f32 %v1076_v10, %v1075_v35 }
 0x1de   :  { %v1081_v55 = vrot.slane %v1080_v34, 2  ;;  %v876_v56 = vsub.f32 %v619_v9, %v778_v17  ;;  %v782_v23 = vrot.slane %v781_v4, 2  ;;  %v517_v3 = vpop.f32.mrf.mxu3 }
 0x1df   :  { %v5734_v5 = vadd.f32 %v5586_v16, %v517_v3  ;;  %5207 = vrcp.f32 %v1077_v0 }
 0x1e0   :  { %v5741_v6 = vpop.eup %5203  ;;  %v928_v2 = vmul.f32 1.442695, %v876_v56  ;;  %v783_v61 = vmax.f32 %v781_v4, %v782_v23  ;;  %v1082_v1 = vadd.f32 %v1081_v55, %v1080_v34 }
 0x1e1   :  { %v1085_v9 = vsel %vm631_vm2, %v5741_v6, 0.0  ;;  %v786_v26 = vsel %vm631_vm2, %v5734_v5, -inf  ;;  %v5206_v7 = vpop.eup %5205 }
 0x1e2   :  { %v1086_v63 = vrot.slane %v1085_v9, 4  ;;  %5209 = vpow2.f32 %v928_v2  ;;  %v784_v43 = vrot.slane %v783_v61, 1  ;;  %v787_v29 = vrot.slane %v786_v26, 4 }
 0x1e3   :  { %v1224_v18 = vmul.f32 %v5206_v7, %v5712_v38  ;;  %v1083_v24 = vrot.slane %v1082_v1, 1 }
 0x1e4   :  { %v1087_v11 = vadd.f32 %v1086_v63, %v1085_v9  ;;  %v785_v36 = vmax.f32 %v783_v61, %v784_v43  ;;  %v788_v30 = vmax.f32 %v786_v26, %v787_v29 }
 0x1e5   :  { %v5208_v40 = vpop.eup %5207 }
 0x1e6   :  { %v1088_v32 = vrot.slane %v1087_v11, 2  ;;  %v877_v33 = vsub.f32 %v620_v28, %v785_v36  ;;  %v789_v19 = vrot.slane %v788_v30, 2  ;;  %v519_v37 = vpop.f32.mrf.mxu3  ;;  %v1324_v52 = vpop.f32.mrf.mxu0  ;;  %v1225_v25 = vmul.f32 %v5208_v40, %v5719_v58 }
 0x1e7   :  { %v5753_v44 = vadd.f32 %v5603_v51, %v519_v37  ;;  %v1404_v39 = vmul.f32 %v1324_v52, %v5748_v57  ;;  %v1084_v58 = vadd.f32 %v1083_v24, %v1082_v1 }
 0x1e8   :  { %v5756_v45 = vpop.eup %5209  ;;  %v1089_v35 = vadd.f32 %v1088_v32, %v1087_v11  ;;  %v930_v47 = vmul.f32 1.442695, %v877_v33  ;;  %v790_v22 = vmax.f32 %v788_v30, %v789_v19  ;;  %v1248_v48 = vpack.c.bf16 %v1225_v25, %v1224_v18 }
 0x1e9   :  { %v1092_v38 = vsel %vm631_vm2, %v5756_v45, 0.0  ;;  %v793_v28 = vsel %vm631_vm2, %v5753_v44, -inf  ;;  %v1436_v49 = vsel %vm112_vm1, %v1404_v39, 0.0 }
 0x1ea   :  { %v1093_v60 = vrot.slane %v1092_v38, 4  ;;  %5211 = vpow2.f32 %v930_v47  ;;  %v791_v50 = vrot.slane %v790_v22, 1  ;;  %v794_v42 = vrot.slane %v793_v28, 4  ;;  %4255 = vmatmul.msk.bf16.gmra.mxu0 %vm631_vm2, %v1248_v48 }
 0x1eb   :  { %v1437_v54 = vrot.slane %v1436_v49, 4  ;;  %v1090_v10 = vrot.slane %v1089_v35, 1  ;;  %5213 = vrcp.f32 %v1084_v58 }
 0x1ec   :  { %v1094_v34 = vadd.f32 %v1093_v60, %v1092_v38  ;;  %v792_v17 = vmax.f32 %v790_v22, %v791_v50  ;;  %v795_v4 = vmax.f32 %v793_v28, %v794_v42 }
 0x1ed   :  { %v1438_v0 = vadd.f32 %v1437_v54, %v1436_v49  ;;  %v1091_v55 = vadd.f32 %v1090_v10, %v1089_v35 }
 0x1ee   :  { %v1095_v56 = vrot.slane %v1094_v34, 2  ;;  %v878_v23 = vsub.f32 %v5734_v5, %v792_v17  ;;  %v796_v3 = vrot.slane %v795_v4, 2  ;;  %v522_v2 = vpop.f32.mrf.mxu3  ;;  %v1326_v61 = vpop.f32.mrf.mxu0 }
 0x1ef   :  { %v1439_v41 = vrot.slane %v1438_v0, 2  ;;  %v5766_v1 = vadd.f32 %v5508_v62, %v522_v2  ;;  %v1405_v9 = vmul.f32 %v1326_v61, %v5748_v57  ;;  %5215 = vrcp.f32 %v1091_v55 }
 0x1f0   :  { %v5769_v26 = vpop.eup %5211  ;;  %v1096_v7 = vadd.f32 %v1095_v56, %v1094_v34  ;;  %v932_v63 = vmul.f32 1.442695, %v878_v23  ;;  %v797_v43 = vmax.f32 %v795_v4, %v796_v3 }
 0x1f1   :  { %v1099_v29 = vsel %vm631_vm2, %v5769_v26, 0.0  ;;  %v1440_v11 = vadd.f32 %v1439_v41, %v1438_v0  ;;  %v800_v5 = vsel %vm631_vm2, %v5766_v1, -inf  ;;  %v1443_v36 = vsel %vm112_vm1, %v1405_v9, 0.0  ;;  %v5214_v40 = vpop.eup %5213 }
 0x1f2   :  { %v1100_v30 = vrot.slane %v1099_v29, 4  ;;  %5217 = vpow2.f32 %v932_v63  ;;  %v798_v62 = vrot.slane %v797_v43, 1  ;;  %v801_v24 = vrot.slane %v800_v5, 4 }
 0x1f3   :  { %v1441_v18 = vrot.slane %v1440_v11, 1  ;;  %v1444_v32 = vrot.slane %v1443_v36, 4  ;;  %v1097_v52 = vrot.slane %v1096_v7, 1  ;;  %v1226_v48 = vmul.f32 %v5214_v40, %v5727_v46 }
 0x1f4   :  { %v1101_v33 = vadd.f32 %v1100_v30, %v1099_v29  ;;  %v799_v19 = vmax.f32 %v797_v43, %v798_v62  ;;  %v802_v25 = vmax.f32 %v800_v5, %v801_v24 }
 0x1f5   :  { %v5216_v37 = vpop.eup %5215  ;;  %v1445_v39 = vadd.f32 %v1444_v32, %v1443_v36  ;;  %v1442_v28 = vadd.f32 %v1441_v18, %v1440_v11 }
 0x1f6   :  { %v1102_v35 = vrot.slane %v1101_v33, 2  ;;  %v879_v47 = vsub.f32 %v5753_v44, %v799_v19  ;;  %v524_v22 = vpop.f32.mrf.mxu3  ;;  %v1227_v38 = vmul.f32 %v5216_v37, %v5741_v6  ;;  %v803_v49 = vrot.slane %v802_v25, 2 }
 0x1f7   :  { %v1446_v58 = vrot.slane %v1445_v39, 2  ;;  %v5780_v60 = vadd.f32 %v5519_v15, %v524_v22  ;;  %v1329_v50 = vpop.f32.mrf.mxu0  ;;  %v1098_v44 = vadd.f32 %v1097_v52, %v1096_v7  ;;  %v1660_v9 = vpack.c.bf16 %v1442_v28, %v1442_v28 }
 0x1f8   :  { %v5782_v42 = vpop.eup %5217  ;;  %v1103_v54 = vadd.f32 %v1102_v35, %v1101_v33  ;;  %v934_v10 = vmul.f32 1.442695, %v879_v47  ;;  %v1406_v34 = vmul.f32 %v1329_v50, %v5748_v57  ;;  %v1249_v17 = vpack.c.bf16 %v1227_v38, %v1226_v48 }
 0x1f9   :  { %v1106_v46 = vsel %vm631_vm2, %v5782_v42, 0.0  ;;  %v804_v4 = vmax.f32 %v802_v25, %v803_v49  ;;  %v1447_v6 = vadd.f32 %v1446_v58, %v1445_v39  ;;  %v807_v15 = vsel %vm631_vm2, %v5780_v60, -inf }
 0x1fa   :  { %v1104_v0 = vrot.slane %v1103_v54, 1  ;;  %v1107_v55 = vrot.slane %v1106_v46, 4  ;;  %5219 = vpow2.f32 %v934_v10  ;;  %4256 = vmatmul.msk.bf16.gmra.mxu0 %vm631_vm2, %v1249_v17  ;;  %v808_v3 = vrot.slane %v807_v15, 4 }
 0x1fb   :  { %v805_v56 = vrot.slane %v804_v4, 1  ;;  %v1448_v23 = vrot.slane %v1447_v6, 1  ;;  %v1450_v2 = vsel %vm112_vm1, %v1406_v34, 0.0  ;;  %5221 = vrcp.f32 %v1098_v44 }
 0x1fc   :  { %v1105_v61 = vadd.f32 %v1104_v0, %v1103_v54  ;;  %v1108_v41 = vadd.f32 %v1107_v55, %v1106_v46  ;;  %v1451_v7 = vrot.slane %v1450_v2, 4  ;;  %v809_v29 = vmax.f32 %v807_v15, %v808_v3 }
 0x1fd   :  { %v806_v63 = vmax.f32 %v804_v4, %v805_v56  ;;  %v1449_v43 = vadd.f32 %v1448_v23, %v1447_v6  ;;  %v1733_v19 = vunpack.c.l.b16 %v1660_v9 }
 0x1fe   :  { %v1109_v11 = vrot.slane %v1108_v41, 2  ;;  %v1452_v5 = vadd.f32 %v1451_v7, %v1450_v2  ;;  %v527_v36 = vpop.f32.mrf.mxu3  ;;  %5223 = vrcp.f32 %v1105_v61  ;;  %v810_v40 = vrot.slane %v809_v29, 2 }
 0x1ff   :  { %v880_v30 = vsub.f32 %v5766_v1, %v806_v63  ;;  %v1661_v62 = vpack.c.bf16 %v1449_v43, %v1449_v43  ;;  %v5793_v18 = vadd.f32 %v5528_v31, %v527_v36  ;;  %v1331_v24 = vpop.f32.mrf.mxu0 }
 0x200   :  { %v5795_v32 = vpop.eup %5219  ;;  %v1110_v33 = vadd.f32 %v1109_v11, %v1108_v41  ;;  %v1453_v37 = vrot.slane %v1452_v5, 2  ;;  %v1407_v52 = vmul.f32 %v1331_v24, %v5748_v57  ;;  %v811_v47 = vmax.f32 %v809_v29, %v810_v40 }
 0x201   :  { %v1113_v25 = vsel %vm631_vm2, %v5795_v32, 0.0  ;;  %v936_v39 = vmul.f32 1.442695, %v880_v30  ;;  %v1734_v35 = vunpack.c.l.b16 %v1661_v62  ;;  %v814_v31 = vsel %vm631_vm2, %v5793_v18, -inf  ;;  %v5222_v38 = vpop.eup %5221 }
 0x202   :  { %v1111_v1 = vrot.slane %v1110_v33, 1  ;;  %v1114_v22 = vrot.slane %v1113_v25, 4  ;;  %v1454_v48 = vadd.f32 %v1453_v37, %v1452_v5  ;;  %v812_v49 = vrot.slane %v811_v47, 1 }
 0x203   :  { %5225 = vpow2.f32 %v936_v39  ;;  %v1766_v28 = vsel %vm1765_vm4, %v1734_v35, %v1733_v19  ;;  %v815_v58 = vrot.slane %v814_v31, 4  ;;  %v1457_v17 = vsel %vm112_vm1, %v1407_v52, 0.0 }
 0x204   :  { %v5224_v50 = vpop.eup %5223  ;;  %v1112_v54 = vadd.f32 %v1111_v1, %v1110_v33  ;;  %v1115_v10 = vadd.f32 %v1114_v22, %v1113_v25  ;;  %v1455_v34 = vrot.slane %v1454_v48, 1  ;;  %v813_v44 = vmax.f32 %v811_v47, %v812_v49 }
 0x205   :  { %v816_v46 = vmax.f32 %v814_v31, %v815_v58  ;;  %v1458_v4 = vrot.slane %v1457_v17, 4  ;;  %v1229_v6 = vmul.f32 %v5224_v50, %v5769_v26  ;;  %v1228_v56 = vmul.f32 %v5222_v38, %v5756_v45 }
 0x206   :  { %5227 = vrcp.f32 %v1112_v54  ;;  %v1116_v0 = vrot.slane %v1115_v10, 2  ;;  %v1456_v55 = vadd.f32 %v1455_v34, %v1454_v48  ;;  %v529_v15 = vpop.f32.mrf.mxu3  ;;  %v881_v23 = vsub.f32 %v5780_v60, %v813_v44 }
 0x207   :  { %v817_v3 = vrot.slane %v816_v46, 2  ;;  %v1459_v2 = vadd.f32 %v1458_v4, %v1457_v17  ;;  %v5808_v61 = vadd.f32 %v5547_v59, %v529_v15  ;;  %v1334_v41 = vpop.f32.mrf.mxu0  ;;  %v1250_v43 = vpack.c.bf16 %v1229_v6, %v1228_v56 }
 0x208   :  { %v1117_v9 = vadd.f32 %v1116_v0, %v1115_v10  ;;  %v1662_v7 = vpack.c.bf16 %v1456_v55, %v1456_v55  ;;  %v1408_v63 = vmul.f32 %v1334_v41, %v5748_v57  ;;  %v938_v29 = vmul.f32 1.442695, %v881_v23 }
 0x209   :  { %v5811_v26 = vpop.eup %5225  ;;  %v818_v11 = vmax.f32 %v816_v46, %v817_v3  ;;  %v1460_v5 = vrot.slane %v1459_v2, 2  ;;  %v821_v45 = vsel %vm631_vm2, %v5808_v61, -inf }
 0x20a   :  { %v1118_v60 = vrot.slane %v1117_v9, 1  ;;  %v1120_v36 = vsel %vm631_vm2, %v5811_v26, 0.0  ;;  %v1735_v59 = vunpack.c.l.b16 %v1662_v7  ;;  %v822_v30 = vrot.slane %v821_v45, 4  ;;  %4257 = vmatmul.msk.bf16.gmra.mxu0 %vm631_vm2, %v1250_v43 }
 0x20b   :  { %v1121_v62 = vrot.slane %v1120_v36, 4  ;;  %5229 = vpow2.f32 %v938_v29  ;;  %v819_v40 = vrot.slane %v818_v11, 1  ;;  %v1461_v24 = vadd.f32 %v1460_v5, %v1459_v2 }
 0x20c   :  { %v5228_v33 = vpop.eup %5227  ;;  %v1119_v19 = vadd.f32 %v1118_v60, %v1117_v9  ;;  %v1768_v37 = vsel %vm1767_vm5, %v1735_v59, %v1766_v28  ;;  %v823_v52 = vmax.f32 %v821_v45, %v822_v30  ;;  %v1464_v25 = vsel %vm112_vm1, %v1408_v63, 0.0 }
 0x20d   :  { %v1122_v39 = vadd.f32 %v1121_v62, %v1120_v36  ;;  %v820_v35 = vmax.f32 %v818_v11, %v819_v40  ;;  %v1462_v47 = vrot.slane %v1461_v24, 1  ;;  %v1465_v1 = vrot.slane %v1464_v25, 4 }
 0x20e   :  { %v824_v22 = vrot.slane %v823_v52, 2  ;;  %v532_v48 = vpop.f32.mrf.mxu3  ;;  %5231 = vrcp.f32 %v1119_v19  ;;  %v1230_v56 = vmul.f32 %v5228_v33, %v5782_v42 }
 0x20f   :  { %v1123_v31 = vrot.slane %v1122_v39, 2  ;;  %v882_v38 = vsub.f32 %v5793_v18, %v820_v35  ;;  %v1463_v49 = vadd.f32 %v1462_v47, %v1461_v24  ;;  %v1466_v58 = vadd.f32 %v1465_v1, %v1464_v25  ;;  %v1336_v50 = vpop.f32.mrf.mxu0 }
 0x210   :  { %v825_v54 = vmax.f32 %v823_v52, %v824_v22  ;;  %v5822_v28 = vadd.f32 %v5556_v12, %v532_v48  ;;  %v1409_v10 = vmul.f32 %v1336_v50, %v5748_v57 }
 0x211   :  { %v5825_v34 = vpop.eup %5229  ;;  %v1124_v17 = vadd.f32 %v1123_v31, %v1122_v39  ;;  %v940_v44 = vmul.f32 1.442695, %v882_v38  ;;  %v1663_v46 = vpack.c.bf16 %v1463_v49, %v1463_v49  ;;  %v1467_v4 = vrot.slane %v1466_v58, 2 }
 0x212   :  { %v1127_v6 = vsel %vm631_vm2, %v5825_v34, 0.0  ;;  %v826_v18 = vrot.slane %v825_v54, 1  ;;  %v828_v0 = vsel %vm631_vm2, %v5822_v28, -inf  ;;  %v1471_v55 = vsel %vm112_vm1, %v1409_v10, 0.0 }
 0x213   :  { %v1128_v15 = vrot.slane %v1127_v6, 4  ;;  %5233 = vpow2.f32 %v940_v44  ;;  %v1736_v12 = vunpack.c.l.b16 %v1663_v46  ;;  %v1468_v2 = vadd.f32 %v1467_v4, %v1466_v58 }
 0x214   :  { %v5232_v23 = vpop.eup %5231  ;;  %v827_v3 = vmax.f32 %v825_v54, %v826_v18  ;;  %v829_v41 = vrot.slane %v828_v0, 4  ;;  %v1472_v9 = vrot.slane %v1471_v55, 4  ;;  %v1125_v7 = vrot.slane %v1124_v17, 1 }
 0x215   :  { %v1129_v63 = vadd.f32 %v1128_v15, %v1127_v6  ;;  %v1770_v43 = vsel %vm1769_vm6, %v1736_v12, %v1768_v37  ;;  %v1231_v29 = vmul.f32 %v5232_v23, %v5795_v32  ;;  %v1469_v5 = vrot.slane %v1468_v2, 1 }
 0x216   :  { %v883_v11 = vsub.f32 %v5808_v61, %v827_v3  ;;  %v830_v45 = vmax.f32 %v828_v0, %v829_v41  ;;  %v1473_v60 = vadd.f32 %v1472_v9, %v1471_v55  ;;  %v534_v36 = vpop.f32.mrf.mxu3  ;;  %v1126_v32 = vadd.f32 %v1125_v7, %v1124_v17 }
 0x217   :  { %v1130_v59 = vrot.slane %v1129_v63, 2  ;;  %v5837_v42 = vadd.f32 %v5574_v53, %v534_v36  ;;  %v1339_v30 = vpop.f32.mrf.mxu0  ;;  %v1251_v62 = vpack.c.bf16 %v1231_v29, %v1230_v56  ;;  %v1470_v24 = vadd.f32 %v1469_v5, %v1468_v2 }
 0x218   :  { %v942_v40 = vmul.f32 1.442695, %v883_v11  ;;  %v831_v33 = vrot.slane %v830_v45, 2  ;;  %v1474_v19 = vrot.slane %v1473_v60, 2  ;;  %v1410_v25 = vmul.f32 %v1339_v30, %v5748_v57 }
 0x219   :  { %v5839_v37 = vpop.eup %5233  ;;  %v1131_v52 = vadd.f32 %v1130_v59, %v1129_v63  ;;  %v835_v61 = vsel %vm631_vm2, %v5837_v42, -inf  ;;  %v1664_v53 = vpack.c.bf16 %v1470_v24, %v1470_v24 }
 0x21a   :  { %v1134_v39 = vsel %vm631_vm2, %v5839_v37, 0.0  ;;  %5235 = vpow2.f32 %v942_v40  ;;  %v832_v35 = vmax.f32 %v830_v45, %v831_v33  ;;  %4258 = vmatmul.msk.bf16.gmra.mxu0 %vm631_vm2, %v1251_v62  ;;  %v1475_v22 = vadd.f32 %v1474_v19, %v1473_v60 }
 0x21b   :  { %v1132_v47 = vrot.slane %v1131_v52, 1  ;;  %v1135_v1 = vrot.slane %v1134_v39, 4  ;;  %v836_v48 = vrot.slane %v835_v61, 4  ;;  %v1737_v31 = vunpack.c.l.b16 %v1664_v53 }
 0x21c   :  { %v833_v38 = vrot.slane %v832_v35, 1  ;;  %v1478_v49 = vsel %vm112_vm1, %v1410_v25, 0.0  ;;  %v1476_v54 = vrot.slane %v1475_v22, 1  ;;  %5237 = vrcp.f32 %v1126_v32 }
 0x21d   :  { %v1133_v58 = vadd.f32 %v1132_v47, %v1131_v52  ;;  %v1136_v50 = vadd.f32 %v1135_v1, %v1134_v39  ;;  %v837_v10 = vmax.f32 %v835_v61, %v836_v48  ;;  %v1772_v17 = vsel %vm1771_vm7, %v1737_v31, %v1770_v43 }
 0x21e   :  { %v834_v44 = vmax.f32 %v832_v35, %v833_v38  ;;  %v1479_v46 = vrot.slane %v1478_v49, 4  ;;  %v537_v4 = vpop.f32.mrf.mxu3  ;;  %v1477_v18 = vadd.f32 %v1476_v54, %v1475_v22 }
 0x21f   :  { %v1137_v6 = vrot.slane %v1136_v50, 2  ;;  %v838_v0 = vrot.slane %v837_v10, 2  ;;  %v5850_v55 = vadd.f32 %v5586_v16, %v537_v4  ;;  %v1341_v15 = vpop.f32.mrf.mxu0  ;;  %5239 = vrcp.f32 %v1133_v58 }
 0x220   :  { %v5852_v12 = vpop.eup %5235  ;;  %v884_v56 = vsub.f32 %v5822_v28, %v834_v44  ;;  %v1480_v23 = vadd.f32 %v1479_v46, %v1478_v49  ;;  %v1411_v3 = vmul.f32 %v1341_v15, %v5748_v57  ;;  %v1665_v9 = vpack.c.bf16 %v1477_v18, %v1477_v18 }
 0x221   :  { %v1138_v2 = vadd.f32 %v1137_v6, %v1136_v50  ;;  %v1141_v41 = vsel %vm631_vm2, %v5852_v12, 0.0  ;;  %v839_v7 = vmax.f32 %v837_v10, %v838_v0  ;;  %v842_v16 = vsel %vm631_vm2, %v5850_v55, -inf }
 0x222   :  { %v1142_v63 = vrot.slane %v1141_v41, 4  ;;  %v944_v43 = vmul.f32 1.442695, %v884_v56  ;;  %v1481_v29 = vrot.slane %v1480_v23, 2  ;;  %v1738_v11 = vunpack.c.l.b16 %v1665_v9  ;;  %v5238_v28 = vpop.eup %5237 }
 0x223   :  { %v840_v5 = vrot.slane %v839_v7, 1  ;;  %v843_v45 = vrot.slane %v842_v16, 4  ;;  %v1485_v36 = vsel %vm112_vm1, %v1411_v3, 0.0  ;;  %v1139_v24 = vrot.slane %v1138_v2, 1 }
 0x224   :  { %v1143_v60 = vadd.f32 %v1142_v63, %v1141_v41  ;;  %5241 = vpow2.f32 %v944_v43  ;;  %v1482_v57 = vadd.f32 %v1481_v29, %v1480_v23  ;;  %v1486_v62 = vrot.slane %v1485_v36, 4 }
 0x225   :  { %v841_v59 = vmax.f32 %v839_v7, %v840_v5  ;;  %v844_v30 = vmax.f32 %v842_v16, %v843_v45  ;;  %v5240_v40 = vpop.eup %5239  ;;  %v1774_v52 = vsel %vm1773_vm8, %v1738_v11, %v1772_v17  ;;  %v1232_v22 = vmul.f32 %v5238_v28, %v5811_v26 }
 0x226   :  { %v1144_v33 = vrot.slane %v1143_v60, 2  ;;  %v1483_v19 = vrot.slane %v1482_v57, 1  ;;  %v539_v32 = vpop.f32.mrf.mxu3  ;;  %v1487_v39 = vadd.f32 %v1486_v62, %v1485_v36  ;;  %v1233_v49 = vmul.f32 %v5240_v40, %v5825_v34 }
 0x227   :  { %v885_v61 = vsub.f32 %v5837_v42, %v841_v59  ;;  %v845_v25 = vrot.slane %v844_v30, 2  ;;  %v5863_v53 = vpop.f32.mrf.mxu0  ;;  %v630_v1 = vadd.f32 %v5603_v51, %v539_v32  ;;  %v1140_v50 = vadd.f32 %v1139_v24, %v1138_v2 }
 0x228   :  { %v1145_v35 = vadd.f32 %v1144_v33, %v1143_v60  ;;  %v1484_v47 = vadd.f32 %v1483_v19, %v1482_v57  ;;  %v1488_v38 = vrot.slane %v1487_v39, 2  ;;  %v1252_v34 = vpack.c.bf16 %v1233_v49, %v1232_v22  ;;  %v226_v49 = vpop.f32.mrf.mxu2 }
 0x229   :  { %v946_v48 = vmul.f32 1.442695, %v885_v61  ;;  %v846_v31 = vmax.f32 %v844_v30, %v845_v25  ;;  %v849_v10 = vsel %vm631_vm2, %v630_v1, -inf }
 0x22a   :  { %v5868_v58 = vpop.eup %5241  ;;  %v1146_v42 = vrot.slane %v1145_v35, 1  ;;  %v1666_v54 = vpack.c.bf16 %v1484_v47, %v1484_v47  ;;  %v1489_v51 = vadd.f32 %v1488_v38, %v1487_v39  ;;  %v850_v6 = vrot.slane %v849_v10, 4  ;;  %4259 = vmatmul.msk.bf16.gmra.mxu0 %vm631_vm2, %v1252_v34 }
 0x22b   :  { %v1148_v17 = vsel %vm631_vm2, %v5868_v58, 0.0  ;;  %5243 = vpow2.f32 %v946_v48  ;;  %v847_v44 = vrot.slane %v846_v31, 1 }
 0x22c   :  { %v1147_v46 = vadd.f32 %v1146_v42, %v1145_v35  ;;  %v1149_v26 = vrot.slane %v1148_v17, 4  ;;  %v1739_v4 = vunpack.c.l.b16 %v1666_v54  ;;  %v1490_v0 = vrot.slane %v1489_v51, 1 }
 0x22d   :  { %v848_v18 = vmax.f32 %v846_v31, %v847_v44  ;;  %v851_v56 = vmax.f32 %v849_v10, %v850_v6  ;;  %v5889_v54 = vadd.f32 %v5739_v8, %v226_v49 }
 0x22e   :  { %v1150_v15 = vadd.f32 %v1149_v26, %v1148_v17  ;;  %5245 = vrcp.f32 %v1147_v46  ;;  %v1491_v3 = vadd.f32 %v1490_v0, %v1489_v51  ;;  %v1776_v41 = vsel %vm1775_vm9, %v1739_v4, %v1774_v52 }
 0x22f   :  { %v886_v23 = vsub.f32 %v5850_v55, %v848_v18  ;;  %v1346_v2 = vpop.f32.mrf.mxu0  ;;  %5247 = vrcp.f32 %v1140_v50  ;;  %v852_v7 = vrot.slane %v851_v56, 2  ;;  %v1412_v34 = vmul.f32 %v5863_v53, %v5889_v54 }
 0x230   :  { %v1151_v9 = vrot.slane %v1150_v15, 2  ;;  %v1667_v29 = vpack.c.bf16 %v1491_v3, %v1491_v3  ;;  %v1413_v46 = vmul.f32 %v1346_v2, %v5889_v54  ;;  %v1696_v2 = vld [vmem:[%s6912_s11 + $0x10] sm:$0xf] }
 0x231   :  { %v5244_v63 = vpop.eup %5243  ;;  %v948_v43 = vmul.f32 1.442695, %v886_v23  ;;  %v853_v11 = vmax.f32 %v851_v56, %v852_v7  ;;  %v1492_v53 = vsel %vm112_vm1, %v1412_v34, 0.0 }
 0x232   :  { %v1155_v16 = vsel %vm631_vm2, %v5244_v63, 0.0  ;;  %v1740_v45 = vunpack.c.l.b16 %v1667_v29  ;;  %v1152_v28 = vadd.f32 %v1151_v9, %v1150_v15 }
 0x233   :  { %v1156_v5 = vrot.slane %v1155_v16, 4  ;;  %5249 = vpow2.f32 %v948_v43  ;;  %v854_v60 = vrot.slane %v853_v11, 1 }
 0x234   :  { %v5246_v55 = vpop.eup %5245  ;;  %v5878_v36 = vsel %vm1777_vm10, %v1740_v45, %v1776_v41  ;;  %v1153_v33 = vrot.slane %v1152_v28, 1  ;;  %v1499_v41 = vsel %vm112_vm1, %v1413_v46, 0.0 }
 0x235   :  { %v1157_v57 = vadd.f32 %v1156_v5, %v1155_v16  ;;  %v5248_v59 = vpop.eup %5247  ;;  %v855_v30 = vmax.f32 %v853_v11, %v854_v60  ;;  %v1235_v24 = vmul.f32 %v5246_v55, %v5852_v12  ;;  %v1811_v16 = vunpack.c.l.b16 %v1696_v2 }
 0x236   :  { %v1234_v61 = vmul.f32 %v5248_v59, %v5839_v37  ;;  %v1154_v48 = vadd.f32 %v1153_v33, %v1152_v28  ;;  %v1500_v11 = vrot.slane %v1499_v41, 4  ;;  %v1493_v28 = vrot.slane %v1492_v53, 4 }
 0x237   :  { %v1158_v62 = vrot.slane %v1157_v57, 2  ;;  %v1349_v40 = vpop.f32.mrf.mxu0  ;;  %v887_v19 = vsub.f32 %v630_v1, %v855_v30  ;;  %v1814_v55 = vpack.c.b16 %v1811_v16, %v1811_v16 }
 0x238   :  { %v1253_v22 = vpack.c.bf16 %v1235_v24, %v1234_v61  ;;  %v1414_v4 = vmul.f32 %v1349_v40, %v5889_v54  ;;  %v1501_v40 = vadd.f32 %v1500_v11, %v1499_v41 }
 0x239   :  { %v5881_v32 = vpop.eup %5249  ;;  %v1159_v52 = vadd.f32 %v1158_v62, %v1157_v57  ;;  %v950_v39 = vmul.f32 1.442695, %v887_v19  ;;  %v1824_v62 = vsel %vm119_vm0, %v1814_v55, 0  ;;  %v4955_v19 = vld [vmem:[%s6912_s11 + $0x8] sm:$0xff] }
 0x23a   :  { %v1162_v25 = vsel %vm631_vm2, %v5881_v32, 0.0  ;;  %4260 = vmatmul.msk.bf16.gmra.mxu0 %vm631_vm2, %v1253_v22  ;;  %v1506_v7 = vsel %vm112_vm1, %v1414_v4, 0.0  ;;  %1831 = vmatpush.bf16.msrb.mxu1 %v1824_v62 }
 0x23b   :  { %v1160_v35 = vrot.slane %v1159_v52, 1  ;;  %v1163_v47 = vrot.slane %v1162_v25, 4  ;;  %5251 = vpow2.f32 %v950_v39  ;;  %v1507_v45 = vrot.slane %v1506_v7, 4 }
 0x23d   :  { %v1161_v31 = vadd.f32 %v1160_v35, %v1159_v52  ;;  %v1164_v38 = vadd.f32 %v1163_v47, %v1162_v25  ;;  %v1508_v24 = vadd.f32 %v1507_v45, %v1506_v7  ;;  %v1494_v52 = vadd.f32 %v1493_v28, %v1492_v53 }
 0x23e   :  { %v1502_v47 = vrot.slane %v1501_v40, 2  ;;  %1832 = vmatpush.bf16.msrb.mxu1 %v4955_v19 }
 0x23f   :  { %5253 = vrcp.f32 %v1161_v31  ;;  %v1165_v12 = vrot.slane %v1164_v38, 2  ;;  %v1351_v1 = vpop.f32.mrf.mxu0  ;;  %v1509_v31 = vrot.slane %v1508_v24, 2 }
 0x240   :  { %5255 = vrcp.f32 %v1154_v48  ;;  %v1415_v15 = vmul.f32 %v1351_v1, %v5889_v54 }
 0x241   :  { %v5252_v50 = vpop.eup %5251  ;;  %v1166_v37 = vadd.f32 %v1165_v12, %v1164_v38  ;;  %v4954_v38 = vld [vmem:[%s6912_s11] sm:$0xff]  ;;  %v1495_v12 = vrot.slane %v1494_v52, 2  ;;  %v1510_v46 = vadd.f32 %v1509_v31, %v1508_v24 }
 0x242   :  { %v1169_v42 = vsel %vm631_vm2, %v5252_v50, 0.0  ;;  %v1513_v29 = vsel %vm112_vm1, %v1415_v15, 0.0  ;;  %1833 = vmatpush.bf16.msrb.mxu1 %v4954_v38 }
 0x243   :  { %v1170_v10 = vrot.slane %v1169_v42, 4  ;;  %v1167_v26 = vrot.slane %v1166_v37, 1  ;;  %v1514_v60 = vrot.slane %v1513_v29, 4  ;;  %v1496_v4 = vadd.f32 %v1495_v12, %v1494_v52 }
 0x245   :  { %v5254_v17 = vpop.eup %5253  ;;  %v1171_v51 = vadd.f32 %v1170_v10, %v1169_v42  ;;  %v1168_v9 = vadd.f32 %v1167_v26, %v1166_v37  ;;  %v1515_v61 = vadd.f32 %v1514_v60, %v1513_v29  ;;  %v229_v29 = vpop.f32.mrf.mxu2 }
 0x246   :  { %v5256_v44 = vpop.eup %5255  ;;  %v1237_v18 = vmul.f32 %v5254_v17, %v5244_v63  ;;  %v1503_v17 = vadd.f32 %v1502_v47, %v1501_v40  ;;  %v5923_v60 = vadd.f32 %v5739_v8, %v229_v29 }
 0x247   :  { %v1354_v6 = vpop.f32.mrf.mxu0  ;;  %v1172_v0 = vrot.slane %v1171_v51, 2  ;;  %v1236_v23 = vmul.f32 %v5256_v44, %v5868_v58  ;;  %5257 = vrcp.f32 %v1168_v9  ;;  %v1516_v1 = vrot.slane %v1515_v61, 2 }
 0x248   :  { %v1416_v56 = vmul.f32 %v1354_v6, %v5889_v54  ;;  %v1504_v15 = vrot.slane %v1503_v17, 1 }
 0x249   :  { %v1173_v3 = vadd.f32 %v1172_v0, %v1171_v51  ;;  %v1254_v63 = vpack.c.bf16 %v1237_v18, %v1236_v23  ;;  %v1517_v6 = vadd.f32 %v1516_v1, %v1515_v61 }
 0x24a   :  { %v1520_v58 = vsel %vm112_vm1, %v1416_v56, 0.0 }
 0x24b   :  { %v1174_v43 = vrot.slane %v1173_v3, 1  ;;  %4261 = vmatmul.msk.bf16.gmra.mxu0 %vm631_vm2, %v1254_v63  ;;  %v1521_v59 = vrot.slane %v1520_v58, 4  ;;  %v1518_v41 = vrot.slane %v1517_v6, 1  ;;  %v1505_v63 = vadd.f32 %v1504_v15, %v1503_v17 }
 0x24d   :  { %v1175_v5 = vadd.f32 %v1174_v43, %v1173_v3  ;;  %v1522_v39 = vadd.f32 %v1521_v59, %v1520_v58  ;;  %v5258_v35 = vpop.eup %5257  ;;  %v1497_v3 = vrot.slane %v1496_v4, 1 }
 0x24e   :  { %v1238_v51 = vmul.f32 %v5258_v35, %v5881_v32 }
 0x24f   :  { %v1356_v57 = vpop.f32.mrf.mxu0  ;;  %5259 = vrcp.f32 %v1175_v5  ;;  %v1523_v42 = vrot.slane %v1522_v39, 2  ;;  %v1498_v58 = vadd.f32 %v1497_v3, %v1496_v4  ;;  %v1519_v5 = vadd.f32 %v1518_v41, %v1517_v6 }
 0x250   :  { %v1417_v30 = vmul.f32 %v1356_v57, %v5889_v54  ;;  %v1669_v57 = vpack.c.bf16 %v1505_v63, %v1505_v63 }
 0x251   :  { %v1524_v34 = vadd.f32 %v1523_v42, %v1522_v39  ;;  %v1668_v40 = vpack.c.bf16 %v1498_v58, %v1498_v58  ;;  %v1671_v24 = vpack.c.bf16 %v1519_v5, %v1519_v5 }
 0x252   :  { %v1527_v33 = vsel %vm112_vm1, %v1417_v30, 0.0 }
 0x253   :  { %v1528_v25 = vrot.slane %v1527_v33, 4  ;;  %v1525_v32 = vrot.slane %v1524_v34, 1  ;;  %v1744_v31 = vunpack.c.l.b16 %v1671_v24 }
 0x255   :  { %v1529_v22 = vadd.f32 %v1528_v25, %v1527_v33  ;;  %v5260_v48 = vpop.eup %5259  ;;  %v1526_v28 = vadd.f32 %v1525_v32, %v1524_v34  ;;  %v1742_v25 = vunpack.c.l.b16 %v1669_v57 }
 0x256   :  { %v1239_v37 = vmul.f32 %v5260_v48, %v5252_v50  ;;  %v1511_v50 = vrot.slane %v1510_v46, 1  ;;  %v1741_v48 = vunpack.c.l.b16 %v1668_v40 }
 0x257   :  { %v1359_v49 = vpop.f32.mrf.mxu0  ;;  %v1530_v44 = vrot.slane %v1529_v22, 2  ;;  %v1672_v52 = vpack.c.bf16 %v1526_v28, %v1526_v28 }
 0x258   :  { %v1418_v10 = vmul.f32 %v1359_v49, %v5889_v54  ;;  %v1255_v0 = vpack.c.bf16 %v1239_v37, %v1238_v51  ;;  %v1512_v16 = vadd.f32 %v1511_v50, %v1510_v46  ;;  %v1779_v49 = vsel %vm1765_vm4, %v1742_v25, %v1741_v48 }
 0x259   :  { %v1531_v56 = vadd.f32 %v1530_v44, %v1529_v22  ;;  %v1745_v12 = vunpack.c.l.b16 %v1672_v52 }
 0x25a   :  { %v1534_v26 = vsel %vm112_vm1, %v1418_v10, 0.0  ;;  %v1670_v62 = vpack.c.bf16 %v1512_v16, %v1512_v16 }
 0x25b   :  { %v1535_v18 = vrot.slane %v1534_v26, 4  ;;  %4262 = vmatmul.msk.bf16.gmra.mxu0 %vm631_vm2, %v1255_v0  ;;  %v1532_v43 = vrot.slane %v1531_v56, 1 }
 0x25c   :  { %v1743_v47 = vunpack.c.l.b16 %v1670_v62 }
 0x25d   :  { %v1536_v23 = vadd.f32 %v1535_v18, %v1534_v26  ;;  %v1533_v59 = vadd.f32 %v1532_v43, %v1531_v56 }
 0x25e   :  { %v1780_v10 = vsel %vm1767_vm5, %v1743_v47, %v1779_v49 }
 0x25f   :  { %v1537_v2 = vrot.slane %v1536_v23, 2  ;;  %v1361_v9 = vpop.f32.mrf.mxu0  ;;  %v1673_v39 = vpack.c.bf16 %v1533_v59, %v1533_v59  ;;  %v1781_v44 = vsel %vm1769_vm6, %v1744_v31, %v1780_v10 }
 0x260   :  { %v1419_v7 = vmul.f32 %v1361_v9, %v5889_v54  ;;  %v1782_v26 = vsel %vm1771_vm7, %v1745_v12, %v1781_v44 }
 0x261   :  { %v1538_v53 = vadd.f32 %v1537_v2, %v1536_v23  ;;  %v1746_v37 = vunpack.c.l.b16 %v1673_v39 }
 0x262   :  { %v1541_v11 = vsel %vm112_vm1, %v1419_v7, 0.0 }
 0x263   :  { %v1539_v45 = vrot.slane %v1538_v53, 1  ;;  %v1542_v55 = vrot.slane %v1541_v11, 4  ;;  %v1783_v0 = vsel %vm1773_vm8, %v1746_v37, %v1782_v26 }
 0x265   :  { %v1543_v30 = vadd.f32 %v1542_v55, %v1541_v11  ;;  %v1540_v54 = vadd.f32 %v1539_v45, %v1538_v53 }
 0x267   :  { %v1544_v33 = vrot.slane %v1543_v30, 2  ;;  %v1364_v19 = vpop.f32.mrf.mxu0  ;;  %v1674_v22 = vpack.c.bf16 %v1540_v54, %v1540_v54 }
 0x268   :  { %v1420_v61 = vmul.f32 %v1364_v19, %v5923_v60 }
 0x269   :  { %v1545_v35 = vadd.f32 %v1544_v33, %v1543_v30  ;;  %v1747_v17 = vunpack.c.l.b16 %v1674_v22 }
 0x26a   :  { %v1548_v8 = vsel %vm112_vm1, %v1420_v61, 0.0 }
 0x26b   :  { %v1546_v38 = vrot.slane %v1545_v35, 1  ;;  %v1549_v1 = vrot.slane %v1548_v8, 4  ;;  %v1784_v15 = vsel %vm1775_vm9, %v1747_v17, %v1783_v0 }
 0x26d   :  { %v1547_v42 = vadd.f32 %v1546_v38, %v1545_v35  ;;  %v1550_v4 = vadd.f32 %v1549_v1, %v1548_v8 }
 0x26f   :  { %v1675_v51 = vpack.c.bf16 %v1547_v42, %v1547_v42  ;;  %v1366_v46 = vpop.f32.mrf.mxu0  ;;  %v1551_v50 = vrot.slane %v1550_v4, 2 }
 0x270   :  { %v1421_v6 = vmul.f32 %v1366_v46, %v5923_v60 }
 0x271   :  { %v1748_v18 = vunpack.c.l.b16 %v1675_v51  ;;  %v1552_v32 = vadd.f32 %v1551_v50, %v1550_v4 }
 0x272   :  { %v1555_v34 = vsel %vm112_vm1, %v1421_v6, 0.0 }
 0x273   :  { %v1556_v56 = vrot.slane %v1555_v34, 4  ;;  %v1785_v23 = vsel %vm1777_vm10, %v1748_v18, %v1784_v15  ;;  %v1553_v16 = vrot.slane %v1552_v32, 1 }
 0x274   :  { %v1800_v3 = vpack.c.b16 %v1785_v23, %v5878_v36 }
 0x275   :  { %v1557_v41 = vadd.f32 %v1556_v56, %v1555_v34  ;;  %v1554_v55 = vadd.f32 %v1553_v16, %v1552_v32 }
 0x276   :  { %4271 = vmatmul.msk.bf16.vlgmr.msrb.gmra.mxu1 %vm112_vm1, %v1800_v3 }
 0x277   :  { %v1558_v2 = vrot.slane %v1557_v41, 2  ;;  %v1369_v9 = vpop.f32.mrf.mxu0  ;;  %v1676_v54 = vpack.c.bf16 %v1554_v55, %v1554_v55 }
 0x278   :  { %v1422_v7 = vmul.f32 %v1369_v9, %v5923_v60 }
 0x279   :  { %v1559_v63 = vadd.f32 %v1558_v2, %v1557_v41  ;;  %v1749_v25 = vunpack.c.l.b16 %v1676_v54  ;;  %v5279_v54 = vld [vmem:[%s6911_s8] ss:$0 sm:$0xff] }
 0x27a   :  { %v1562_v43 = vsel %vm112_vm1, %v1422_v7, 0.0 }
 0x27b   :  { %v1560_v53 = vrot.slane %v1559_v63, 1  ;;  %v1563_v29 = vrot.slane %v1562_v43, 4 }
 0x27d   :  { %v1564_v11 = vadd.f32 %v1563_v29, %v1562_v43  ;;  %v1561_v58 = vadd.f32 %v1560_v53, %v1559_v63 }
 0x27f   :  { %v1565_v5 = vrot.slane %v1564_v11, 2  ;;  %v1371_v45 = vpop.f32.mrf.mxu0  ;;  %v1677_v57 = vpack.c.bf16 %v1561_v58, %v1561_v58 }
 0x280   :  { %v1423_v36 = vmul.f32 %v1371_v45, %v5923_v60 }
 0x281   :  { %v1566_v28 = vadd.f32 %v1565_v5, %v1564_v11  ;;  %v1750_v33 = vunpack.c.l.b16 %v1677_v57 }
 0x282   :  { %v1569_v59 = vsel %vm112_vm1, %v1423_v36, 0.0 }
 0x283   :  { %v1567_v30 = vrot.slane %v1566_v28, 1  ;;  %v1570_v62 = vrot.slane %v1569_v59, 4  ;;  %v1786_v22 = vsel %vm1765_vm4, %v1750_v33, %v1749_v25 }
 0x285   :  { %v1568_v40 = vadd.f32 %v1567_v30, %v1566_v28  ;;  %v1571_v24 = vadd.f32 %v1570_v62, %v1569_v59  ;;  %v231_v62 = vpop.f32.mrf.mxu2 }
 0x287   :  { %v1678_v19 = vpack.c.bf16 %v1568_v40, %v1568_v40  ;;  %v1572_v52 = vrot.slane %v1571_v24, 2  ;;  %v1374_v61 = vpop.f32.mrf.mxu0  ;;  %v232_v40 = vadd.f32 %v5279_v54, %v231_v62 }
 0x288   :  { %v1424_v39 = vmul.f32 %v1374_v61, %v5923_v60 }
 0x289   :  { %v1751_v35 = vunpack.c.l.b16 %v1678_v19  ;;  %v1573_v47 = vadd.f32 %v1572_v52, %v1571_v24 }
 0x28a   :  { %v1576_v8 = vsel %vm112_vm1, %v1424_v39, 0.0 }
 0x28b   :  { %v1787_v48 = vsel %vm1767_vm5, %v1751_v35, %v1786_v22  ;;  %v1574_v31 = vrot.slane %v1573_v47, 1  ;;  %v1577_v38 = vrot.slane %v1576_v8, 4 }
 0x28d   :  { %v1578_v12 = vadd.f32 %v1577_v38, %v1576_v8  ;;  %v1575_v1 = vadd.f32 %v1574_v31, %v1573_v47 }
 0x28f   :  { %v1579_v49 = vrot.slane %v1578_v12, 2  ;;  %v1376_v37 = vpop.f32.mrf.mxu0  ;;  %v1679_v17 = vpack.c.bf16 %v1575_v1, %v1575_v1 }
 0x290   :  { %v1425_v42 = vmul.f32 %v1376_v37, %v5923_v60 }
 0x291   :  { %v1580_v10 = vadd.f32 %v1579_v49, %v1578_v12  ;;  %v1752_v6 = vunpack.c.l.b16 %v1679_v17 }
 0x292   :  { %v1583_v44 = vsel %vm112_vm1, %v1425_v42, 0.0 }
 0x293   :  { %v1581_v51 = vrot.slane %v1580_v10, 1  ;;  %v1584_v46 = vrot.slane %v1583_v44, 4  ;;  %v1788_v3 = vsel %vm1769_vm6, %v1752_v6, %v1787_v48 }
 0x295   :  { %v1582_v26 = vadd.f32 %v1581_v51, %v1580_v10  ;;  %v1585_v4 = vadd.f32 %v1584_v46, %v1583_v44 }
 0x297   :  { %v1680_v18 = vpack.c.bf16 %v1582_v26, %v1582_v26  ;;  %v1586_v0 = vrot.slane %v1585_v4, 2  ;;  %v1379_v34 = vpop.f32.mrf.mxu0 }
 0x298   :  { %v1426_v15 = vmul.f32 %v1379_v34, %v5923_v60 }
 0x299   :  { %v1753_v56 = vunpack.c.l.b16 %v1680_v18  ;;  %v1587_v23 = vadd.f32 %v1586_v0, %v1585_v4 }
 0x29a   :  { %v1590_v50 = vsel %vm112_vm1, %v1426_v15, 0.0 }
 0x29b   :  { %v1588_v41 = vrot.slane %v1587_v23, 1  ;;  %v1591_v2 = vrot.slane %v1590_v50, 4  ;;  %v1789_v9 = vsel %vm1771_vm7, %v1753_v56, %v1788_v3 }
 0x29d   :  { %v1592_v32 = vadd.f32 %v1591_v2, %v1590_v50  ;;  %v1589_v7 = vadd.f32 %v1588_v41, %v1587_v23 }
 0x29f   :  { %v1593_v63 = vrot.slane %v1592_v32, 2  ;;  %v1681_v53 = vpack.c.bf16 %v1589_v7, %v1589_v7  ;;  %v1381_v29 = vpop.f32.mrf.mxu0 }
 0x2a0   :  { %v1427_v35 = vmul.f32 %v1381_v29, %v5923_v60 }
 0x2a1   :  { %v1594_v43 = vadd.f32 %v1593_v63, %v1592_v32  ;;  %v1754_v58 = vunpack.c.l.b16 %v1681_v53 }
 0x2a2   :  { %v1597_v12 = vsel %vm112_vm1, %v1427_v35, 0.0 }
 0x2a3   :  { %v1595_v16 = vrot.slane %v1594_v43, 1  ;;  %v1790_v55 = vsel %vm1773_vm8, %v1754_v58, %v1789_v9  ;;  %v1598_v44 = vrot.slane %v1597_v12, 4 }
 0x2a5   :  { %v1596_v11 = vadd.f32 %v1595_v16, %v1594_v43  ;;  %v1599_v34 = vadd.f32 %v1598_v44, %v1597_v12 }
 0x2a7   :  { %v1682_v5 = vpack.c.bf16 %v1596_v11, %v1596_v11  ;;  %v1384_v28 = vpop.f32.mrf.mxu0  ;;  %v1600_v32 = vrot.slane %v1599_v34, 2 }
 0x2a8   :  { %v1428_v52 = vmul.f32 %v1384_v28, %v232_v40 }
 0x2a9   :  { %v1755_v45 = vunpack.c.l.b16 %v1682_v5 }
 0x2aa   :  { %v1604_v22 = vsel %vm112_vm1, %v1428_v52, 0.0 }
 0x2ab   :  { %v5954_v36 = vsel %vm1775_vm9, %v1755_v45, %v1790_v55  ;;  %v1605_v1 = vrot.slane %v1604_v22, 4  ;;  %v1601_v45 = vadd.f32 %v1600_v32, %v1599_v34 }
 0x2ad   :  { %v1606_v46 = vadd.f32 %v1605_v1, %v1604_v22  ;;  %v1602_v52 = vrot.slane %v1601_v45, 1 }
 0x2af   :  { %v1386_v57 = vpop.f32.mrf.mxu0  ;;  %v1607_v56 = vrot.slane %v1606_v46, 2 }
 0x2b0   :  { %v1429_v24 = vmul.f32 %v1386_v57, %v232_v40 }
 0x2b1   :  { %v1608_v43 = vadd.f32 %v1607_v56, %v1606_v46 }
 0x2b2   :  { %v1611_v39 = vsel %vm112_vm1, %v1429_v24, 0.0 }
 0x2b3   :  { %v1612_v48 = vrot.slane %v1611_v39, 4  ;;  %v1609_v28 = vrot.slane %v1608_v43, 1 }
 0x2b5   :  { %v1613_v17 = vadd.f32 %v1612_v48, %v1611_v39  ;;  %v1610_v39 = vadd.f32 %v1609_v28, %v1608_v43 }
 0x2b7   :  { %v1389_v59 = vpop.f32.mrf.mxu0  ;;  %v1614_v18 = vrot.slane %v1613_v17, 2 }
 0x2b8   :  { %v1430_v33 = vmul.f32 %v1389_v59, %v232_v40 }
 0x2b9   :  { %v1615_v2 = vadd.f32 %v1614_v18, %v1613_v17 }
 0x2ba   :  { %v1618_v47 = vsel %vm112_vm1, %v1430_v33, 0.0 }
 0x2bb   :  { %v1619_v38 = vrot.slane %v1618_v47, 4  ;;  %v1616_v11 = vrot.slane %v1615_v2, 1 }
 0x2bd   :  { %v1620_v60 = vadd.f32 %v1619_v38, %v1618_v47  ;;  %v1617_v24 = vadd.f32 %v1616_v11, %v1615_v2 }
 0x2bf   :  { %v1391_v30 = vpop.f32.mrf.mxu0  ;;  %v1621_v15 = vrot.slane %v1620_v60, 2  ;;  %v1685_v48 = vpack.c.bf16 %v1617_v24, %v1617_v24 }
 0x2c0   :  { %v1431_v61 = vmul.f32 %v1391_v30, %v232_v40 }
 0x2c1   :  { %v1622_v7 = vadd.f32 %v1621_v15, %v1620_v60  ;;  %v1758_v17 = vunpack.c.l.b16 %v1685_v48 }
 0x2c2   :  { %v1625_v8 = vsel %vm112_vm1, %v1431_v61, 0.0 }
 0x2c3   :  { %v1626_v49 = vrot.slane %v1625_v8, 4  ;;  %v1623_v55 = vrot.slane %v1622_v7, 1 }
 0x2c5   :  { %v1627_v26 = vadd.f32 %v1626_v49, %v1625_v8  ;;  %v1624_v61 = vadd.f32 %v1623_v55, %v1622_v7  ;;  %v1603_v49 = vadd.f32 %v1602_v52, %v1601_v45 }
 0x2c7   :  { %v1628_v23 = vrot.slane %v1627_v26, 2  ;;  %v1686_v12 = vpack.c.bf16 %v1624_v61, %v1624_v61 }
 0x2c8   :  { %v1394_v19 = vpop.f32.mrf.mxu0 }
 0x2c9   :  { %v1432_v25 = vmul.f32 %v1394_v19, %v232_v40  ;;  %v1629_v53 = vadd.f32 %v1628_v23, %v1627_v26  ;;  %v1683_v26 = vpack.c.bf16 %v1603_v49, %v1603_v49 }
 0x2cb   :  { %v1632_v31 = vsel %vm112_vm1, %v1432_v25, 0.0  ;;  %v1630_v57 = vrot.slane %v1629_v53, 1  ;;  %v1756_v7 = vunpack.c.l.b16 %v1683_v26 }
 0x2cc   :  { %v1633_v42 = vrot.slane %v1632_v31, 4 }
 0x2cd   :  { %v1631_v35 = vadd.f32 %v1630_v57, %v1629_v53  ;;  %v1792_v11 = vsel %vm1777_vm10, %v1756_v7, %v5954_v36  ;;  %v4397_v7 = vld [vmem:[%s6916_s15 + $0xf8] sm:$0xf0] }
 0x2ce   :  { %v1634_v6 = vadd.f32 %v1633_v42, %v1632_v31 }
 0x2d0   :  { %v1396_v37 = vpop.f32.mrf.mxu0  ;;  %v1635_v3 = vrot.slane %v1634_v6, 2 }
 0x2d1   :  { %v1433_v10 = vmul.f32 %v1396_v37, %v232_v40  ;;  %v1684_v37 = vpack.c.bf16 %v1610_v39, %v1610_v39 }
 0x2d2   :  { %v1636_v16 = vadd.f32 %v1635_v3, %v1634_v6 }
 0x2d3   :  { %v1639_v51 = vsel %vm112_vm1, %v1433_v10, 0.0 }
 0x2d4   :  { %v1640_v4 = vrot.slane %v1639_v51, 4  ;;  %v1637_v62 = vrot.slane %v1636_v16, 1 }
 0x2d6   :  { %v1641_v0 = vadd.f32 %v1640_v4, %v1639_v51  ;;  %v1638_v8 = vadd.f32 %v1637_v62, %v1636_v16  ;;  %v1759_v51 = vunpack.c.l.b16 %v1686_v12  ;;  %v1757_v4 = vunpack.c.l.b16 %v1684_v37 }
 0x2d8   :  { %v1399_v50 = vpop.f32.mrf.mxu0  ;;  %v1642_v9 = vrot.slane %v1641_v0, 2  ;;  %v1688_v10 = vpack.c.bf16 %v1638_v8, %v1638_v8  ;;  %v1793_v15 = vsel %vm1765_vm4, %v1758_v17, %v1757_v4 }
 0x2d9   :  { %v1434_v41 = vmul.f32 %v1399_v50, %v232_v40  ;;  %v1794_v50 = vsel %vm1767_vm5, %v1759_v51, %v1793_v15 }
 0x2da   :  { %v1643_v58 = vadd.f32 %v1642_v9, %v1641_v0  ;;  %v5126_v0 = vld [vmem:[%s6913_s12] ss:$0 sm:$0xff]  ;;  %v1761_v34 = vunpack.c.l.b16 %v1688_v10 }
 0x2db   :  { %v1646_v63 = vsel %vm112_vm1, %v1434_v41, 0.0 }
 0x2dc   :  { %v1647_v29 = vrot.slane %v1646_v63, 4  ;;  %v1644_v33 = vrot.slane %v1643_v58, 1 }
 0x2de   :  { %v1648_v5 = vadd.f32 %v1647_v29, %v1646_v63  ;;  %v1645_v31 = vadd.f32 %v1644_v33, %v1643_v58 }
 0x2e0   :  { %v1649_v59 = vrot.slane %v1648_v5, 2  ;;  %v1401_v30 = vpop.f32.mrf.mxu0  ;;  %v1689_v44 = vpack.c.bf16 %v1645_v31, %v1645_v31 }
 0x2e1   :  { %v1435_v54 = vmul.f32 %v1401_v30, %v232_v40  ;;  %v1687_v40 = vpack.c.bf16 %v1631_v35, %v1631_v35 }
 0x2e2   :  { %v1650_v19 = vadd.f32 %v1649_v59, %v1648_v5  ;;  %v1762_v56 = vunpack.c.l.b16 %v1689_v44 }
 0x2e3   :  { %v1653_v25 = vsel %vm112_vm1, %v1435_v54, 0.0  ;;  %v1760_v6 = vunpack.c.l.b16 %v1687_v40 }
 0x2e4   :  { %v1651_v47 = vrot.slane %v1650_v19, 1  ;;  %v1654_v22 = vrot.slane %v1653_v25, 4 }
 0x2e5   :  { %v1795_v2 = vsel %vm1769_vm6, %v1760_v6, %v1794_v50  ;;  %v4339_v50 = vld [vmem:[%s6916_s15 + $0x80] sm:$0xf] }
 0x2e6   :  { %v1655_v38 = vadd.f32 %v1654_v22, %v1653_v25  ;;  %v1652_v1 = vadd.f32 %v1651_v47, %v1650_v19  ;;  %v1796_v63 = vsel %vm1771_vm7, %v1761_v34, %v1795_v2 }
 0x2e7   :  { %v1797_v53 = vsel %vm1773_vm8, %v1762_v56, %v1796_v63 }
 0x2e8   :  { %v1656_v42 = vrot.slane %v1655_v38, 2  ;;  %v1690_v46 = vpack.c.bf16 %v1652_v1, %v1652_v1 }
 0x2ea   :  { %v1657_v60 = vadd.f32 %v1656_v42, %v1655_v38  ;;  %v1763_v3 = vunpack.c.l.b16 %v1690_v46  ;;  %v1994_v42 = vld [vmem:[%s6916_s15 + $0x100] sm:$0xff] }
 0x2eb   :  { %v2142_v17 = vunpack.c.l.b16 %v1994_v42  ;;  %v2143_v44 = vunpack.c.h.b16 %v1994_v42  ;;  %v6075_v42 = vld [vmem:[%s6915_s14] ss:$0 sm:$0xff] }
 0x2ec   :  { %v1658_v18 = vrot.slane %v1657_v60, 1  ;;  %v1798_v16 = vsel %vm1775_vm9, %v1763_v3, %v1797_v53  ;;  %v4980_v3 = vld [vmem:[%s6916_s15 + $0xbc] sm:$0xf0] }
 0x2ed   :  { %v2190_v4 = vpack.c.b16 %v2142_v17, %v2142_v17  ;;  %v2191_v6 = vpack.c.b16 %v2143_v44, %v2143_v44  ;;  %v4340_v2 = vor.u32 %v4980_v3, %v4339_v50  ;;  %v4994_v50 = vld [vmem:[%s6917_s17 + $0x30] sm:$0xff] }
 0x2ee   :  { %v1659_v23 = vadd.f32 %v1658_v18, %v1657_v60 }
 0x2ef   :  { %v2245_v34 = vsel %vm119_vm0, %v2190_v4, 0  ;;  %v2248_v15 = vsel %vm119_vm0, %v2191_v6, 0  ;;  %v1995_v4 = vld [vmem:[%s6916_s15 + $0x108] sm:$0xff] }
 0x2f0   :  { %v1691_v9 = vpack.c.bf16 %v1659_v23, %v1659_v23  ;;  %2297 = vmatpush.bf16.msrb.mxu2 %v2245_v34  ;;  %2316 = vmatpush.bf16.msra.mxu1 %v2248_v15  ;;  %v2144_v6 = vunpack.c.l.b16 %v1995_v4  ;;  %v2145_v3 = vunpack.c.h.b16 %v1995_v4 }
 0x2f2   :  { %v1764_v43 = vunpack.c.l.b16 %v1691_v9  ;;  %v4341_v9 = vld [vmem:[%s6916_s15 + $0xc0] sm:$0xf0]  ;;  %v2192_v15 = vpack.c.b16 %v2144_v6, %v2144_v6  ;;  %v4291_v6 = vld [vmem:[%s6916_s15 + $0x10] sm:$0xf] }
 0x2f3   :  { %v1835_v41 = vpop.f32.mrf.mxu1 }
 0x2f4   :  { %v1836_v32 = vadd.f32 %v5126_v0, %v1835_v41  ;;  %v1799_v58 = vsel %vm1777_vm10, %v1764_v43, %v1798_v16  ;;  %v4972_v41 = vld [vmem:[%s6916_s15 + $0x84] sm:$0xf]  ;;  %2298 = vmatpush.bf16.msrb.mxu2 %v4340_v2  ;;  %v2251_v2 = vsel %vm119_vm0, %v2192_v15, 0 }
 0x2f5   :  { %v1801_v45 = vpack.c.b16 %v1799_v58, %v1792_v11  ;;  %v4344_v43 = vor.u32 %v4972_v41, %v4341_v9  ;;  %v4275_v58 = vld [vmem:[%s6916_s15] sm:$0xf]  ;;  %v2193_v9 = vpack.c.b16 %v2145_v3, %v2145_v3 }
 0x2f6   :  { %v1845_v29 = vadd.f32 %v1836_v32, %v5425_v13  ;;  %v5280_v13 = vmov 40.0   ;;  %v4979_v32 = vld [vmem:[%s6916_s15 + $0xbc] sm:$0xf] }
 0x2f7   :  { %4272 = vmatmul.msk.bf16.gmra.mxu1 %vm112_vm1, %v1801_v45  ;;  %5261 = vrcp.f32 %v5280_v13  ;;  %v4400_v53 = vor.u32 %v4979_v32, %v4397_v7  ;;  %v4956_v45 = vld [vmem:[%s6916_s15 + $0x4] sm:$0xf]  ;;  %v4973_v32 = vld [vmem:[%s6916_s15 + $0x8c] sm:$0xf] }
 0x2f8   :  { %v1849_v5 = vsel %vm112_vm1, %v1845_v29, 0.0  ;;  %2317 = vmatpush.bf16.msra.mxu1 %v4344_v43  ;;  %v4349_v7 = vld [vmem:[%s6916_s15 + $0xc8] sm:$0xf0] }
 0x2f9   :  { %1850 = vadd.xlane.f32.xlu2 %v1849_v5  ;;  %v4964_v5 = vld [vmem:[%s6916_s15 + $0x3c] sm:$0xf0] }
 0x2fb   :  { %v1837_v55 = vpop.f32.mrf.mxu1 }
 0x2fc   :  { %v1838_v28 = vadd.f32 %v5126_v0, %v1837_v55  ;;  %v4276_v55 = vor.u32 %v4964_v5, %v4275_v58  ;;  %v4965_v58 = vld [vmem:[%s6916_s15 + $0x44] sm:$0xf0] }
 0x2fd   :  { %v5262_v30 = vpop.eup %5261  ;;  %v4993_v5 = vld [vmem:[%s6917_s17 + $0x28] sm:$0xff] }
 0x2fe   :  { %v1846_v57 = vadd.f32 %v1838_v28, %v5427_v14  ;;  %v1862_v62 = vmul.f32 40.0, %v5262_v30  ;;  %vm1866_vm11 = vweird.f32 %v5262_v30  ;;  %v4277_v28 = vld [vmem:[%s6916_s15 + $0x40] sm:$0xf0]  ;;  %2299 = vmatpush.bf16.msrb.mxu2 %v4276_v55 }
 0x300   :  { %v1852_v59 = vsel %vm112_vm1, %v1846_v57, 0.0  ;;  %v1863_v36 = vsub.f32 1.0, %v1862_v62 }
 0x301   :  { %1853 = vadd.xlane.f32.xlu0 %v1852_v59  ;;  %v4333_v59 = vld [vmem:[%s6916_s15 + $0x78] sm:$0xf0] }
 0x302   :  { %v1864_v54 = vmul.f32 %v5262_v30, %v1863_v36  ;;  %2335 = vmatpush.bf16.msra.mxu2 %v2251_v2  ;;  %v4293_v2 = vld [vmem:[%s6916_s15 + $0x50] sm:$0xf0] }
 0x304   :  { %v1865_v24 = vadd.f32 %v5262_v30, %v1864_v54 }
 0x306   :  { %v5986_v33 = vsel %vm1866_vm11, %v5262_v30, %v1865_v24  ;;  %v4280_v30 = vor.u32 %v4956_v45, %v4277_v28  ;;  %v4352_v45 = vor.u32 %v4973_v32, %v4349_v7  ;;  %v1997_v7 = vld [vmem:[%s6916_s15 + $0x118] sm:$0xff] }
 0x308   :  { %2318 = vmatpush.bf16.msra.mxu1 %v4280_v30  ;;  %v4992_v30 = vld [vmem:[%s6917_s17 + $0x20] sm:$0xff] }
 0x36c   :  { %v1851_v8 = vpop.xlane.xlu2 %1850 }
 0x36d   :  { %v1868_v31 = vmul.f32 %v5986_v33, %v1851_v8 }
 0x36f   :  { %v5998_v1 = vsub.f32 %v1845_v29, %v1868_v31 }
 0x374   :  { %v1854_v19 = vpop.xlane.xlu0 %1853  ;;  %v1840_v25 = vpop.f32.mrf.mxu1 }
 0x375   :  { %v1869_v52 = vmul.f32 %v5986_v33, %v1854_v19  ;;  %v1841_v14 = vadd.f32 %v5126_v0, %v1840_v25 }
 0x377   :  { %v5989_v61 = vsub.f32 %v1846_v57, %v1869_v52  ;;  %v1847_v35 = vadd.f32 %v1841_v14, %v5449_v20  ;;  %v1876_v20 = vmul.f32 %v5998_v1, %v5998_v1  ;;  %v4963_v57 = vld [vmem:[%s6916_s15 + $0x3c] sm:$0xf] }
 0x378   :  { %v4336_v62 = vor.u32 %v4963_v57, %v4333_v59 }
 0x379   :  { %v1877_v39 = vmul.f32 %v5989_v61, %v5989_v61  ;;  %v1855_v22 = vsel %vm112_vm1, %v1847_v35, 0.0  ;;  %v1880_v37 = vsel %vm112_vm1, %v1876_v20, 0.0 }
 0x37a   :  { %1856 = vadd.xlane.f32.xlu1 %v1855_v22 }
 0x37b   :  { %v1883_v47 = vsel %vm112_vm1, %v1877_v39, 0.0 }
 0x37c   :  { %1884 = vadd.xlane.f32.xlu0 %v1883_v47  ;;  %v1842_v48 = vpop.f32.mrf.mxu1 }
 0x37d   :  { %v1843_v38 = vadd.f32 %v5126_v0, %v1842_v48 }
 0x37f   :  { %v1848_v12 = vadd.f32 %v1843_v38, %v5451_v21  ;;  %v6010_v21 = vld [vmem:[%s6916_s15 + $0x138] sm:$0xff] }
 0x380   :  { %v2157_v60 = vunpack.c.h.b16 %v6010_v21 }
 0x381   :  { %v1858_v49 = vsel %vm112_vm1, %v1848_v12, 0.0 }
 0x382   :  { %1859 = vadd.xlane.f32.xlu2 %v1858_v49  ;;  %v2205_v18 = vpack.c.b16 %v2157_v60, %v2157_v60  ;;  %v6069_v49 = vld [vmem:[%s6914_s13] ss:$0 sm:$0xff] }
 0x384   :  { %v2290_v56 = vsel %vm119_vm0, %v2205_v18, 0  ;;  %v4995_v18 = vld [vmem:[%s6917_s17 + $0x38] sm:$0xff] }
 0x385   :  { %2582 = vmatpush.bf16.msrb.mxu3 %v2290_v56  ;;  %v4347_v56 = vld [vmem:[%s6916_s15 + $0x88] sm:$0xf]  ;;  %3720 = vmatpush.bf16.msra.mxu0 %v4995_v18  ;;  %v4966_v18 = vld [vmem:[%s6916_s15 + $0x4c] sm:$0xf0] }
 0x389   :  { %2583 = vmatpush.bf16.msrb.mxu3 %v4400_v53  ;;  %3721 = vmatpush.bf16.msra.mxu0 %v4994_v50 }
 0x38a   :  { %1881 = vadd.xlane.f32.xlu2 %v1880_v37 }
 0x38d   :  { %2584 = vmatpush.bf16.msrb.mxu3 %v4336_v62  ;;  %3722 = vmatpush.bf16.msra.mxu0 %v4993_v5  ;;  %v4957_v62 = vld [vmem:[%s6916_s15 + $0xc] sm:$0xf] }
 0x391   :  { %3723 = vmatpush.bf16.msra.mxu0 %v4992_v30 }
 0x3ed   :  { %v1857_v51 = vpop.xlane.xlu1 %1856 }
 0x3ee   :  { %v1870_v46 = vmul.f32 %v5986_v33, %v1857_v51 }
 0x3ef   :  { %v1885_v40 = vpop.xlane.xlu0 %1884 }
 0x3f0   :  { %v1893_v10 = vmul.f32 %v1885_v40, %v5986_v33  ;;  %v6015_v0 = vsub.f32 %v1847_v35, %v1870_v46 }
 0x3f2   :  { %v1897_v26 = vadd.f32 1e-05, %v1893_v10  ;;  %v1878_v23 = vmul.f32 %v6015_v0, %v6015_v0 }
 0x3f4   :  { %5263 = vrsqrt.f32 %v1897_v26  ;;  %v1886_v63 = vsel %vm112_vm1, %v1878_v23, 0.0  ;;  %vm1916_vm13 = vweird.f32 %v1897_v26  ;;  %v4981_v23 = vld [vmem:[%s6916_s15 + $0xc4] sm:$0xf0] }
 0x3f5   :  { %v1860_v29 = vpop.xlane.xlu2 %1859  ;;  %1887 = vadd.xlane.f32.xlu1 %v1886_v63  ;;  %v4348_v53 = vor.u32 %v4981_v23, %v4347_v56  ;;  %v4974_v56 = vld [vmem:[%s6916_s15 + $0x94] sm:$0xf] }
 0x3f6   :  { %v1871_v11 = vmul.f32 %v5986_v33, %v1860_v29  ;;  %v4357_v23 = vld [vmem:[%s6916_s15 + $0xd0] sm:$0xf0] }
 0x3f7   :  { %2336 = vmatpush.bf16.msra.mxu2 %v4348_v53  ;;  %v4360_v3 = vor.u32 %v4974_v56, %v4357_v23 }
 0x3f8   :  { %v6060_v13 = vsub.f32 %v1848_v12, %v1871_v11  ;;  %v4283_v11 = vld [vmem:[%s6916_s15 + $0x8] sm:$0xf] }
 0x3f9   :  { %v4284_v28 = vor.u32 %v4965_v58, %v4283_v11  ;;  %v4983_v11 = vld [vmem:[%s6916_s15 + $0xd4] sm:$0xf0] }
 0x3fa   :  { %v5264_v16 = vpop.eup %5263  ;;  %v1879_v54 = vmul.f32 %v6060_v13, %v6060_v13 }
 0x3fb   :  { %v1911_v36 = vmul.f32 %v5264_v16, %v1897_v26  ;;  %vm1917_vm12 = vweird.f32 %v5264_v16  ;;  %2337 = vmatpush.bf16.msra.mxu2 %v4284_v28 }
 0x3fc   :  { %v1889_v24 = vsel %vm112_vm1, %v1879_v54, 0.0  ;;  %vm1918_vm14 = vmor %vm1916_vm13, %vm1917_vm12 }
 0x3fd   :  { %v1912_v19 = vmul.f32 %v5264_v16, %v1911_v36  ;;  %1890 = vadd.xlane.f32.xlu2 %v1889_v24  ;;  %v1882_v52 = vpop.xlane.xlu2 %1881  ;;  %v4285_v36 = vld [vmem:[%s6916_s15 + $0x48] sm:$0xf0] }
 0x3fe   :  { %v1892_v25 = vmul.f32 %v1882_v52, %v5986_v33  ;;  %v4288_v24 = vor.u32 %v4957_v62, %v4285_v36  ;;  %v2149_v62 = vunpack.c.h.b16 %v1997_v7  ;;  %v4299_v36 = vld [vmem:[%s6916_s15 + $0x18] sm:$0xf] }
 0x3ff   :  { %v1913_v39 = vmul.f32 0.5, %v1912_v19 }
 0x400   :  { %v1896_v14 = vadd.f32 1e-05, %v1892_v25 }
 0x401   :  { %v1914_v35 = vsub.f32 1.5, %v1913_v39 }
 0x402   :  { %5265 = vrsqrt.f32 %v1896_v14  ;;  %vm1906_vm2 = vweird.f32 %v1896_v14 }
 0x403   :  { %v1915_v22 = vmul.f32 %v5264_v16, %v1914_v35 }
 0x405   :  { %v1919_v31 = vsel %vm1918_vm14, %v5264_v16, %v1915_v22  ;;  %v2254_v16 = vsel %vm119_vm0, %v2193_v9, 0  ;;  %v1996_v22 = vld [vmem:[%s6916_s15 + $0x110] sm:$0xff] }
 0x406   :  { %v1941_v20 = vmul.f32 %v1919_v31, %v5989_v61  ;;  %2354 = vmatpush.bf16.msrb.mxu1 %v2254_v16  ;;  %v2146_v31 = vunpack.c.l.b16 %v1996_v22  ;;  %v4363_v16 = vld [vmem:[%s6916_s15 + $0x98] sm:$0xf] }
 0x407   :  { %v4364_v5 = vor.u32 %v4983_v11, %v4363_v16  ;;  %v4977_v11 = vld [vmem:[%s6916_s15 + $0xac] sm:$0xf] }
 0x408   :  { %v5266_v47 = vpop.eup %5265  ;;  %v1949_v10 = vmul.f32 %v6069_v49, %v1941_v20 }
 0x409   :  { %v1901_v8 = vmul.f32 %v5266_v47, %v1896_v14  ;;  %vm1907_vm15 = vweird.f32 %v5266_v47  ;;  %v4991_v14 = vld [vmem:[%s6917_s17 + $0x18] sm:$0xff] }
 0x40a   :  { %vm1908_vm3 = vmor %vm1906_vm2, %vm1907_vm15  ;;  %v6081_v60 = vadd.f32 %v6075_v42, %v1949_v10  ;;  %2355 = vmatpush.bf16.msrb.mxu1 %v4352_v45  ;;  %3724 = vmatpush.bf16.msra.mxu0 %v4991_v14 }
 0x40b   :  { %v1902_v48 = vmul.f32 %v5266_v47, %v1901_v8  ;;  %v4990_v8 = vld [vmem:[%s6917_s17 + $0x10] sm:$0xff] }
 0x40d   :  { %v1903_v38 = vmul.f32 0.5, %v1902_v48 }
 0x40e   :  { %2356 = vmatpush.bf16.msrb.mxu1 %v4288_v24  ;;  %3725 = vmatpush.bf16.msra.mxu0 %v4990_v8  ;;  %v1998_v8 = vld [vmem:[%s6916_s15 + $0x120] sm:$0xff] }
 0x40f   :  { %v1904_v12 = vsub.f32 1.5, %v1903_v38 }
 0x411   :  { %v1905_v37 = vmul.f32 %v5266_v47, %v1904_v12  ;;  %v2194_v12 = vpack.c.b16 %v2146_v31, %v2146_v31 }
 0x413   :  { %v1909_v40 = vsel %vm1908_vm3, %v5266_v47, %v1905_v37  ;;  %v4989_v37 = vld [vmem:[%s6917_s17 + $0x8] sm:$0xff] }
 0x414   :  { %v1940_v17 = vmul.f32 %v1909_v40, %v5998_v1  ;;  %3726 = vmatpush.bf16.msra.mxu0 %v4989_v37 }
 0x416   :  { %v1948_v44 = vmul.f32 %v6069_v49, %v1940_v17  ;;  %v2257_v17 = vsel %vm119_vm0, %v2194_v12, 0  ;;  %v4984_v12 = vld [vmem:[%s6916_s15 + $0xdc] sm:$0xf0] }
 0x418   :  { %v6084_v61 = vadd.f32 %v6075_v42, %v1948_v44  ;;  %v4988_v44 = vld [vmem:[%s6917_s17] sm:$0xff] }
 0x419   :  { %3727 = vmatpush.bf16.msra.mxu0 %v4988_v44 }
 0x41a   :  { %v6088_v51 = vpack.c.bf16 %v6081_v60, %v6084_v61 }
 0x41c   :  { %4401 = vmatmul.msk.bf16.vlgmr.msrb.gmra.mxu2 %vm112_vm1, %v6088_v51  ;;  %4403 = vmatmul.msk.bf16.vlgmr.msra.gmra.mxu1 %vm112_vm1, %v6088_v51 }
 0x41d   :  { %4431 = vmatmul.msk.bf16.vlgmr.msrb.gmra.mxu3 %vm112_vm1, %v6088_v51  ;;  %2373 = vmatpush.bf16.msrb.mxu2 %v2257_v17  ;;  %v4968_v17 = vld [vmem:[%s6916_s15 + $0x5c] sm:$0xf0] }
 0x468   :  { %v1888_v1 = vpop.xlane.xlu1 %1887 }
 0x469   :  { %v1894_v46 = vmul.f32 %v1888_v1, %v5986_v33 }
 0x46b   :  { %v1898_v26 = vadd.f32 1e-05, %v1894_v46 }
 0x46d   :  { %5267 = vrsqrt.f32 %v1898_v26  ;;  %vm1926_vm5 = vweird.f32 %v1898_v26 }
 0x470   :  { %v1891_v34 = vpop.xlane.xlu2 %1890 }
 0x471   :  { %v1895_v41 = vmul.f32 %v1891_v34, %v5986_v33  ;;  %v4292_v34 = vor.u32 %v4966_v18, %v4291_v6  ;;  %v4960_v6 = vld [vmem:[%s6916_s15 + $0x24] sm:$0xf] }
 0x472   :  { %v4309_v18 = vld [vmem:[%s6916_s15 + $0x60] sm:$0xf0] }
 0x473   :  { %v5268_v63 = vpop.eup %5267  ;;  %v1899_v43 = vadd.f32 1e-05, %v1895_v41  ;;  %v4958_v41 = vld [vmem:[%s6916_s15 + $0x14] sm:$0xf] }
 0x474   :  { %v1921_v29 = vmul.f32 %v5268_v63, %v1898_v26  ;;  %vm1927_vm4 = vweird.f32 %v5268_v63  ;;  %v4355_v26 = vld [vmem:[%s6916_s15 + $0x90] sm:$0xf]  ;;  %v4296_v9 = vor.u32 %v4958_v41, %v4293_v2 }
 0x475   :  { %5269 = vrsqrt.f32 %v1899_v43  ;;  %vm1928_vm6 = vmor %vm1926_vm5, %vm1927_vm4  ;;  %vm1936_vm8 = vweird.f32 %v1899_v43 }
 0x476   :  { %v1922_v55 = vmul.f32 %v5268_v63, %v1921_v29 }
 0x478   :  { %v1923_v57 = vmul.f32 0.5, %v1922_v55 }
 0x47a   :  { %v1924_v59 = vsub.f32 1.5, %v1923_v57 }
 0x47b   :  { %v5270_v54 = vpop.eup %5269 }
 0x47c   :  { %v1925_v19 = vmul.f32 %v5268_v63, %v1924_v59  ;;  %v1931_v52 = vmul.f32 %v5270_v54, %v1899_v43  ;;  %vm1937_vm7 = vweird.f32 %v5270_v54  ;;  %v6210_v43 = vld [vmem:[%s6918_s16] sm:$0xff] }
 0x47d   :  { %vm1938_vm9 = vmor %vm1936_vm8, %vm1937_vm7  ;;  %v6213_v53 = vperm.slane %v6210_v43, 0  ;;  %vm4172_vm7 = vcmask 130112   ;;  %vm4180_vm8 = vcmask 261312  }
 0x47e   :  { %v1932_v25 = vmul.f32 %v5270_v54, %v1931_v52  ;;  %v1929_v39 = vsel %vm1928_vm6, %v5268_v63, %v1925_v19  ;;  %v2148_v63 = vunpack.c.l.b16 %v1997_v7  ;;  %v2197_v19 = vpack.c.b16 %v2149_v62, %v2149_v62  ;;  %v4975_v52 = vld [vmem:[%s6916_s15 + $0x9c] sm:$0xf]  ;;  %v4317_v62 = vld [vmem:[%s6916_s15 + $0x68] sm:$0xf0] }
 0x47f   :  { %v1942_v48 = vmul.f32 %v1929_v39, %v6015_v0 }
 0x480   :  { %v1933_v35 = vmul.f32 0.5, %v1932_v25  ;;  %v2196_v29 = vpack.c.b16 %v2148_v63, %v2148_v63  ;;  %v4365_v25 = vld [vmem:[%s6916_s15 + $0xd8] sm:$0xf0]  ;;  %v2266_v14 = vsel %vm119_vm0, %v2197_v19, 0  ;;  %v2000_v19 = vld [vmem:[%s6916_s15 + $0x130] sm:$0xff] }
 0x481   :  { %v1950_v40 = vmul.f32 %v6069_v49, %v1942_v48  ;;  %v4368_v39 = vor.u32 %v4975_v52, %v4365_v25  ;;  %v2150_v48 = vunpack.c.l.b16 %v1998_v8  ;;  %v2154_v52 = vunpack.c.l.b16 %v2000_v19 }
 0x482   :  { %v1934_v47 = vsub.f32 1.5, %v1933_v35  ;;  %v2263_v58 = vsel %vm119_vm0, %v2196_v29, 0  ;;  %v4959_v35 = vld [vmem:[%s6916_s15 + $0x1c] sm:$0xf]  ;;  %v5017_v29 = vld [vmem:[%s6917_s17 + $0xe8] sm:$0xff] }
 0x483   :  { %v6160_v1 = vadd.f32 %v6075_v42, %v1950_v40  ;;  %v2198_v31 = vpack.c.b16 %v2150_v48, %v2150_v48  ;;  %v2151_v40 = vunpack.c.h.b16 %v1998_v8  ;;  %v2202_v25 = vpack.c.b16 %v2154_v52, %v2154_v52  ;;  %v4387_v8 = vld [vmem:[%s6916_s15 + $0xb0] sm:$0xf] }
 0x484   :  { %v1935_v38 = vmul.f32 %v5270_v54, %v1934_v47  ;;  %v4301_v47 = vld [vmem:[%s6916_s15 + $0x58] sm:$0xf0]  ;;  %v4986_v48 = vld [vmem:[%s6916_s15 + $0xec] sm:$0xf0] }
 0x485   :  { %v2199_v44 = vpack.c.b16 %v2151_v40, %v2151_v40 }
 0x486   :  { %v1939_v20 = vsel %vm1938_vm9, %v5270_v54, %v1935_v38  ;;  %v4967_v54 = vld [vmem:[%s6916_s15 + $0x54] sm:$0xf0]  ;;  %v4371_v38 = vld [vmem:[%s6916_s15 + $0xa0] sm:$0xf]  ;;  %vm4183_vm9 = vcmask 253952  }
 0x487   :  { %v1943_v10 = vmul.f32 %v1939_v20, %v6060_v13  ;;  %v4300_v24 = vor.u32 %v4967_v54, %v4299_v36  ;;  %v2269_v20 = vsel %vm119_vm0, %v2198_v31, 0  ;;  %v4372_v37 = vor.u32 %v4984_v12, %v4371_v38  ;;  %v5015_v54 = vld [vmem:[%s6917_s17 + $0xd8] sm:$0xff] }
 0x488   :  { %v4388_v31 = vor.u32 %v4986_v48, %v4387_v8  ;;  %v2155_v38 = vunpack.c.h.b16 %v2000_v19  ;;  %v6368_v12 = vperm.slane %v6210_v43, 1  ;;  %v5022_v19 = vld [vmem:[%s6917_s17 + $0x110] sm:$0xff] }
 0x489   :  { %v1951_v0 = vmul.f32 %v6069_v49, %v1943_v10  ;;  %v4982_v49 = vld [vmem:[%s6916_s15 + $0xcc] sm:$0xf0]  ;;  %v4307_v10 = vld [vmem:[%s6916_s15 + $0x20] sm:$0xf] }
 0x48a   :  { %v4356_v4 = vor.u32 %v4982_v49, %v4355_v26  ;;  %v4976_v26 = vld [vmem:[%s6916_s15 + $0xa4] sm:$0xf]  ;;  %v2203_v40 = vpack.c.b16 %v2155_v38, %v2155_v38  ;;  %v5051_v38 = vld [vmem:[%s6917_s17 + $0x1f8] sm:$0xff] }
 0x48b   :  { %v6163_v46 = vadd.f32 %v6075_v42, %v1951_v0  ;;  %v2147_v42 = vunpack.c.h.b16 %v1996_v22  ;;  %v4304_v22 = vor.u32 %v4959_v35, %v4301_v47  ;;  %v4308_v0 = vor.u32 %v4968_v17, %v4307_v10  ;;  %v4373_v49 = vld [vmem:[%s6916_s15 + $0xe0] sm:$0xf0] }
 0x48c   :  { %2374 = vmatpush.bf16.msrb.mxu2 %v4356_v4  ;;  %v2272_v4 = vsel %vm119_vm0, %v2199_v44, 0  ;;  %v2281_v35 = vsel %vm119_vm0, %v2202_v25, 0  ;;  %v5012_v47 = vld [vmem:[%s6917_s17 + $0xc0] sm:$0xff] }
 0x48d   :  { %v6167_v13 = vpack.c.bf16 %v6163_v46, %v6160_v1  ;;  %v2195_v15 = vpack.c.b16 %v2147_v42, %v2147_v42  ;;  %v4376_v42 = vor.u32 %v4976_v26, %v4373_v49  ;;  %v5026_v26 = vld [vmem:[%s6917_s17 + $0x130] sm:$0xff] }
 0x48e   :  { %v4978_v49 = vld [vmem:[%s6916_s15 + $0xb4] sm:$0xf] }
 0x48f   :  { %4402 = vmatmul.msk.bf16.gmra.mxu2 %vm112_vm1, %v6167_v13  ;;  %4404 = vmatmul.msk.bf16.gmra.mxu1 %vm112_vm1, %v6167_v13  ;;  %v2260_v50 = vsel %vm119_vm0, %v2195_v15, 0  ;;  %v1999_v15 = vld [vmem:[%s6916_s15 + $0x128] sm:$0xff] }
 0x490   :  { %4432 = vmatmul.msk.bf16.gmra.mxu3 %vm112_vm1, %v6167_v13  ;;  %2392 = vmatpush.bf16.msra.mxu1 %v2260_v50  ;;  %v2152_v56 = vunpack.c.l.b16 %v1999_v15  ;;  %v4379_v50 = vld [vmem:[%s6916_s15 + $0xa8] sm:$0xf]  ;;  %v2153_v7 = vunpack.c.h.b16 %v1999_v15 }
 0x491   :  { %2375 = vmatpush.bf16.msrb.mxu2 %v4292_v34  ;;  %v4312_v34 = vor.u32 %v4960_v6, %v4309_v18  ;;  %v4323_v18 = vld [vmem:[%s6916_s15 + $0x30] sm:$0xf] }
 0x492   :  { %v2200_v23 = vpack.c.b16 %v2152_v56, %v2152_v56  ;;  %v2201_v63 = vpack.c.b16 %v2153_v7, %v2153_v7 }
 0x494   :  { %2393 = vmatpush.bf16.msra.mxu1 %v4360_v3  ;;  %v4985_v3 = vld [vmem:[%s6916_s15 + $0xe4] sm:$0xf0]  ;;  %v2275_v41 = vsel %vm119_vm0, %v2200_v23, 0  ;;  %v2278_v16 = vsel %vm119_vm0, %v2201_v63, 0 }
 0x495   :  { %v4380_v2 = vor.u32 %v4985_v3, %v4379_v50  ;;  %v5025_v50 = vld [vmem:[%s6917_s17 + $0x128] sm:$0xff] }
 0x498   :  { %2394 = vmatpush.bf16.msra.mxu1 %v4296_v9  ;;  %v5019_v9 = vld [vmem:[%s6917_s17 + $0xf8] sm:$0xff] }
 0x499   :  { %3777 = vmatpush.bf16.msra.mxu3 %v5019_v9  ;;  %v4325_v9 = vld [vmem:[%s6916_s15 + $0x70] sm:$0xf0] }
 0x49f   :  { %v2301_v32 = vpop.f32.mrf.mxu2  ;;  %4405 = vmatmul.msk.bf16.vlgmr.msra.gmra.mxu2 %vm112_vm1, %v6088_v51  ;;  %4407 = vmatmul.msk.bf16.vlgmr.msrb.gmra.mxu1 %vm112_vm1, %v6088_v51 }
 0x4a0   :  { %2411 = vmatpush.bf16.msra.mxu2 %v2263_v58  ;;  %v2302_v45 = vadd.f32 %v2301_v32, %v6213_v53  ;;  %2430 = vmatpush.bf16.msrb.mxu1 %v2266_v14  ;;  %v5018_v32 = vld [vmem:[%s6917_s17 + $0xf0] sm:$0xff]  ;;  %v4381_v58 = vld [vmem:[%s6916_s15 + $0xe8] sm:$0xf0] }
 0x4a1   :  { %3778 = vmatpush.bf16.msra.mxu3 %v5018_v32  ;;  %v5013_v14 = vld [vmem:[%s6917_s17 + $0xc8] sm:$0xff]  ;;  %v2156_v32 = vunpack.c.l.b16 %v6010_v21 }
 0x4a2   :  { %v2596_v57 = vmax.f32 %v2302_v45, 0.0  ;;  %v4969_v45 = vld [vmem:[%s6916_s15 + $0x64] sm:$0xf0] }
 0x4a4   :  { %2412 = vmatpush.bf16.msra.mxu2 %v4364_v5  ;;  %2431 = vmatpush.bf16.msrb.mxu1 %v4368_v39  ;;  %v4315_v5 = vld [vmem:[%s6916_s15 + $0x28] sm:$0xf] }
 0x4a5   :  { %3779 = vmatpush.bf16.msra.mxu3 %v5017_v29 }
 0x4a7   :  { %v2303_v55 = vpop.f32.mrf.mxu2 }
 0x4a8   :  { %v2304_v28 = vadd.f32 %v2303_v55, %v6213_v53  ;;  %2413 = vmatpush.bf16.msra.mxu2 %v4300_v24  ;;  %2432 = vmatpush.bf16.msrb.mxu1 %v4304_v22  ;;  %v4384_v55 = vor.u32 %v4977_v11, %v4381_v58  ;;  %v5014_v24 = vld [vmem:[%s6917_s17 + $0xd0] sm:$0xff]  ;;  %v5024_v58 = vld [vmem:[%s6917_s17 + $0x120] sm:$0xff] }
 0x4aa   :  { %v2612_v59 = vmax.f32 %v2304_v28, 0.0  ;;  %v5016_v28 = vld [vmem:[%s6917_s17 + $0xe0] sm:$0xff] }
 0x4ab   :  { %3780 = vmatpush.bf16.msra.mxu3 %v5016_v28  ;;  %v5023_v28 = vld [vmem:[%s6917_s17 + $0x118] sm:$0xff] }
 0x4ac   :  { %v2660_v30 = vpack.c.bf16 %v2612_v59, %v2596_v57  ;;  %v4316_v57 = vor.u32 %v4969_v45, %v4315_v5  ;;  %v6327_v59 = vpop.f32.mrf.mxu1  ;;  %v2009_v5 = vperm.slane %v6210_v43, 3  ;;  %v5003_v45 = vld [vmem:[%s6917_s17 + $0x78] sm:$0xff] }
 0x4ae   :  { %3728 = vmatmul.bf16.vlgmr.msra.gmra.mxu0 %v2660_v30  ;;  %v4961_v30 = vld [vmem:[%s6916_s15 + $0x2c] sm:$0xf] }
 0x4af   :  { %4406 = vmatmul.msk.bf16.gmra.mxu2 %vm112_vm1, %v6167_v13  ;;  %4408 = vmatmul.msk.bf16.gmra.mxu1 %vm112_vm1, %v6167_v13  ;;  %v4320_v36 = vor.u32 %v4961_v30, %v4317_v62  ;;  %v5002_v62 = vld [vmem:[%s6917_s17 + $0x70] sm:$0xff] }
 0x4b0   :  { %3781 = vmatpush.bf16.msra.mxu3 %v5015_v54  ;;  %v2008_v54 = vperm.slane %v6210_v43, 2 }
 0x4b4   :  { %3782 = vmatpush.bf16.msra.mxu3 %v5014_v24  ;;  %v6351_v39 = vpop.f32.mrf.mxu1 }
 0x4b8   :  { %3783 = vmatpush.bf16.msra.mxu3 %v5013_v14  ;;  %v5001_v14 = vld [vmem:[%s6917_s17 + $0x68] sm:$0xff] }
 0x4bc   :  { %3784 = vmatpush.bf16.msra.mxu3 %v5012_v47 }
 0x4bf   :  { %4409 = vmatmul.msk.bf16.vlgmr.msrb.gmra.mxu2 %vm112_vm1, %v6088_v51  ;;  %4411 = vmatmul.msk.bf16.vlgmr.msra.gmra.mxu1 %vm112_vm1, %v6088_v51 }
 0x4c0   :  { %2449 = vmatpush.bf16.msrb.mxu2 %v2269_v20  ;;  %2468 = vmatpush.bf16.msra.mxu1 %v2272_v4  ;;  %v5027_v20 = vld [vmem:[%s6917_s17 + $0x138] sm:$0xff]  ;;  %v4389_v4 = vld [vmem:[%s6916_s15 + $0xf0] sm:$0xf0] }
 0x4c1   :  { %3796 = vmatpush.bf16.msrb.mxu0 %v5027_v20  ;;  %v4392_v15 = vor.u32 %v4978_v49, %v4389_v4  ;;  %3853 = vmatpush.bf16.msrb.mxu3 %v5051_v38  ;;  %v5050_v4 = vld [vmem:[%s6917_s17 + $0x1f0] sm:$0xff] }
 0x4c4   :  { %2450 = vmatpush.bf16.msrb.mxu2 %v4372_v37  ;;  %2469 = vmatpush.bf16.msra.mxu1 %v4376_v42 }
 0x4c5   :  { %3797 = vmatpush.bf16.msrb.mxu0 %v5026_v26  ;;  %v4999_v26 = vld [vmem:[%s6917_s17 + $0x58] sm:$0xff]  ;;  %3854 = vmatpush.bf16.msrb.mxu3 %v5050_v4  ;;  %v5030_v4 = vld [vmem:[%s6917_s17 + $0x150] sm:$0xff] }
 0x4c8   :  { %2451 = vmatpush.bf16.msrb.mxu2 %v4308_v0  ;;  %2470 = vmatpush.bf16.msra.mxu1 %v4312_v34  ;;  %v2284_v0 = vsel %vm119_vm0, %v2203_v40, 0  ;;  %v4970_v34 = vld [vmem:[%s6916_s15 + $0x6c] sm:$0xf0] }
 0x4c9   :  { %v4324_v56 = vor.u32 %v4970_v34, %v4323_v18  ;;  %3798 = vmatpush.bf16.msrb.mxu0 %v5025_v50  ;;  %v4998_v18 = vld [vmem:[%s6917_s17 + $0x50] sm:$0xff]  ;;  %v5049_v34 = vld [vmem:[%s6917_s17 + $0x1e8] sm:$0xff] }
 0x4ca   :  { %3855 = vmatpush.bf16.msrb.mxu3 %v5049_v34  ;;  %v2321_v34 = vadd.f32 %v6327_v59, %v6368_v12 }
 0x4cd   :  { %3799 = vmatpush.bf16.msrb.mxu0 %v5024_v58  ;;  %v4996_v58 = vld [vmem:[%s6917_s17 + $0x40] sm:$0xff] }
 0x4cf   :  { %4410 = vmatmul.msk.bf16.gmra.mxu2 %vm112_vm1, %v6167_v13  ;;  %4412 = vmatmul.msk.bf16.gmra.mxu1 %vm112_vm1, %v6167_v13 }
 0x4d1   :  { %3800 = vmatpush.bf16.msrb.mxu0 %v5023_v28  ;;  %v5035_v28 = vld [vmem:[%s6917_s17 + $0x178] sm:$0xff] }
 0x4d5   :  { %3801 = vmatpush.bf16.msrb.mxu0 %v5022_v19 }
 0x4df   :  { %4413 = vmatmul.msk.bf16.vlgmr.msra.gmra.mxu2 %vm112_vm1, %v6088_v51  ;;  %4415 = vmatmul.msk.bf16.vlgmr.msrb.gmra.mxu1 %vm112_vm1, %v6088_v51 }
 0x4e0   :  { %2487 = vmatpush.bf16.msra.mxu2 %v2275_v41  ;;  %2506 = vmatpush.bf16.msrb.mxu1 %v2278_v16 }
 0x4e4   :  { %2488 = vmatpush.bf16.msra.mxu2 %v4380_v2  ;;  %2507 = vmatpush.bf16.msrb.mxu1 %v4384_v55  ;;  %v4962_v2 = vld [vmem:[%s6916_s15 + $0x34] sm:$0xf] }
 0x4e5   :  { %v4328_v63 = vor.u32 %v4962_v2, %v4325_v9  ;;  %v4971_v2 = vld [vmem:[%s6916_s15 + $0x74] sm:$0xf0]  ;;  %v4997_v9 = vld [vmem:[%s6917_s17 + $0x48] sm:$0xff] }
 0x4e8   :  { %2489 = vmatpush.bf16.msra.mxu2 %v4316_v57  ;;  %2508 = vmatpush.bf16.msrb.mxu1 %v4320_v36 }
 0x4ef   :  { %4414 = vmatmul.msk.bf16.gmra.mxu2 %vm112_vm1, %v6167_v13  ;;  %4416 = vmatmul.msk.bf16.gmra.mxu1 %vm112_vm1, %v6167_v13 }
 0x4ff   :  { %4417 = vmatmul.msk.bf16.vlgmr.msrb.gmra.mxu2 %vm112_vm1, %v6088_v51  ;;  %4419 = vmatmul.msk.bf16.vlgmr.msra.gmra.mxu1 %vm112_vm1, %v6088_v51 }
 0x500   :  { %2525 = vmatpush.bf16.msrb.mxu2 %v2281_v35  ;;  %2544 = vmatpush.bf16.msra.mxu1 %v2284_v0  ;;  %v4395_v0 = vld [vmem:[%s6916_s15 + $0xb8] sm:$0xf] }
 0x504   :  { %2526 = vmatpush.bf16.msrb.mxu2 %v4388_v31  ;;  %2545 = vmatpush.bf16.msra.mxu1 %v4392_v15  ;;  %v5000_v31 = vld [vmem:[%s6917_s17 + $0x60] sm:$0xff] }
 0x508   :  { %2527 = vmatpush.bf16.msrb.mxu2 %v4324_v56  ;;  %2546 = vmatpush.bf16.msra.mxu1 %v4328_v63 }
 0x50c   :  { %v2325_v22 = vpop.f32.mrf.mxu1 }
 0x50d   :  { %v2326_v10 = vadd.f32 %v2325_v22, %v6368_v12  ;;  %v5021_v22 = vld [vmem:[%s6917_s17 + $0x108] sm:$0xff] }
 0x50e   :  { %3802 = vmatpush.bf16.msrb.mxu0 %v5021_v22 }
 0x50f   :  { %4418 = vmatmul.msk.bf16.gmra.mxu2 %vm112_vm1, %v6167_v13  ;;  %4420 = vmatmul.msk.bf16.gmra.mxu1 %vm112_vm1, %v6167_v13  ;;  %v2629_v42 = vmax.f32 %v2326_v10, 0.0  ;;  %v5020_v10 = vld [vmem:[%s6917_s17 + $0x100] sm:$0xff] }
 0x512   :  { %v2306_v37 = vpop.f32.mrf.mxu2  ;;  %3803 = vmatpush.bf16.msrb.mxu0 %v5020_v10  ;;  %v5007_v10 = vld [vmem:[%s6917_s17 + $0x98] sm:$0xff] }
 0x513   :  { %v2307_v23 = vadd.f32 %v2306_v37, %v6213_v53 }
 0x514   :  { %v2327_v17 = vpop.f32.mrf.mxu1 }
 0x515   :  { %v2328_v44 = vadd.f32 %v2327_v17, %v6368_v12  ;;  %v2628_v16 = vmax.f32 %v2307_v23, 0.0 }
 0x517   :  { %v2645_v6 = vmax.f32 %v2328_v44, 0.0  ;;  %v4987_v44 = vld [vmem:[%s6916_s15 + $0xf4] sm:$0xf0] }
 0x518   :  { %v4396_v49 = vor.u32 %v4987_v44, %v4395_v0  ;;  %v5031_v0 = vld [vmem:[%s6917_s17 + $0x158] sm:$0xff] }
 0x519   :  { %v6395_v3 = vpack.c.bf16 %v2645_v6, %v2629_v42  ;;  %v5059_v44 = vld [vmem:[%s6917_s17 + $0x238] sm:$0xff] }
 0x51a   :  { %v2308_v41 = vpop.f32.mrf.mxu2  ;;  %3872 = vmatpush.bf16.msra.mxu0 %v5059_v44 }
 0x51b   :  { %v2309_v7 = vadd.f32 %v2308_v41, %v6213_v53  ;;  %v2204_v53 = vpack.c.b16 %v2156_v32, %v2156_v32  ;;  %v4331_v41 = vld [vmem:[%s6916_s15 + $0x38] sm:$0xf] }
 0x51c   :  { %v2358_v29 = vpop.f32.mrf.mxu1  ;;  %v4332_v32 = vor.u32 %v4971_v2, %v4331_v41  ;;  %v2597_v2 = vmax.f32 %v2321_v34, 0.0 }
 0x51d   :  { %v2644_v11 = vmax.f32 %v2309_v7, 0.0  ;;  %v2287_v55 = vsel %vm119_vm0, %v2204_v53, 0  ;;  %v2359_v30 = vadd.f32 %v2358_v29, %v2009_v5  ;;  %v5048_v7 = vld [vmem:[%s6917_s17 + $0x1e0] sm:$0xff] }
 0x51e   :  { %3856 = vmatpush.bf16.msrb.mxu3 %v5048_v7 }
 0x51f   :  { %4421 = vmatmul.msk.bf16.vlgmr.msra.gmra.mxu2 %vm112_vm1, %v6088_v51  ;;  %4423 = vmatmul.msk.bf16.vlgmr.msrb.gmra.mxu1 %vm112_vm1, %v6088_v51  ;;  %v2676_v21 = vpack.c.bf16 %v2644_v11, %v2628_v16  ;;  %v2599_v52 = vmax.f32 %v2359_v30, 0.0 }
 0x520   :  { %3739 = vmatpush.bf16.msrb.mxu1 %v5003_v45  ;;  %2563 = vmatpush.bf16.msra.mxu2 %v2287_v55  ;;  %v5011_v55 = vld [vmem:[%s6917_s17 + $0xb8] sm:$0xff] }
 0x521   :  { %3733 = vmatmul.bf16.gmra.mxu0 %v2676_v21 }
 0x522   :  { %v2339_v57 = vpop.f32.mrf.mxu2 }
 0x523   :  { %v2340_v35 = vadd.f32 %v2339_v57, %v2008_v54  ;;  %v5046_v57 = vld [vmem:[%s6917_s17 + $0x1d0] sm:$0xff] }
 0x524   :  { %v2360_v36 = vpop.f32.mrf.mxu1  ;;  %3740 = vmatpush.bf16.msrb.mxu1 %v5002_v62  ;;  %2564 = vmatpush.bf16.msra.mxu2 %v4396_v49  ;;  %v5006_v49 = vld [vmem:[%s6917_s17 + $0x90] sm:$0xff] }
 0x525   :  { %v2361_v24 = vadd.f32 %v2360_v36, %v2009_v5  ;;  %v2598_v37 = vmax.f32 %v2340_v35, 0.0  ;;  %v5010_v36 = vld [vmem:[%s6917_s17 + $0xb0] sm:$0xff]  ;;  %v5044_v35 = vld [vmem:[%s6917_s17 + $0x1c0] sm:$0xff] }
 0x527   :  { %v2615_v25 = vmax.f32 %v2361_v24, 0.0  ;;  %v5045_v24 = vld [vmem:[%s6917_s17 + $0x1c8] sm:$0xff] }
 0x528   :  { %3741 = vmatpush.bf16.msrb.mxu1 %v5001_v14  ;;  %2565 = vmatpush.bf16.msra.mxu2 %v4332_v32  ;;  %v5033_v14 = vld [vmem:[%s6917_s17 + $0x168] sm:$0xff] }
 0x529   :  { %v2663_v47 = vpack.c.bf16 %v2615_v25, %v2599_v52  ;;  %v2010_v52 = vperm.slane %v6210_v43, 4  ;;  %v5009_v25 = vld [vmem:[%s6917_s17 + $0xa8] sm:$0xff] }
 0x52a   :  { %v2341_v8 = vpop.f32.mrf.mxu2 }
 0x52b   :  { %v2342_v48 = vadd.f32 %v2341_v8, %v2008_v54  ;;  %3785 = vmatmul.bf16.vlgmr.msra.gmra.mxu3 %v2663_v47 }
 0x52c   :  { %v2363_v20 = vpop.f32.mrf.mxu1  ;;  %3742 = vmatpush.bf16.msrb.mxu1 %v5000_v31  ;;  %v5032_v31 = vld [vmem:[%s6917_s17 + $0x160] sm:$0xff] }
 0x52d   :  { %v2614_v40 = vmax.f32 %v2342_v48, 0.0  ;;  %v2364_v42 = vadd.f32 %v2363_v20, %v2009_v5  ;;  %v5008_v48 = vld [vmem:[%s6917_s17 + $0xa0] sm:$0xff] }
 0x52f   :  { %v6442_v17 = vpack.c.bf16 %v2614_v40, %v2598_v37  ;;  %4422 = vmatmul.msk.bf16.gmra.mxu2 %vm112_vm1, %v6167_v13  ;;  %4424 = vmatmul.msk.bf16.gmra.mxu1 %vm112_vm1, %v6167_v13  ;;  %v2631_v23 = vmax.f32 %v2364_v42, 0.0 }
 0x530   :  { %3743 = vmatpush.bf16.msrb.mxu1 %v4999_v26 }
 0x532   :  { %v2344_v6 = vpop.f32.mrf.mxu2 }
 0x533   :  { %v2345_v63 = vadd.f32 %v2344_v6, %v2008_v54  ;;  %v2323_v6 = vadd.f32 %v6351_v39, %v6368_v12  ;;  %v5004_v12 = vld [vmem:[%s6917_s17 + $0x80] sm:$0xff] }
 0x534   :  { %v2365_v15 = vpop.f32.mrf.mxu1  ;;  %3744 = vmatpush.bf16.msrb.mxu1 %v4998_v18  ;;  %v5058_v18 = vld [vmem:[%s6917_s17 + $0x230] sm:$0xff] }
 0x535   :  { %v2366_v56 = vadd.f32 %v2365_v15, %v2009_v5  ;;  %v5047_v5 = vld [vmem:[%s6917_s17 + $0x1d8] sm:$0xff]  ;;  %v2630_v53 = vmax.f32 %v2345_v63, 0.0  ;;  %3873 = vmatpush.bf16.msra.mxu0 %v5058_v18  ;;  %v5005_v15 = vld [vmem:[%s6917_s17 + $0x88] sm:$0xff] }
 0x536   :  { %3857 = vmatpush.bf16.msrb.mxu3 %v5047_v5  ;;  %v5043_v5 = vld [vmem:[%s6917_s17 + $0x1b8] sm:$0xff] }
 0x537   :  { %v2647_v50 = vmax.f32 %v2366_v56, 0.0  ;;  %v5029_v56 = vld [vmem:[%s6917_s17 + $0x148] sm:$0xff] }
 0x538   :  { %3745 = vmatpush.bf16.msrb.mxu1 %v4997_v9  ;;  %v5028_v9 = vld [vmem:[%s6917_s17 + $0x140] sm:$0xff] }
 0x539   :  { %v2679_v29 = vpack.c.bf16 %v2647_v50, %v2631_v23  ;;  %v2613_v23 = vmax.f32 %v2323_v6, 0.0  ;;  %v5057_v50 = vld [vmem:[%s6917_s17 + $0x228] sm:$0xff] }
 0x53a   :  { %v2346_v16 = vpop.f32.mrf.mxu2  ;;  %3858 = vmatpush.bf16.msrb.mxu3 %v5046_v57  ;;  %3874 = vmatpush.bf16.msra.mxu0 %v5057_v50  ;;  %v5066_v57 = vld [vmem:[%s6917_s17 + $0x270] sm:$0xff]  ;;  %v5061_v50 = vld [vmem:[%s6917_s17 + $0x248] sm:$0xff] }
 0x53b   :  { %v2347_v11 = vadd.f32 %v2346_v16, %v2008_v54  ;;  %3790 = vmatmul.bf16.gmra.mxu3 %v2679_v29  ;;  %v5034_v54 = vld [vmem:[%s6917_s17 + $0x170] sm:$0xff]  ;;  %v2661_v7 = vpack.c.bf16 %v2613_v23, %v2597_v2  ;;  %v5056_v16 = vld [vmem:[%s6917_s17 + $0x220] sm:$0xff] }
 0x53c   :  { %v6484_v21 = vpop.f32.mrf.mxu1  ;;  %3746 = vmatpush.bf16.msrb.mxu1 %v4996_v58 }
 0x53d   :  { %v2646_v45 = vmax.f32 %v2347_v11, 0.0  ;;  %v2013_v11 = vperm.slane %v6210_v43, 7 }
 0x53e   :  { %3859 = vmatpush.bf16.msrb.mxu3 %v5045_v24  ;;  %3875 = vmatpush.bf16.msra.mxu0 %v5056_v16  ;;  %v5078_v16 = vld [vmem:[%s6917_s17 + $0x2d0] sm:$0xff] }
 0x53f   :  { %4425 = vmatmul.msk.bf16.vlgmr.msrb.gmra.mxu2 %vm112_vm1, %v6088_v51  ;;  %4427 = vmatmul.msk.bf16.vlgmr.msra.gmra.mxu1 %vm112_vm1, %v6088_v51  ;;  %v6499_v30 = vpack.c.bf16 %v2646_v45, %v2630_v53  ;;  %v5067_v53 = vld [vmem:[%s6917_s17 + $0x278] sm:$0xff] }
 0x540   :  { %3758 = vmatpush.bf16.msrb.mxu2 %v5011_v55  ;;  %3815 = vmatpush.bf16.msra.mxu1 %v5035_v28  ;;  %v5055_v45 = vld [vmem:[%s6917_s17 + $0x218] sm:$0xff]  ;;  %v5042_v28 = vld [vmem:[%s6917_s17 + $0x1b0] sm:$0xff] }
 0x542   :  { %v2377_v62 = vpop.f32.mrf.mxu2  ;;  %3860 = vmatpush.bf16.msrb.mxu3 %v5044_v35  ;;  %3876 = vmatpush.bf16.msra.mxu0 %v5055_v45 }
 0x543   :  { %v2378_v47 = vadd.f32 %v2377_v62, %v2010_v52 }
 0x544   :  { %v6510_v19 = vpop.f32.mrf.mxu1  ;;  %3759 = vmatpush.bf16.msrb.mxu2 %v5010_v36  ;;  %3816 = vmatpush.bf16.msra.mxu1 %v5034_v54  ;;  %v5054_v54 = vld [vmem:[%s6917_s17 + $0x210] sm:$0xff] }
 0x545   :  { %v2600_v20 = vmax.f32 %v2378_v47, 0.0  ;;  %v5053_v47 = vld [vmem:[%s6917_s17 + $0x208] sm:$0xff] }
 0x546   :  { %3877 = vmatpush.bf16.msra.mxu0 %v5054_v54 }
 0x548   :  { %3760 = vmatpush.bf16.msrb.mxu2 %v5009_v25  ;;  %3817 = vmatpush.bf16.msra.mxu1 %v5033_v14  ;;  %v5041_v25 = vld [vmem:[%s6917_s17 + $0x1a8] sm:$0xff] }
 0x549   :  { %v5065_v14 = vld [vmem:[%s6917_s17 + $0x268] sm:$0xff] }
 0x54a   :  { %v2379_v22 = vpop.f32.mrf.mxu2  ;;  %3878 = vmatpush.bf16.msra.mxu0 %v5053_v47 }
 0x54b   :  { %v2380_v8 = vadd.f32 %v2379_v22, %v2010_v52 }
 0x54c   :  { %v6528_v38 = vpop.f32.mrf.mxu1  ;;  %3761 = vmatpush.bf16.msrb.mxu2 %v5008_v48  ;;  %3818 = vmatpush.bf16.msra.mxu1 %v5032_v31  ;;  %v5064_v48 = vld [vmem:[%s6917_s17 + $0x260] sm:$0xff]  ;;  %v5083_v31 = vld [vmem:[%s6917_s17 + $0x2f8] sm:$0xff] }
 0x54d   :  { %v2616_v37 = vmax.f32 %v2380_v8, 0.0  ;;  %v5040_v8 = vld [vmem:[%s6917_s17 + $0x1a0] sm:$0xff]  ;;  %3929 = vmatpush.bf16.msra.mxu3 %v5083_v31 }
 0x54f   :  { %v2664_v40 = vpack.c.bf16 %v2616_v37, %v2600_v20  ;;  %4426 = vmatmul.msk.bf16.gmra.mxu2 %vm112_vm1, %v6167_v13  ;;  %4428 = vmatmul.msk.bf16.gmra.mxu1 %vm112_vm1, %v6167_v13  ;;  %v5052_v37 = vld [vmem:[%s6917_s17 + $0x200] sm:$0xff] }
 0x550   :  { %3762 = vmatpush.bf16.msrb.mxu2 %v5007_v10  ;;  %3819 = vmatpush.bf16.msra.mxu1 %v5031_v0  ;;  %v5063_v10 = vld [vmem:[%s6917_s17 + $0x258] sm:$0xff]  ;;  %v5082_v0 = vld [vmem:[%s6917_s17 + $0x2f0] sm:$0xff] }
 0x551   :  { %3804 = vmatmul.bf16.vlgmr.msrb.gmra.mxu0 %v2664_v40  ;;  %v5039_v40 = vld [vmem:[%s6917_s17 + $0x198] sm:$0xff]  ;;  %3930 = vmatpush.bf16.msra.mxu3 %v5082_v0  ;;  %v6726_v0 = vperm.slane %v6210_v43, 6 }
 0x552   :  { %v2382_v26 = vpop.f32.mrf.mxu2  ;;  %3879 = vmatpush.bf16.msra.mxu0 %v5052_v37  ;;  %v5098_v37 = vld [vmem:[%s6917_s17 + $0x370] sm:$0xff] }
 0x553   :  { %v2383_v39 = vadd.f32 %v2382_v26, %v2010_v52  ;;  %v5038_v26 = vld [vmem:[%s6917_s17 + $0x190] sm:$0xff] }
 0x554   :  { %v6549_v42 = vpop.f32.mrf.mxu1  ;;  %3763 = vmatpush.bf16.msrb.mxu2 %v5006_v49  ;;  %3820 = vmatpush.bf16.msra.mxu1 %v5030_v4  ;;  %v5062_v49 = vld [vmem:[%s6917_s17 + $0x250] sm:$0xff]  ;;  %v5081_v4 = vld [vmem:[%s6917_s17 + $0x2e8] sm:$0xff] }
 0x555   :  { %v2632_v63 = vmax.f32 %v2383_v39, 0.0  ;;  %3931 = vmatpush.bf16.msra.mxu3 %v5081_v4  ;;  %v5037_v39 = vld [vmem:[%s6917_s17 + $0x188] sm:$0xff] }
 0x558   :  { %3764 = vmatpush.bf16.msrb.mxu2 %v5005_v15  ;;  %3821 = vmatpush.bf16.msra.mxu1 %v5029_v56 }
 0x55a   :  { %v2384_v41 = vpop.f32.mrf.mxu2 }
 0x55b   :  { %v2385_v59 = vadd.f32 %v2384_v41, %v2010_v52 }
 0x55c   :  { %v2434_v32 = vpop.f32.mrf.mxu1  ;;  %3765 = vmatpush.bf16.msrb.mxu2 %v5004_v12  ;;  %3822 = vmatpush.bf16.msra.mxu1 %v5028_v9  ;;  %v5036_v12 = vld [vmem:[%s6917_s17 + $0x180] sm:$0xff] }
 0x55d   :  { %v2648_v29 = vmax.f32 %v2385_v59, 0.0  ;;  %v5060_v9 = vld [vmem:[%s6917_s17 + $0x240] sm:$0xff] }
 0x55f   :  { %4429 = vmatmul.msk.bf16.vlgmr.msra.gmra.mxu2 %vm112_vm1, %v6088_v51  ;;  %3747 = vmatmul.bf16.vlgmr.msrb.gmra.mxu1 %v2661_v7  ;;  %v2680_v58 = vpack.c.bf16 %v2648_v29, %v2632_v63  ;;  %v2435_v51 = vadd.f32 %v2434_v32, %v2013_v11  ;;  %v5079_v32 = vld [vmem:[%s6917_s17 + $0x2d8] sm:$0xff] }
 0x560   :  { %3834 = vmatpush.bf16.msra.mxu2 %v5043_v5  ;;  %3891 = vmatpush.bf16.msrb.mxu1 %v5067_v53  ;;  %v5075_v29 = vld [vmem:[%s6917_s17 + $0x2b8] sm:$0xff]  ;;  %v6686_v5 = vld [vmem:[%s6918_s16 + $0x8] sm:$0xff] }
 0x561   :  { %3809 = vmatmul.bf16.gmra.mxu0 %v2680_v58  ;;  %v2603_v24 = vmax.f32 %v2435_v51, 0.0  ;;  %v5074_v58 = vld [vmem:[%s6917_s17 + $0x2b0] sm:$0xff]  ;;  %v6690_v51 = vperm.slane %v6686_v5, 0 }
 0x562   :  { %v6588_v55 = vpop.f32.mrf.mxu2 }
 0x564   :  { %v2436_v62 = vpop.f32.mrf.mxu1  ;;  %3835 = vmatpush.bf16.msra.mxu2 %v5042_v28  ;;  %3892 = vmatpush.bf16.msrb.mxu1 %v5066_v57  ;;  %v5073_v57 = vld [vmem:[%s6917_s17 + $0x2a8] sm:$0xff] }
 0x565   :  { %v2437_v36 = vadd.f32 %v2436_v62, %v2013_v11  ;;  %v5076_v62 = vld [vmem:[%s6917_s17 + $0x2c0] sm:$0xff] }
 0x567   :  { %v2619_v52 = vmax.f32 %v2437_v36, 0.0 }
 0x568   :  { %3836 = vmatpush.bf16.msra.mxu2 %v5041_v25  ;;  %3893 = vmatpush.bf16.msrb.mxu1 %v5065_v14  ;;  %v5099_v25 = vld [vmem:[%s6917_s17 + $0x378] sm:$0xff] }
 0x569   :  { %v2667_v35 = vpack.c.bf16 %v2619_v52, %v2603_v24  ;;  %v5115_v14 = vld [vmem:[%s6917_s17 + $0x3f8] sm:$0xff] }
 0x56a   :  { %v6608_v22 = vpop.f32.mrf.mxu2 }
 0x56b   :  { %3861 = vmatmul.bf16.vlgmr.msrb.gmra.mxu3 %v2667_v35 }
 0x56c   :  { %v2439_v20 = vpop.f32.mrf.mxu1  ;;  %3837 = vmatpush.bf16.msra.mxu2 %v5040_v8  ;;  %3894 = vmatpush.bf16.msrb.mxu1 %v5064_v48 }
 0x56f   :  { %4430 = vmatmul.msk.bf16.gmra.mxu2 %vm112_vm1, %v6167_v13  ;;  %3752 = vmatmul.bf16.gmra.mxu1 %v6395_v3  ;;  %v2011_v13 = vperm.slane %v6210_v43, 5  ;;  %v2440_v3 = vadd.f32 %v2439_v20, %v2013_v11  ;;  %v5071_v20 = vld [vmem:[%s6917_s17 + $0x298] sm:$0xff]  ;;  %v2418_v43 = vadd.f32 %v6608_v22, %v6726_v0  ;;  %v5069_v22 = vld [vmem:[%s6917_s17 + $0x288] sm:$0xff] }
 0x570   :  { %3838 = vmatpush.bf16.msra.mxu2 %v5039_v40  ;;  %3895 = vmatpush.bf16.msrb.mxu1 %v5063_v10  ;;  %v5114_v40 = vld [vmem:[%s6917_s17 + $0x3f0] sm:$0xff]  ;;  %v5091_v10 = vld [vmem:[%s6917_s17 + $0x338] sm:$0xff] }
 0x571   :  { %v2399_v18 = vadd.f32 %v6510_v19, %v2011_v13  ;;  %v2397_v15 = vadd.f32 %v6484_v21, %v2011_v13  ;;  %v2635_v56 = vmax.f32 %v2440_v3, 0.0  ;;  %v5080_v19 = vld [vmem:[%s6917_s17 + $0x2e0] sm:$0xff]  ;;  %v2404_v45 = vadd.f32 %v6549_v42, %v2011_v13  ;;  %3948 = vmatpush.bf16.msrb.mxu0 %v5091_v10  ;;  %v5070_v3 = vld [vmem:[%s6917_s17 + $0x290] sm:$0xff] }
 0x572   :  { %v6634_v44 = vpop.f32.mrf.mxu2  ;;  %3932 = vmatpush.bf16.msra.mxu3 %v5080_v19  ;;  %v2402_v28 = vadd.f32 %v6528_v38, %v2011_v13  ;;  %v5072_v38 = vld [vmem:[%s6917_s17 + $0x2a0] sm:$0xff]  ;;  %v6729_v13 = vperm.slane %v6686_v5, 1  ;;  %v5089_v19 = vld [vmem:[%s6917_s17 + $0x328] sm:$0xff] }
 0x573   :  { %v2617_v41 = vmax.f32 %v2399_v18, 0.0  ;;  %v2601_v21 = vmax.f32 %v2397_v15, 0.0  ;;  %v2649_v36 = vmax.f32 %v2404_v45, 0.0  ;;  %v5090_v18 = vld [vmem:[%s6917_s17 + $0x330] sm:$0xff] }
 0x574   :  { %v2441_v6 = vpop.f32.mrf.mxu1  ;;  %3839 = vmatpush.bf16.msra.mxu2 %v5038_v26  ;;  %3896 = vmatpush.bf16.msrb.mxu1 %v5062_v49  ;;  %v2633_v24 = vmax.f32 %v2402_v28, 0.0  ;;  %v5097_v26 = vld [vmem:[%s6917_s17 + $0x368] sm:$0xff]  ;;  %v5110_v28 = vld [vmem:[%s6917_s17 + $0x3d0] sm:$0xff] }
 0x575   :  { %v2442_v34 = vadd.f32 %v2441_v6, %v2013_v11  ;;  %v2665_v63 = vpack.c.bf16 %v2617_v41, %v2601_v21  ;;  %v5113_v49 = vld [vmem:[%s6917_s17 + $0x3e8] sm:$0xff]  ;;  %3949 = vmatpush.bf16.msrb.mxu0 %v5090_v18  ;;  %v2016_v18 = vperm.slane %v6686_v5, 2 }
 0x576   :  { %3933 = vmatpush.bf16.msra.mxu3 %v5079_v32  ;;  %v2681_v48 = vpack.c.bf16 %v2649_v36, %v2633_v24  ;;  %v5095_v32 = vld [vmem:[%s6917_s17 + $0x358] sm:$0xff] }
 0x577   :  { %v2651_v23 = vmax.f32 %v2442_v34, 0.0  ;;  %v2416_v34 = vadd.f32 %v6588_v55, %v6726_v0 }
 0x578   :  { %3840 = vmatpush.bf16.msra.mxu2 %v5037_v39  ;;  %3897 = vmatpush.bf16.msrb.mxu1 %v5061_v50  ;;  %v2618_v39 = vmax.f32 %v2418_v43, 0.0  ;;  %v2586_v43 = vpop.f32.mrf.mxu3 }
 0x579   :  { %v2683_v2 = vpack.c.bf16 %v2651_v23, %v2635_v56  ;;  %v5096_v56 = vld [vmem:[%s6917_s17 + $0x360] sm:$0xff]  ;;  %3950 = vmatpush.bf16.msrb.mxu0 %v5089_v19 }
 0x57a   :  { %v6657_v59 = vpop.f32.mrf.mxu2  ;;  %3934 = vmatpush.bf16.msra.mxu3 %v5078_v16  ;;  %v5112_v23 = vld [vmem:[%s6917_s17 + $0x3e0] sm:$0xff] }
 0x57b   :  { %3866 = vmatmul.bf16.gmra.mxu3 %v2683_v2  ;;  %v2602_v2 = vmax.f32 %v2416_v34, 0.0 }
 0x57c   :  { %v6668_v7 = vpop.f32.mrf.mxu1  ;;  %3841 = vmatpush.bf16.msra.mxu2 %v5036_v12  ;;  %3898 = vmatpush.bf16.msrb.mxu1 %v5060_v9  ;;  %v5068_v9 = vld [vmem:[%s6917_s17 + $0x280] sm:$0xff] }
 0x57d   :  { %v2473_v15 = vadd.f32 %v6668_v7, %v6729_v13  ;;  %v5111_v7 = vld [vmem:[%s6917_s17 + $0x3d8] sm:$0xff] }
 0x57f   :  { %3766 = vmatmul.bf16.vlgmr.msrb.gmra.mxu2 %v6442_v17  ;;  %3823 = vmatmul.bf16.vlgmr.msra.gmra.mxu1 %v2665_v63  ;;  %v5077_v17 = vld [vmem:[%s6917_s17 + $0x2c8] sm:$0xff]  ;;  %v2605_v21 = vmax.f32 %v2473_v15, 0.0 }
 0x580   :  { %3910 = vmatpush.bf16.msrb.mxu2 %v5075_v29  ;;  %3935 = vmatpush.bf16.msra.mxu3 %v5077_v17  ;;  %v2666_v29 = vpack.c.bf16 %v2618_v39, %v2602_v2  ;;  %v5088_v17 = vld [vmem:[%s6917_s17 + $0x320] sm:$0xff]  ;;  %v5105_v2 = vld [vmem:[%s6917_s17 + $0x3a8] sm:$0xff] }
 0x581   :  { %3967 = vmatpush.bf16.msra.mxu1 %v5099_v25  ;;  %3951 = vmatpush.bf16.msrb.mxu0 %v5088_v17 }
 0x582   :  { %v2453_v11 = vpop.f32.mrf.mxu2 }
 0x583   :  { %v2454_v54 = vadd.f32 %v2453_v11, %v6690_v51 }
 0x584   :  { %v2474_v53 = vpop.f32.mrf.mxu1  ;;  %3911 = vmatpush.bf16.msrb.mxu2 %v5074_v58  ;;  %3936 = vmatpush.bf16.msra.mxu3 %v5076_v62 }
 0x585   :  { %v2604_v47 = vmax.f32 %v2454_v54, 0.0  ;;  %3968 = vmatpush.bf16.msra.mxu1 %v5098_v37  ;;  %v2475_v6 = vadd.f32 %v2474_v53, %v6729_v13  ;;  %v2017_v53 = vperm.slane %v6686_v5, 3  ;;  %v5093_v54 = vld [vmem:[%s6917_s17 + $0x348] sm:$0xff] }
 0x587   :  { %v2621_v50 = vmax.f32 %v2475_v6, 0.0 }
 0x588   :  { %3912 = vmatpush.bf16.msrb.mxu2 %v5073_v57  ;;  %4005 = vmatpush.bf16.msrb.mxu3 %v5115_v14  ;;  %v5087_v57 = vld [vmem:[%s6917_s17 + $0x318] sm:$0xff]  ;;  %v5086_v14 = vld [vmem:[%s6917_s17 + $0x310] sm:$0xff] }
 0x589   :  { %3969 = vmatpush.bf16.msra.mxu1 %v5097_v26  ;;  %v2669_v16 = vpack.c.bf16 %v2621_v50, %v2605_v21  ;;  %3952 = vmatpush.bf16.msrb.mxu0 %v5087_v57 }
 0x58a   :  { %v2455_v42 = vpop.f32.mrf.mxu2 }
 0x58b   :  { %v2456_v52 = vadd.f32 %v2455_v42, %v6690_v51  ;;  %v5109_v42 = vld [vmem:[%s6917_s17 + $0x3c8] sm:$0xff] }
 0x58c   :  { %v6710_v35 = vpop.f32.mrf.mxu1  ;;  %3913 = vmatpush.bf16.msrb.mxu2 %v5072_v38  ;;  %4006 = vmatpush.bf16.msrb.mxu3 %v5114_v40 }
 0x58d   :  { %v2620_v8 = vmax.f32 %v2456_v52, 0.0  ;;  %3970 = vmatpush.bf16.msra.mxu1 %v5096_v56  ;;  %v2423_v52 = vadd.f32 %v6657_v59, %v6726_v0  ;;  %v5092_v59 = vld [vmem:[%s6917_s17 + $0x340] sm:$0xff]  ;;  %3953 = vmatpush.bf16.msrb.mxu0 %v5086_v14  ;;  %v5101_v14 = vld [vmem:[%s6917_s17 + $0x388] sm:$0xff] }
 0x58f   :  { %v2668_v31 = vpack.c.bf16 %v2620_v8, %v2604_v47  ;;  %3771 = vmatmul.bf16.gmra.mxu2 %v6499_v30  ;;  %3828 = vmatmul.bf16.gmra.mxu1 %v2681_v48  ;;  %v2421_v47 = vadd.f32 %v6634_v44, %v6726_v0  ;;  %v2478_v8 = vadd.f32 %v6710_v35, %v6729_v13  ;;  %v2650_v37 = vmax.f32 %v2423_v52, 0.0  ;;  %v5085_v44 = vld [vmem:[%s6917_s17 + $0x308] sm:$0xff] }
 0x590   :  { %3914 = vmatpush.bf16.msrb.mxu2 %v5071_v20  ;;  %4007 = vmatpush.bf16.msrb.mxu3 %v5113_v49  ;;  %v5108_v20 = vld [vmem:[%s6917_s17 + $0x3c0] sm:$0xff] }
 0x591   :  { %3880 = vmatmul.bf16.vlgmr.msra.gmra.mxu0 %v2668_v31  ;;  %3971 = vmatpush.bf16.msra.mxu1 %v5095_v32  ;;  %v2634_v35 = vmax.f32 %v2421_v47, 0.0  ;;  %v2637_v0 = vmax.f32 %v2478_v8, 0.0  ;;  %v5084_v49 = vld [vmem:[%s6917_s17 + $0x300] sm:$0xff] }
 0x592   :  { %v2458_v30 = vpop.f32.mrf.mxu2  ;;  %3954 = vmatpush.bf16.msrb.mxu0 %v5085_v44 }
 0x593   :  { %v2459_v55 = vadd.f32 %v2458_v30, %v6690_v51 }
 0x594   :  { %v2479_v4 = vpop.f32.mrf.mxu1  ;;  %3915 = vmatpush.bf16.msrb.mxu2 %v5070_v3  ;;  %4008 = vmatpush.bf16.msrb.mxu3 %v5112_v23  ;;  %v2682_v3 = vpack.c.bf16 %v2650_v37, %v2634_v35  ;;  %v5106_v23 = vld [vmem:[%s6917_s17 + $0x3b0] sm:$0xff]  ;;  %v5100_v35 = vld [vmem:[%s6917_s17 + $0x380] sm:$0xff] }
 0x595   :  { %v2636_v11 = vmax.f32 %v2459_v55, 0.0  ;;  %v2480_v38 = vadd.f32 %v2479_v4, %v6729_v13  ;;  %v5107_v4 = vld [vmem:[%s6917_s17 + $0x3b8] sm:$0xff] }
 0x596   :  { %3955 = vmatpush.bf16.msrb.mxu0 %v5084_v49 }
 0x597   :  { %v2653_v40 = vmax.f32 %v2480_v38, 0.0 }
 0x598   :  { %3916 = vmatpush.bf16.msrb.mxu2 %v5069_v22  ;;  %4009 = vmatpush.bf16.msrb.mxu3 %v5111_v7 }
 0x599   :  { %v2685_v26 = vpack.c.bf16 %v2653_v40, %v2637_v0 }
 0x59a   :  { %v2460_v41 = vpop.f32.mrf.mxu2 }
 0x59b   :  { %v2461_v12 = vadd.f32 %v2460_v41, %v6690_v51  ;;  %v5094_v51 = vld [vmem:[%s6917_s17 + $0x350] sm:$0xff] }
 0x59c   :  { %v2510_v63 = vpop.f32.mrf.mxu1  ;;  %3917 = vmatpush.bf16.msrb.mxu2 %v5068_v9  ;;  %3972 = vmatpush.bf16.msra.mxu1 %v5094_v51  ;;  %v2588_v9 = vpop.f32.mrf.mxu3 }
 0x59d   :  { %v2652_v58 = vmax.f32 %v2461_v12, 0.0  ;;  %4010 = vmatpush.bf16.msrb.mxu3 %v5110_v28  ;;  %v2511_v36 = vadd.f32 %v2510_v63, %v2017_v53  ;;  %v5104_v63 = vld [vmem:[%s6917_s17 + $0x3a0] sm:$0xff] }
 0x59f   :  { %3842 = vmatmul.bf16.vlgmr.msra.gmra.mxu2 %v2666_v29  ;;  %3899 = vmatmul.bf16.vlgmr.msrb.gmra.mxu1 %v2669_v16  ;;  %v2684_v45 = vpack.c.bf16 %v2652_v58, %v2636_v11  ;;  %v2607_v48 = vmax.f32 %v2511_v36, 0.0  ;;  %v2021_v29 = vperm.slane %v6686_v5, 7  ;;  %v2019_v16 = vperm.slane %v6686_v5, 5  ;;  %v5103_v58 = vld [vmem:[%s6917_s17 + $0x398] sm:$0xff] }
 0x5a0   :  { %3973 = vmatpush.bf16.msra.mxu1 %v5093_v54  ;;  %3986 = vmatpush.bf16.msra.mxu2 %v5107_v4  ;;  %v2018_v36 = vperm.slane %v6686_v5, 4 }
 0x5a1   :  { %3885 = vmatmul.bf16.gmra.mxu0 %v2684_v45  ;;  %4011 = vmatpush.bf16.msrb.mxu3 %v5109_v42  ;;  %v2589_v11 = vadd.f32 %v2588_v9, %v2021_v29  ;;  %v5102_v42 = vld [vmem:[%s6917_s17 + $0x390] sm:$0xff] }
 0x5a2   :  { %v2491_v62 = vpop.f32.mrf.mxu2 }
 0x5a3   :  { %v2492_v39 = vadd.f32 %v2491_v62, %v2016_v18  ;;  %v2627_v57 = vmax.f32 %v2589_v11, 0.0  ;;  %v2020_v11 = vperm.slane %v6686_v5, 6 }
 0x5a4   :  { %v2512_v24 = vpop.f32.mrf.mxu1  ;;  %3974 = vmatpush.bf16.msra.mxu1 %v5092_v59  ;;  %3987 = vmatpush.bf16.msra.mxu2 %v5106_v23  ;;  %v2591_v51 = vpop.f32.mrf.mxu3 }
 0x5a5   :  { %v2513_v25 = vadd.f32 %v2512_v24, %v2017_v53  ;;  %4012 = vmatpush.bf16.msrb.mxu3 %v5108_v20  ;;  %v2606_v12 = vmax.f32 %v2492_v39, 0.0  ;;  %v2592_v49 = vadd.f32 %v2591_v51, %v2021_v29 }
 0x5a7   :  { %v2623_v31 = vmax.f32 %v2513_v25, 0.0 }
 0x5a8   :  { %3988 = vmatpush.bf16.msra.mxu2 %v5105_v2 }
 0x5a9   :  { %v2671_v10 = vpack.c.bf16 %v2623_v31, %v2607_v48 }
 0x5aa   :  { %v2493_v30 = vpop.f32.mrf.mxu2 }
 0x5ab   :  { %3937 = vmatmul.bf16.vlgmr.msra.gmra.mxu3 %v2671_v10  ;;  %v2494_v22 = vadd.f32 %v2493_v30, %v2016_v18 }
 0x5ac   :  { %v2515_v13 = vpop.f32.mrf.mxu1  ;;  %3989 = vmatpush.bf16.msra.mxu2 %v5104_v63  ;;  %v2593_v0 = vpop.f32.mrf.mxu3 }
 0x5ad   :  { %v2516_v34 = vadd.f32 %v2515_v13, %v2017_v53  ;;  %v2622_v19 = vmax.f32 %v2494_v22, 0.0  ;;  %v5129_v22 = vld [vmem:[%s6946_s10] ss:$0 sm:$0xff] }
 0x5af   :  { %3847 = vmatmul.bf16.gmra.mxu2 %v2682_v3  ;;  %3904 = vmatmul.bf16.gmra.mxu1 %v2685_v26  ;;  %v2639_v50 = vmax.f32 %v2516_v34, 0.0  ;;  %v2670_v7 = vpack.c.bf16 %v2622_v19, %v2606_v12  ;;  %v2594_v3 = vadd.f32 %v2593_v0, %v2021_v29 }
 0x5b0   :  { %3990 = vmatpush.bf16.msra.mxu2 %v5103_v58 }
 0x5b2   :  { %v2496_v6 = vpop.f32.mrf.mxu2 }
 0x5b3   :  { %v2497_v52 = vadd.f32 %v2496_v6, %v2016_v18 }
 0x5b4   :  { %v2517_v15 = vpop.f32.mrf.mxu1  ;;  %3991 = vmatpush.bf16.msra.mxu2 %v5102_v42 }
 0x5b5   :  { %v2518_v56 = vadd.f32 %v2517_v15, %v2017_v53  ;;  %v2587_v53 = vadd.f32 %v2586_v43, %v2021_v29  ;;  %v2638_v20 = vmax.f32 %v2497_v52, 0.0  ;;  %v3729_v43 = vpop.f32.mrf.mxu0  ;;  %v2643_v15 = vmax.f32 %v2592_v49, 0.0 }
 0x5b7   :  { %v2655_v55 = vmax.f32 %v2518_v56, 0.0  ;;  %v2611_v24 = vmax.f32 %v2587_v53, 0.0 }
 0x5b8   :  { %3992 = vmatpush.bf16.msra.mxu2 %v5101_v14 }
 0x5b9   :  { %v2687_v41 = vpack.c.bf16 %v2655_v55, %v2639_v50  ;;  %v2675_v47 = vpack.c.bf16 %v2627_v57, %v2611_v24 }
 0x5ba   :  { %v2498_v21 = vpop.f32.mrf.mxu2 }
 0x5bb   :  { %3942 = vmatmul.bf16.gmra.mxu3 %v2687_v41  ;;  %v2499_v62 = vadd.f32 %v2498_v21, %v2016_v18  ;;  %v2659_v18 = vmax.f32 %v2594_v3, 0.0  ;;  %v3730_v41 = vadd.f32 %v5129_v22, %v3729_v43 }
 0x5bc   :  { %v2548_v32 = vpop.f32.mrf.mxu1  ;;  %3993 = vmatpush.bf16.msra.mxu2 %v5100_v35 }
 0x5bd   :  { %v2549_v45 = vadd.f32 %v2548_v32, %v2019_v16  ;;  %v2654_v8 = vmax.f32 %v2499_v62, 0.0  ;;  %v2691_v39 = vpack.c.bf16 %v2659_v18, %v2643_v15 }
 0x5bf   :  { %3918 = vmatmul.bf16.vlgmr.msrb.gmra.mxu2 %v2670_v7  ;;  %v2609_v38 = vmax.f32 %v2549_v45, 0.0  ;;  %v2686_v30 = vpack.c.bf16 %v2654_v8, %v2638_v20  ;;  %v3731_v7 = vpop.f32.mrf.mxu0  ;;  %v3786_v8 = vpop.f32.mrf.mxu3 }
 0x5c2   :  { %v2529_v17 = vpop.f32.mrf.mxu2 }
 0x5c3   :  { %v2530_v48 = vadd.f32 %v2529_v17, %v2018_v36 }
 0x5c4   :  { %v2550_v28 = vpop.f32.mrf.mxu1 }
 0x5c5   :  { %v2551_v54 = vadd.f32 %v2550_v28, %v2019_v16  ;;  %v2608_v10 = vmax.f32 %v2530_v48, 0.0 }
 0x5c7   :  { %v2625_v25 = vmax.f32 %v2551_v54, 0.0  ;;  %v3734_v58 = vpop.f32.mrf.mxu0 }
 0x5c8   :  { %v3735_v45 = vadd.f32 %v5129_v22, %v3734_v58 }
 0x5c9   :  { %v2673_v31 = vpack.c.bf16 %v2625_v25, %v2609_v38 }
 0x5ca   :  { %v2531_v59 = vpop.f32.mrf.mxu2 }
 0x5cb   :  { %v2532_v37 = vadd.f32 %v2531_v59, %v2018_v36  ;;  %3975 = vmatmul.bf16.vlgmr.msra.gmra.mxu1 %v2673_v31  ;;  %4013 = vmatmul.bf16.vlgmr.msrb.gmra.mxu3 %v2675_v47 }
 0x5cc   :  { %v2553_v40 = vpop.f32.mrf.mxu1 }
 0x5cd   :  { %v2624_v44 = vmax.f32 %v2532_v37, 0.0  ;;  %v2554_v4 = vadd.f32 %v2553_v40, %v2019_v16  ;;  %v3788_v40 = vpop.f32.mrf.mxu3 }
 0x5cf   :  { %v2672_v13 = vpack.c.bf16 %v2624_v44, %v2608_v10  ;;  %3923 = vmatmul.bf16.gmra.mxu2 %v2686_v30  ;;  %v2641_v56 = vmax.f32 %v2554_v4, 0.0  ;;  %v3736_v42 = vpop.f32.mrf.mxu0  ;;  %v3732_v10 = vadd.f32 %v5129_v22, %v3731_v7 }
 0x5d0   :  { %v3737_v52 = vadd.f32 %v5129_v22, %v3736_v42 }
 0x5d1   :  { %3956 = vmatmul.bf16.vlgmr.msrb.gmra.mxu0 %v2672_v13 }
 0x5d2   :  { %v2534_v26 = vpop.f32.mrf.mxu2 }
 0x5d3   :  { %v2535_v50 = vadd.f32 %v2534_v26, %v2018_v36 }
 0x5d4   :  { %v2555_v6 = vpop.f32.mrf.mxu1 }
 0x5d5   :  { %v2556_v34 = vadd.f32 %v2555_v6, %v2019_v16  ;;  %v2640_v12 = vmax.f32 %v2535_v50, 0.0  ;;  %v3791_v0 = vpop.f32.mrf.mxu3 }
 0x5d7   :  { %v2657_v23 = vmax.f32 %v2556_v34, 0.0  ;;  %v3805_v49 = vpop.f32.mrf.mxu0 }
 0x5d9   :  { %v2689_v55 = vpack.c.bf16 %v2657_v23, %v2641_v56 }
 0x5da   :  { %v2536_v19 = vpop.f32.mrf.mxu2 }
 0x5db   :  { %v2537_v2 = vadd.f32 %v2536_v19, %v2018_v36  ;;  %3980 = vmatmul.bf16.gmra.mxu1 %v2689_v55  ;;  %4018 = vmatmul.bf16.gmra.mxu3 %v2691_v39 }
 0x5dc   :  { %v3748_v21 = vpop.f32.mrf.mxu1 }
 0x5dd   :  { %v2656_v9 = vmax.f32 %v2537_v2, 0.0  ;;  %v3749_v32 = vadd.f32 %v3748_v21, %v3730_v41  ;;  %v3793_v26 = vpop.f32.mrf.mxu3 }
 0x5df   :  { %v2688_v63 = vpack.c.bf16 %v2656_v9, %v2640_v12  ;;  %v3807_v15 = vpop.f32.mrf.mxu0 }
 0x5e1   :  { %3961 = vmatmul.bf16.gmra.mxu0 %v2688_v63 }
 0x5e2   :  { %v2567_v29 = vpop.f32.mrf.mxu2 }
 0x5e3   :  { %v2568_v17 = vadd.f32 %v2567_v29, %v2020_v11 }
 0x5e4   :  { %v3750_v16 = vpop.f32.mrf.mxu1 }
 0x5e5   :  { %v2610_v57 = vmax.f32 %v2568_v17, 0.0  ;;  %v3751_v44 = vadd.f32 %v3750_v16, %v3732_v10 }
 0x5e7   :  { %v3810_v50 = vpop.f32.mrf.mxu0 }
 0x5ea   :  { %v2569_v53 = vpop.f32.mrf.mxu2 }
 0x5eb   :  { %v2570_v51 = vadd.f32 %v2569_v53, %v2020_v11 }
 0x5ec   :  { %v3753_v28 = vpop.f32.mrf.mxu1 }
 0x5ed   :  { %v2626_v62 = vmax.f32 %v2570_v51, 0.0  ;;  %v3754_v36 = vadd.f32 %v3753_v28, %v3735_v45 }
 0x5ee   :  { %v3862_v34 = vpop.f32.mrf.mxu3 }
 0x5ef   :  { %v2674_v54 = vpack.c.bf16 %v2626_v62, %v2610_v57  ;;  %v3812_v41 = vpop.f32.mrf.mxu0 }
 0x5f1   :  { %3994 = vmatmul.bf16.vlgmr.msra.gmra.mxu2 %v2674_v54 }
 0x5f2   :  { %v2572_v24 = vpop.f32.mrf.mxu2 }
 0x5f3   :  { %v2573_v14 = vadd.f32 %v2572_v24, %v2020_v11 }
 0x5f4   :  { %v3755_v38 = vpop.f32.mrf.mxu1 }
 0x5f5   :  { %v3756_v25 = vadd.f32 %v3755_v38, %v3737_v52  ;;  %v2642_v48 = vmax.f32 %v2573_v14, 0.0 }
 0x5f6   :  { %v3864_v39 = vpop.f32.mrf.mxu3 }
 0x5fa   :  { %v2574_v47 = vpop.f32.mrf.mxu2 }
 0x5fb   :  { %v2575_v5 = vadd.f32 %v2574_v47, %v2020_v11 }
 0x5fc   :  { %v3824_v18 = vpop.f32.mrf.mxu1 }
 0x5fd   :  { %v2658_v31 = vmax.f32 %v2575_v5, 0.0 }
 0x5fe   :  { %v3867_v19 = vpop.f32.mrf.mxu3 }
 0x5ff   :  { %v2690_v59 = vpack.c.bf16 %v2658_v31, %v2642_v48 }
 0x601   :  { %3999 = vmatmul.bf16.gmra.mxu2 %v2690_v59 }
 0x602   :  { %v3767_v20 = vpop.f32.mrf.mxu2 }
 0x603   :  { %v3768_v37 = vadd.f32 %v3767_v20, %v3749_v32 }
 0x604   :  { %v3826_v23 = vpop.f32.mrf.mxu1 }
 0x605   :  { %v3787_v58 = vadd.f32 %v3786_v8, %v3768_v37 }
 0x606   :  { %v3869_v12 = vpop.f32.mrf.mxu3 }
 0x607   :  { %v3806_v45 = vadd.f32 %v3805_v49, %v3787_v58 }
 0x609   :  { %v3825_v57 = vadd.f32 %v3824_v18, %v3806_v45 }
 0x60a   :  { %v3769_v30 = vpop.f32.mrf.mxu2 }
 0x60b   :  { %v3770_v35 = vadd.f32 %v3769_v30, %v3751_v44 }
 0x60c   :  { %v3829_v22 = vpop.f32.mrf.mxu1 }
 0x60d   :  { %v3789_v28 = vadd.f32 %v3788_v40, %v3770_v35 }
 0x60e   :  { %v3881_v9 = vpop.f32.mrf.mxu0 }
 0x60f   :  { %v3808_v42 = vadd.f32 %v3807_v15, %v3789_v28 }
 0x612   :  { %v3772_v13 = vpop.f32.mrf.mxu2 }
 0x613   :  { %v3773_v3 = vadd.f32 %v3772_v13, %v3754_v36 }
 0x614   :  { %v3831_v21 = vpop.f32.mrf.mxu1 }
 0x615   :  { %v3792_v38 = vadd.f32 %v3791_v0, %v3773_v3 }
 0x616   :  { %v3883_v29 = vpop.f32.mrf.mxu0 }
 0x617   :  { %v3811_v31 = vadd.f32 %v3810_v50, %v3792_v38 }
 0x619   :  { %v3830_v10 = vadd.f32 %v3829_v22, %v3811_v31 }
 0x61a   :  { %v3774_v4 = vpop.f32.mrf.mxu2 }
 0x61b   :  { %v3775_v43 = vadd.f32 %v3774_v4, %v3756_v25  ;;  %v3827_v25 = vadd.f32 %v3826_v23, %v3808_v42 }
 0x61c   :  { %v3900_v7 = vpop.f32.mrf.mxu1 }
 0x61d   :  { %v3794_v6 = vadd.f32 %v3793_v26, %v3775_v43 }
 0x61e   :  { %v3886_v53 = vpop.f32.mrf.mxu0 }
 0x61f   :  { %v3813_v26 = vadd.f32 %v3812_v41, %v3794_v6 }
 0x622   :  { %v3843_v56 = vpop.f32.mrf.mxu2 }
 0x623   :  { %v3844_v36 = vadd.f32 %v3843_v56, %v3825_v57 }
 0x624   :  { %v3902_v11 = vpop.f32.mrf.mxu1 }
 0x625   :  { %v3863_v52 = vadd.f32 %v3862_v34, %v3844_v36  ;;  %v3832_v34 = vadd.f32 %v3831_v21, %v3813_v26 }
 0x626   :  { %v3888_v24 = vpop.f32.mrf.mxu0 }
 0x627   :  { %v3882_v5 = vadd.f32 %v3881_v9, %v3863_v52 }
 0x629   :  { %v3901_v37 = vadd.f32 %v3900_v7, %v3882_v5 }
 0x62a   :  { %v3845_v55 = vpop.f32.mrf.mxu2 }
 0x62b   :  { %v3846_v47 = vadd.f32 %v3845_v55, %v3827_v25 }
 0x62c   :  { %v3905_v62 = vpop.f32.mrf.mxu1 }
 0x62d   :  { %v3865_v20 = vadd.f32 %v3864_v39, %v3846_v47 }
 0x62e   :  { %v3938_v63 = vpop.f32.mrf.mxu3 }
 0x62f   :  { %v3884_v30 = vadd.f32 %v3883_v29, %v3865_v20 }
 0x631   :  { %v3903_v0 = vadd.f32 %v3902_v11, %v3884_v30 }
 0x632   :  { %v3848_v2 = vpop.f32.mrf.mxu2 }
 0x633   :  { %v3849_v44 = vadd.f32 %v3848_v2, %v3830_v10 }
 0x634   :  { %v3907_v48 = vpop.f32.mrf.mxu1 }
 0x635   :  { %v3868_v4 = vadd.f32 %v3867_v19, %v3849_v44 }
 0x636   :  { %v3940_v17 = vpop.f32.mrf.mxu3 }
 0x637   :  { %v3887_v23 = vadd.f32 %v3886_v53, %v3868_v4 }
 0x639   :  { %v3906_v7 = vadd.f32 %v3905_v62, %v3887_v23 }
 0x63a   :  { %v3850_v32 = vpop.f32.mrf.mxu2 }
 0x63b   :  { %v3851_v56 = vadd.f32 %v3850_v32, %v3832_v34 }
 0x63d   :  { %v3870_v2 = vadd.f32 %v3869_v12, %v3851_v56 }
 0x63e   :  { %v3943_v54 = vpop.f32.mrf.mxu3 }
 0x63f   :  { %v3889_v11 = vadd.f32 %v3888_v24, %v3870_v2 }
 0x642   :  { %v3919_v16 = vpop.f32.mrf.mxu2 }
 0x643   :  { %v3920_v40 = vadd.f32 %v3919_v16, %v3901_v37 }
 0x645   :  { %v3939_v49 = vadd.f32 %v3938_v63, %v3920_v40 }
 0x646   :  { %v3945_v8 = vpop.f32.mrf.mxu3 }
 0x648   :  { %v3976_v35 = vpop.f32.mrf.mxu1 }
 0x64a   :  { %v3921_v51 = vpop.f32.mrf.mxu2 }
 0x64b   :  { %v3922_v15 = vadd.f32 %v3921_v51, %v3903_v0 }
 0x64d   :  { %v3941_v55 = vadd.f32 %v3940_v17, %v3922_v15  ;;  %v3908_v17 = vadd.f32 %v3907_v48, %v3889_v11 }
 0x64e   :  { %v3957_v59 = vpop.f32.mrf.mxu0  ;;  %v4014_v43 = vpop.f32.mrf.mxu3 }
 0x64f   :  { %v3958_v3 = vadd.f32 %v3957_v59, %v3939_v49 }
 0x650   :  { %v3978_v9 = vpop.f32.mrf.mxu1 }
 0x651   :  { %v3977_v50 = vadd.f32 %v3976_v35, %v3958_v3 }
 0x652   :  { %v3924_v14 = vpop.f32.mrf.mxu2 }
 0x653   :  { %v3925_v6 = vadd.f32 %v3924_v14, %v3906_v7 }
 0x655   :  { %v3944_v53 = vadd.f32 %v3943_v54, %v3925_v6 }
 0x656   :  { %v3959_v18 = vpop.f32.mrf.mxu0  ;;  %v4016_v41 = vpop.f32.mrf.mxu3 }
 0x657   :  { %v3960_v29 = vadd.f32 %v3959_v18, %v3941_v55 }
 0x658   :  { %v3981_v12 = vpop.f32.mrf.mxu1 }
 0x659   :  { %v3979_v58 = vadd.f32 %v3978_v9, %v3960_v29 }
 0x65a   :  { %v3926_v13 = vpop.f32.mrf.mxu2 }
 0x65b   :  { %v3927_v57 = vadd.f32 %v3926_v13, %v3908_v17 }
 0x65d   :  { %v3946_v38 = vadd.f32 %v3945_v8, %v3927_v57 }
 0x65e   :  { %v3962_v63 = vpop.f32.mrf.mxu0  ;;  %v4019_v36 = vpop.f32.mrf.mxu3 }
 0x65f   :  { %v3963_v51 = vadd.f32 %v3962_v63, %v3944_v53 }
 0x660   :  { %v3983_v5 = vpop.f32.mrf.mxu1 }
 0x661   :  { %v3982_v42 = vadd.f32 %v3981_v12, %v3963_v51 }
 0x666   :  { %v3964_v52 = vpop.f32.mrf.mxu0  ;;  %v4021_v20 = vpop.f32.mrf.mxu3 }
 0x667   :  { %v3965_v14 = vadd.f32 %v3964_v52, %v3946_v38 }
 0x669   :  { %v3984_v48 = vadd.f32 %v3983_v5, %v3965_v14 }
 0x674   :  { %v3995_v39 = vpop.f32.mrf.mxu2 }
 0x675   :  { %v3996_v22 = vadd.f32 %v3995_v39, %v3977_v50 }
 0x677   :  { %v4015_v16 = vadd.f32 %v4014_v43, %v3996_v22 }
 0x679   :  { %v4024_v19 = vadd.f32 %v4015_v16, %v6084_v61 }
 0x67b   :  { %v4028_v21 = vsel %vm112_vm1, %v4024_v19, 0.0 }
 0x67c   :  { %v3997_v32 = vpop.f32.mrf.mxu2  ;;  %4029 = vadd.xlane.f32.xlu0 %v4028_v21  ;;  %v5281_v21 = vmov 0  }
 0x67d   :  { %v3998_v45 = vadd.f32 %v3997_v32, %v3979_v58  ;;  %5121 = vset.pattern.permute.xlu2 %v5281_v21  ;;  %5122 = vset.pattern.permute.xlu0 %v5281_v21 }
 0x67f   :  { %v4017_v28 = vadd.f32 %v4016_v41, %v3998_v45 }
 0x681   :  { %v4025_v62 = vadd.f32 %v4017_v28, %v6081_v60  ;;  %v5130_v28 = vld [vmem:[%s6920_s19] ss:$0 sm:$0xff] }
 0x683   :  { %v4031_v61 = vsel %vm112_vm1, %v4025_v62, 0.0 }
 0x684   :  { %v4000_v24 = vpop.f32.mrf.mxu2  ;;  %4032 = vadd.xlane.f32.xlu1 %v4031_v61 }
 0x685   :  { %v4001_v25 = vadd.f32 %v4000_v24, %v3982_v42 }
 0x687   :  { %v4020_v47 = vadd.f32 %v4019_v36, %v4001_v25  ;;  %v5131_v36 = vld [vmem:[%s6921_s20] ss:$0 sm:$0xff] }
 0x688   :  { %v5132_v25 = vld [vmem:[%s6922_s21] ss:$0 sm:$0xff] }
 0x689   :  { %v4026_v54 = vadd.f32 %v4020_v47, %v6160_v1 }
 0x68b   :  { %v4034_v31 = vsel %vm112_vm1, %v4026_v54, 0.0 }
 0x68c   :  { %v4002_v59 = vpop.f32.mrf.mxu2  ;;  %4035 = vadd.xlane.f32.xlu2 %v4034_v31 }
 0x68d   :  { %v4003_v60 = vadd.f32 %v4002_v59, %v3984_v48 }
 0x68f   :  { %v4022_v37 = vadd.f32 %v4021_v20, %v4003_v60 }
 0x691   :  { %v4027_v10 = vadd.f32 %v4022_v37, %v6163_v46 }
 0x693   :  { %v4037_v40 = vsel %vm112_vm1, %v4027_v10, 0.0 }
 0x694   :  { %4038 = vadd.xlane.f32.xlu0 %v4037_v40 }
 0x6ef   :  { %v4030_v8 = vpop.xlane.xlu0 %4029 }
 0x6f0   :  { %v4040_v44 = vmul.f32 %v4030_v8, %v5986_v33 }
 0x6f2   :  { %v4044_v30 = vsub.f32 %v4024_v19, %v4040_v44  ;;  %v28_v19 = vstv %s6923_s22 }
 0x6f3   :  { %29 = vst [vmem:[#allocation2] sm:$0x1] %v28_v19 }
 0x6f4   :  { %v4048_v35 = vmul.f32 %v4044_v30, %v4044_v30 }
 0x6f6   :  { %v4052_v1 = vsel %vm112_vm1, %v4048_v35, 0.0 }
 0x6f7   :  { %v4033_v13 = vpop.xlane.xlu1 %4032  ;;  %4053 = vadd.xlane.f32.xlu1 %v4052_v1 }
 0x6f8   :  { %v4041_v26 = vmul.f32 %v4033_v13, %v5986_v33 }
 0x6fa   :  { %v6857_v49 = vsub.f32 %v4025_v62, %v4041_v26  ;;  %v4152_v42 = vld [vmem:[#allocation2] sm:$0x1] }
 0x6fc   :  { %v4049_v4 = vmul.f32 %v6857_v49, %v6857_v49 }
 0x6fe   :  { %v4055_v46 = vsel %vm112_vm1, %v4049_v4, 0.0 }
 0x6ff   :  { %4056 = vadd.xlane.f32.xlu2 %v4055_v46  ;;  %v4036_v0 = vpop.xlane.xlu2 %4035 }
 0x700   :  { %v4042_v3 = vmul.f32 %v4036_v0, %v5986_v33 }
 0x702   :  { %v6863_v43 = vsub.f32 %v4026_v54, %v4042_v3 }
 0x704   :  { %v4050_v18 = vmul.f32 %v6863_v43, %v6863_v43 }
 0x706   :  { %v4058_v34 = vsel %vm112_vm1, %v4050_v18, 0.0 }
 0x707   :  { %v4039_v15 = vpop.xlane.xlu0 %4038  ;;  %4059 = vadd.xlane.f32.xlu0 %v4058_v34 }
 0x708   :  { %v4043_v56 = vmul.f32 %v4039_v15, %v5986_v33 }
 0x70a   :  { %v6869_v23 = vsub.f32 %v4027_v10, %v4043_v56 }
 0x70c   :  { %v4051_v50 = vmul.f32 %v6869_v23, %v6869_v23 }
 0x70e   :  { %v4061_v39 = vsel %vm112_vm1, %v4051_v50, 0.0 }
 0x70f   :  { %4062 = vadd.xlane.f32.xlu1 %v4061_v39 }
 0x717   :  { %4155 = vperm.xlu2 %5121, %v4152_v42  }
 0x76a   :  { %v4054_v55 = vpop.xlane.xlu1 %4053 }
 0x76b   :  { %v4064_v22 = vmul.f32 %v4054_v55, %v5986_v33 }
 0x76d   :  { %v4068_v9 = vadd.f32 1e-05, %v4064_v22 }
 0x76f   :  { %5271 = vrsqrt.f32 %v4068_v9  ;;  %vm4078_vm10 = vweird.f32 %v4068_v9 }
 0x772   :  { %v4057_v2 = vpop.xlane.xlu2 %4056 }
 0x773   :  { %v4065_v7 = vmul.f32 %v4057_v2, %v5986_v33 }
 0x775   :  { %v5272_v29 = vpop.eup %5271  ;;  %v4069_v16 = vadd.f32 1e-05, %v4065_v7 }
 0x776   :  { %v4073_v6 = vmul.f32 %v5272_v29, %v4068_v9  ;;  %vm4079_vm0 = vweird.f32 %v5272_v29 }
 0x777   :  { %5273 = vrsqrt.f32 %v4069_v16  ;;  %vm4080_vm11 = vmor %vm4078_vm10, %vm4079_vm0  ;;  %vm4088_vm13 = vweird.f32 %v4069_v16 }
 0x778   :  { %v4074_v41 = vmul.f32 %v5272_v29, %v4073_v6  ;;  %v4168_v6 = vand.u32 127, %v544_v27 }
 0x77a   :  { %v4075_v63 = vmul.f32 0.5, %v4074_v41  ;;  %v4060_v11 = vpop.xlane.xlu0 %4059 }
 0x77b   :  { %v4066_v58 = vmul.f32 %v4060_v11, %v5986_v33 }
 0x77c   :  { %v4076_v32 = vsub.f32 1.5, %v4075_v63  ;;  %v4170_v63 = vadd.s32 4294967288, %v4168_v6 }
 0x77d   :  { %v5274_v53 = vpop.eup %5273  ;;  %v4070_v45 = vadd.f32 1e-05, %v4066_v58  ;;  %v4174_v58 = vadd.s32 4294967280, %v4168_v6 }
 0x77e   :  { %v4077_v17 = vmul.f32 %v5272_v29, %v4076_v32  ;;  %v4083_v51 = vmul.f32 %v5274_v53, %v4069_v16  ;;  %vm4089_vm12 = vweird.f32 %v5274_v53 }
 0x77f   :  { %5275 = vrsqrt.f32 %v4070_v45  ;;  %vm4090_vm14 = vmor %vm4088_vm13, %vm4089_vm12  ;;  %vm4098_vm2 = vweird.f32 %v4070_v45 }
 0x780   :  { %v4081_v12 = vsel %vm4080_vm11, %v5272_v29, %v4077_v17  ;;  %v4084_v57 = vmul.f32 %v5274_v53, %v4083_v51  ;;  %v4156_v29 = vpop.permute.xlu2 %4155 }
 0x781   :  { %v4112_v62 = vmul.f32 %v4081_v12, %v4044_v30  ;;  %v4158_v41 = vperm.slane %v4156_v29, 0 }
 0x782   :  { %v4085_v61 = vmul.f32 0.5, %v4084_v57  ;;  %v4063_v52 = vpop.xlane.xlu1 %4062 }
 0x783   :  { %v4067_v24 = vmul.f32 %v4063_v52, %v5986_v33  ;;  %v4120_v38 = vmul.f32 %v5130_v28, %v4112_v62 }
 0x784   :  { %v4086_v14 = vsub.f32 1.5, %v4085_v61 }
 0x785   :  { %v5276_v47 = vpop.eup %5275  ;;  %v4071_v54 = vadd.f32 1e-05, %v4067_v24  ;;  %v4128_v5 = vadd.f32 %v5131_v36, %v4120_v38 }
 0x786   :  { %v4087_v48 = vmul.f32 %v5274_v53, %v4086_v14  ;;  %v4093_v31 = vmul.f32 %v5276_v47, %v4070_v45  ;;  %vm4099_vm15 = vweird.f32 %v5276_v47 }
 0x787   :  { %5277 = vrsqrt.f32 %v4071_v54  ;;  %v4136_v59 = vmul.f32 %v5132_v25, %v4128_v5  ;;  %vm4100_vm3 = vmor %vm4098_vm2, %vm4099_vm15  ;;  %vm4108_vm5 = vweird.f32 %v4071_v54 }
 0x788   :  { %v4091_v60 = vsel %vm4090_vm14, %v5274_v53, %v4087_v48  ;;  %v4094_v20 = vmul.f32 %v5276_v47, %v4093_v31  ;;  %v4178_v53 = vadd.s32 4294967272, %v4168_v6 }
 0x789   :  { %v4140_v33 = vsel %vm112_vm1, %v4136_v59, 0.0  ;;  %v4113_v37 = vmul.f32 %v4091_v60, %v6857_v49 }
 0x78a   :  { %v4095_v10 = vmul.f32 0.5, %v4094_v20  ;;  %4141 = vadd.xlane.f32.xlu0 %v4140_v33 }
 0x78b   :  { %v4121_v40 = vmul.f32 %v5130_v28, %v4113_v37 }
 0x78c   :  { %v4096_v8 = vsub.f32 1.5, %v4095_v10 }
 0x78d   :  { %v5278_v44 = vpop.eup %5277  ;;  %v4129_v30 = vadd.f32 %v5131_v36, %v4121_v40 }
 0x78e   :  { %v4097_v35 = vmul.f32 %v5276_v47, %v4096_v8  ;;  %v4103_v1 = vmul.f32 %v5278_v44, %v4071_v54  ;;  %vm4109_vm4 = vweird.f32 %v5278_v44 }
 0x78f   :  { %v4137_v13 = vmul.f32 %v5132_v25, %v4129_v30  ;;  %vm4110_vm6 = vmor %vm4108_vm5, %vm4109_vm4 }
 0x790   :  { %v4101_v26 = vsel %vm4100_vm3, %v5276_v47, %v4097_v35  ;;  %v4104_v4 = vmul.f32 %v5278_v44, %v4103_v1 }
 0x791   :  { %v4143_v46 = vsel %vm112_vm1, %v4137_v13, 0.0  ;;  %v4114_v0 = vmul.f32 %v4101_v26, %v6863_v43 }
 0x792   :  { %v4105_v3 = vmul.f32 0.5, %v4104_v4  ;;  %4144 = vadd.xlane.f32.xlu1 %v4143_v46 }
 0x793   :  { %v4122_v49 = vmul.f32 %v5130_v28, %v4114_v0 }
 0x794   :  { %v4106_v18 = vsub.f32 1.5, %v4105_v3 }
 0x795   :  { %v4130_v34 = vadd.f32 %v5131_v36, %v4122_v49 }
 0x796   :  { %v4107_v15 = vmul.f32 %v5278_v44, %v4106_v18 }
 0x797   :  { %v4138_v56 = vmul.f32 %v5132_v25, %v4130_v34 }
 0x798   :  { %v4111_v50 = vsel %vm4110_vm6, %v5278_v44, %v4107_v15 }
 0x799   :  { %v4146_v39 = vsel %vm112_vm1, %v4138_v56, 0.0  ;;  %v4115_v55 = vmul.f32 %v4111_v50, %v6869_v23 }
 0x79a   :  { %4147 = vadd.xlane.f32.xlu0 %v4146_v39 }
 0x79b   :  { %v4123_v22 = vmul.f32 %v5130_v28, %v4115_v55 }
 0x79d   :  { %v4131_v9 = vadd.f32 %v5131_v36, %v4123_v22 }
 0x79f   :  { %v4139_v2 = vmul.f32 %v5132_v25, %v4131_v9 }
 0x7a1   :  { %v4149_v43 = vsel %vm112_vm1, %v4139_v2, 0.0  ;;  %vm4176_vm1 = vcmask 195712  }
 0x7a2   :  { %4150 = vadd.xlane.f32.xlu1 %v4149_v43 }
 0x7fd   :  { %v4142_v7 = vpop.xlane.xlu0 %4141 }
 0x7fe   :  { %v4159_v32 = vadd.f32 %v4158_v41, %v4142_v7 }
 0x800   :  { %v4169_v51 = vperm.slane %v4159_v32, %v4168_v6 }
 0x805   :  { %v4145_v16 = vpop.xlane.xlu1 %4144 }
 0x806   :  { %v4160_v11 = vadd.f32 %v4158_v41, %v4145_v16 }
 0x808   :  { %v4171_v23 = vperm.slane %v4160_v11, %v4170_v63 }
 0x80a   :  { %v4173_v12 = vsel %vm4172_vm7, %v4171_v23, %v4169_v51 }
 0x80d   :  { %v4148_v19 = vpop.xlane.xlu0 %4147 }
 0x80e   :  { %v4161_v21 = vadd.f32 %v4158_v41, %v4148_v19 }
 0x810   :  { %v4175_v45 = vperm.slane %v4161_v21, %v4174_v58 }
 0x812   :  { %v4177_v27 = vsel %vm4176_vm1, %v4175_v45, %v4173_v12 }
 0x815   :  { %v4151_v17 = vpop.xlane.xlu1 %4150 }
 0x816   :  { %v4162_v28 = vadd.f32 %v4158_v41, %v4151_v17 }
 0x818   :  { %v4179_v57 = vperm.slane %v4162_v28, %v4178_v53 }
 0x81a   :  { %v4181_v62 = vsel %vm4180_vm8, %v4179_v57, %v4177_v27 }
 0x81b   :  { %4184 = vst.msk [vmem:[%s6924_s23] sm:$0x1] %vm4183_vm9, %v4181_v62 }

</bundles_post_ra>
